<compile_context>
chip_gen: v6e
topology: v6e:2x2x1
jax: 0.10.0
libtpu: 0.0.40
codegen_flags: <defaults>
</compile_context>

<pallas_src>
import numpy as np
import jax
import jax.numpy as jnp
from jax.experimental import pallas as pl
from jax.experimental.pallas import tpu as pltpu

_HIGH = jax.lax.Precision.HIGHEST


# --------------------------------------------------------------------------- #
# interpolation / pooling matrices (static numpy, trace-time)
# --------------------------------------------------------------------------- #
def _adaptive_pool_matrix(L, s):
    """(s, L) averaging matrix matching nn.AdaptiveAvgPool2d along one axis."""
    m = np.zeros((s, L), np.float32)
    for i in range(s):
        a = (i * L) // s
        b = ((i + 1) * L + s - 1) // s
        m[i, a:b] = 1.0 / (b - a)
    return m


def _upsample_matrix_ac(L, s):
    """(L, s) bilinear upsample matrix, align_corners=True (torch semantics)."""
    u = np.zeros((L, s), np.float32)
    if s == 1 or L == 1:
        u[:, 0] = 1.0
        return u
    scale = (s - 1) / (L - 1)
    for i in range(L):
        pos = i * scale
        j0 = min(int(np.floor(pos)), s - 2)
        t = pos - j0
        u[i, j0] += 1.0 - t
        u[i, j0 + 1] += t
    return u


# --------------------------------------------------------------------------- #
# row-block (tile) selection
# --------------------------------------------------------------------------- #
def _pick_row_block(H, W, N, target_pixels=1024):
    """Largest TH dividing H with TH*W <= target and (TH*W)%128==0 (or TH==H)."""
    cands = [t for t in range(1, H + 1)
             if H % t == 0 and ((t * W) % 128 == 0 or t == H)]
    fit = [t for t in cands if t * W <= target_pixels]
    TH = max(fit) if fit else min(cands)
    # v7x has 2 TensorCores sharded over the "parallel" grid axes: for a
    # single-image call keep at least 2 programs in the grid when possible.
    if N == 1 and H // TH < 2:
        alt = [t for t in cands if H // t >= 2]
        if alt:
            alt_fit = [t for t in alt if t * W <= target_pixels]
            TH = max(alt_fit) if alt_fit else min(alt)
    return TH


# --------------------------------------------------------------------------- #
# 1x1 conv in channels-on-sublane layout
# --------------------------------------------------------------------------- #
def _conv1x1_cp(wt, x, bias=None, use_mxu=False):
    """y[o, p] = sum_c wt[o, c] * x[c, p] (+ bias[o, 0]).

    For tiny Cin (the toy GDNet config, C=4) this is Cin broadcast FMAs on the
    VPU — an MXU push/pop would dwarf the 4-wide contraction.  For large Cin
    (real GDNet uses C=512) a single MXU matmul is used instead.
    """
    if use_mxu:
        out = jnp.dot(wt, x, preferred_element_type=jnp.float32)
    else:
        cin = wt.shape[1]
        out = wt[:, 0:1] * x[0:1, :]                 # (O,1)*(1,P) -> (O,P)
        for c in range(1, cin):
            out = out + wt[:, c:c + 1] * x[c:c + 1, :]
    if bias is not None:
        out = out + bias                             # (O,1) lane-broadcast
    return out


# --------------------------------------------------------------------------- #
# fused full-resolution kernel
# --------------------------------------------------------------------------- #
def _make_fused_kernel(C, O, P, offs):
    n_scales = len(offs) - 1
    use_mxu = C >= 32

    def kernel(x_ref, rp_ref, ci_ref, wn_ref, bn_ref,
               wbt_ref, wbb_ref, bb_ref, o_ref):
        # feats tile, channels on sublanes, pixels (lane-dense) on lanes.
        xf = x_ref[...].astype(jnp.float32)          # (C, P)
        wn = wn_ref[...]                             # (C, C)  weight_net (out, in)
        bn = bn_ref[...]                             # (C, 1)
        wbt = wbt_ref[...]                           # (O, C)  bottleneck, "overall" half
        wbb = wbb_ref[...]                           # (O, C)  bottleneck, "feats" half
        bb = bb_ref[...]                             # (O, 1)

        num = jnp.zeros((C, P), jnp.float32)
        den = jnp.zeros((C, P), jnp.float32)
        for i in range(n_scales):
            # bilinear row interpolation of the pre-tiled, width-interpolated
            # scale features: <= 6 taps, each a plain FMA on resident tiles.
            p0 = offs[i]
            ms = rp_ref[p0:p0 + 1, :] * ci_ref[p0].astype(jnp.float32)
            for p in range(p0 + 1, offs[i + 1]):
                ms = ms + rp_ref[p:p + 1, :] * ci_ref[p].astype(jnp.float32)
            # weight net: sigmoid(conv1x1(feats - scale_feature))
            z = _conv1x1_cp(wn, xf - ms, bn, use_mxu)
            sig = pl.reciprocal(1.0 + jnp.exp(-z), approx=False)
            num = num + ms * sig
            den = den + sig
        overall = num * pl.reciprocal(den, approx=False)

        # bottleneck 1x1 on cat([overall, feats], channel) + ReLU; the weight is
        # pre-split so the concat never materialises.
        y = (_conv1x1_cp(wbt, overall, bb, use_mxu)
             + _conv1x1_cp(wbb, xf, None, use_mxu))
        o_ref[...] = jnp.maximum(y, 0.0).astype(o_ref.dtype)

    return kernel


# --------------------------------------------------------------------------- #
# wrapper
# --------------------------------------------------------------------------- #
def contextual_module_forward(x_nchw, params, sizes=(1, 2, 3, 6),
                              io_dtype=jnp.float32, target_pixels=1024):
    N, C, H, W = x_nchw.shape
    O = params["wb"].shape[1]
    offs = [0]
    for s in sizes:
        offs.append(offs[-1] + s)
    S = offs[-1]                                                   # 12 for (1,2,3,6)

    x = x_nchw.astype(jnp.float32)                                 # NCHW, no transpose

    # ---- tiny global stage (XLA glue; every output here is <= SxCxW) --------
    # TODO(synk): the adaptive-avg-pool global reduction stays in XLA (one
    # streaming einsum over feats); it could become a small reduction kernel.
    ph = np.concatenate([_adaptive_pool_matrix(H, s) for s in sizes], axis=0)
    pooled_rows = jnp.einsum("sh,nchw->ncsw", jnp.asarray(ph), x,
                             precision=_HIGH)                      # (N, C, S, W)
    ci_parts = []
    for i, s in enumerate(sizes):
        pw = jnp.asarray(_adaptive_pool_matrix(W, s))              # (s, W)
        pr = pooled_rows[:, :, offs[i]:offs[i + 1], :]             # (N, C, s, W)
        pooled = jnp.einsum("qw,ncsw->ncsq", pw, pr, precision=_HIGH)
        conv = jnp.einsum("ncsq,cd->ndsq", pooled, params["w_scale"][i],
                          precision=_HIGH)                         # 1x1 conv, no bias
        uw = jnp.asarray(_upsample_matrix_ac(W, s))                # (W, s)
        ci_parts.append(jnp.einsum("wq,ndsq->nsdw", uw, conv, precision=_HIGH))
    ci_w = jnp.concatenate(ci_parts, axis=1)                       # (N, S, C, W)

    # per-pixel bilinear row weights (depend on h only); kept f32 (small).
    uh = np.concatenate([_upsample_matrix_ac(H, s) for s in sizes], axis=1)  # (H, S)
    rp = jnp.asarray(np.ascontiguousarray(np.repeat(uh, W, axis=0).T))       # (S, H*W)

    # ---- row-block choice (lane-aligned pixel tiles) -------------------------
    TH = _pick_row_block(H, W, N, target_pixels)
    P = TH * W

    # pre-tiled scale features: W-pattern repeated TH times -> direct per-tap FMA
    ci_tiled = jnp.tile(ci_w, (1, 1, 1, TH)).astype(io_dtype)      # (N, S, C, P)

    x2 = x.reshape(N, C, H * W).astype(io_dtype)                   # free NCHW reshape
    wn_t = params["wn"].T.astype(jnp.float32)                      # (Cout, Cin)
    wbt_t = params["wb"][:C].T.astype(jnp.float32)                 # pairs with "overall"
    wbb_t = params["wb"][C:].T.astype(jnp.float32)                 # pairs with feats
    bn2 = params["bn"].reshape(C, 1).astype(jnp.float32)
    bb2 = params["bb"].reshape(O, 1).astype(jnp.float32)

    kernel = _make_fused_kernel(C, O, P, tuple(offs))

    # derived VMEM budget: double-buffered blocks + margin, clamped to 64 MiB.
    bpe = jnp.dtype(io_dtype).itemsize
    block_bytes = (C * bpe + S * 4 + S * C * bpe + O * bpe) * P
    vmem_limit = int(min(64 * 1024 * 1024, max(4 * 1024 * 1024, 8 * block_bytes)))

    out = pl.pallas_call(
        kernel,
        out_shape=jax.ShapeDtypeStruct((N, O, H * W), io_dtype),
        grid=(N, H // TH),
        in_specs=[
            pl.BlockSpec((None, C, P), lambda n, hb: (n, 0, hb)),       # feats pixels
            pl.BlockSpec((S, P), lambda n, hb: (0, hb)),                # row-interp w.
            pl.BlockSpec((None, S, C, P), lambda n, hb: (n, 0, 0, 0)),  # scale feats
            pl.BlockSpec((C, C), lambda n, hb: (0, 0)),                 # weight_net W^T
            pl.BlockSpec((C, 1), lambda n, hb: (0, 0)),                 # weight_net b
            pl.BlockSpec((O, C), lambda n, hb: (0, 0)),                 # bottleneck W top
            pl.BlockSpec((O, C), lambda n, hb: (0, 0)),                 # bottleneck W bot
            pl.BlockSpec((O, 1), lambda n, hb: (0, 0)),                 # bottleneck b
        ],
        out_specs=pl.BlockSpec((None, O, P), lambda n, hb: (n, 0, hb)),
        compiler_params=pltpu.CompilerParams(
            dimension_semantics=("parallel", "parallel"),
            vmem_limit_bytes=vmem_limit),
    )(x2, rp, ci_tiled, wn_t, bn2, wbt_t, wbb_t, bb2)

    return out.reshape(N, O, H, W)                                 # free reshape to NCHW


# --------------------------------------------------------------------------- #
# pure-JAX reference (independent implementation, torch semantics)
# --------------------------------------------------------------------------- #
def _ref_adaptive_pool(x, s):
    N, H, W, C = x.shape
    rows = []
    for i in range(s):
        h0, h1 = (i * H) // s, ((i + 1) * H + s - 1) // s
        cols = []
        for j in range(s):
            w0, w1 = (j * W) // s, ((j + 1) * W + s - 1) // s
            cols.append(jnp.mean(x[:, h0:h1, w0:w1, :], axis=(1, 2)))
        rows.append(jnp.stack(cols, axis=1))
    return jnp.stack(rows, axis=1)                                 # (N, s, s, C)


def _ref_upsample_ac(img, H, W):
    N, sh, sw, C = img.shape

    def idx(L, s):
        if s == 1:
            z = np.zeros((L,), np.int64)
            return z, z, np.zeros((L,), np.float32)
        pos = np.arange(L, dtype=np.float64) * (s - 1) / (L - 1)
        j0 = np.minimum(np.floor(pos).astype(np.int64), s - 2)
        return j0, j0 + 1, (pos - j0).astype(np.float32)

    h0, h1, th = idx(H, sh)
    w0, w1, tw = idx(W, sw)
    wgt = lambda a, b: (a[:, None] * b[None, :])[None, :, :, None]
    return (img[:, h0][:, :, w0] * wgt(1 - th, 1 - tw)
            + img[:, h0][:, :, w1] * wgt(1 - th, tw)
            + img[:, h1][:, :, w0] * wgt(th, 1 - tw)
            + img[:, h1][:, :, w1] * wgt(th, tw))


def ref_forward(x_nchw, params, sizes=(1, 2, 3, 6)):
    N, C, H, W = x_nchw.shape
    x = jnp.transpose(x_nchw, (0, 2, 3, 1)).astype(jnp.float32)
    multi = []
    for i, s in enumerate(sizes):
        p = _ref_adaptive_pool(x, s)
        p = jnp.einsum("npqc,cd->npqd", p, params["w_scale"][i], precision=_HIGH)
        multi.append(_ref_upsample_ac(p, H, W))
    wgts = [jax.nn.sigmoid(jnp.einsum("nhwc,cd->nhwd", x - m, params["wn"],
                                      precision=_HIGH) + params["bn"])
            for m in multi]
    overall = sum(m * w for m, w in zip(multi, wgts)) / sum(wgts)
    cat = jnp.concatenate([overall, x], axis=-1)
    y = jnp.einsum("nhwc,cd->nhwd", cat, params["wb"], precision=_HIGH) + params["bb"]
    y = jnp.maximum(y, 0.0)
    return jnp.transpose(y, (0, 3, 1, 2))


# --------------------------------------------------------------------------- #
if __name__ == "__main__":
    N, Cin, Cout, H, W = 2, 4, 4, 16, 16
    sizes = (1, 2, 3, 6)

    key = jax.random.PRNGKey(0)
    ks = jax.random.split(key, 9)
    # 1x1 conv weights stored in (Cin, Cout) matmul convention (== torch weight.T).
    params = dict(
        w_scale=[0.3 * jax.random.normal(ks[i], (Cin, Cin), jnp.float32)
                 for i in range(4)],
        wn=0.3 * jax.random.normal(ks[4], (Cin, Cin), jnp.float32),
        bn=0.1 * jax.random.normal(ks[5], (Cin,), jnp.float32),
        wb=0.3 * jax.random.normal(ks[6], (2 * Cin, Cout), jnp.float32),
        bb=0.1 * jax.random.normal(ks[7], (Cout,), jnp.float32),
    )
    x = jax.random.normal(ks[8], (N, Cin, H, W), jnp.float32)

    ref = jax.block_until_ready(ref_forward(x, params, sizes=sizes))

    # f32 I/O path: strict semantics check against the pure-JAX reference.
    fwd_f32 = jax.jit(lambda v: contextual_module_forward(
        v, params, sizes=sizes, io_dtype=jnp.float32))
    out_f32 = jax.block_until_ready(fwd_f32(x))
    assert out_f32.shape == (N, Cout, H, W)
    np.testing.assert_allclose(np.asarray(out_f32), np.asarray(ref),
                               rtol=1e-4, atol=1e-4)

    # bf16 I/O path (v5e/v6e HBM-bandwidth optimization): data moves in bf16,
    # all in-kernel accumulation stays f32 -> only input-quantization error.
    fwd_bf16 = jax.jit(lambda v: contextual_module_forward(
        v, params, sizes=sizes, io_dtype=jnp.bfloat16))
    out_bf16 = jax.block_until_ready(fwd_bf16(x))
    np.testing.assert_allclose(np.asarray(out_bf16, dtype=np.float32),
                               np.asarray(ref), rtol=5e-2, atol=5e-2)

    print("KERNEL_OK")
</pallas_src>

<mosaic_0001>
module attributes {stable_mosaic.version = 11 : i64} {
  func.func @kernel(%arg0: i32, %arg1: i32, %arg2: memref<1x4x256xf32, #tpu.memory_space<vmem>>, %arg3: memref<12x256xf32, #tpu.memory_space<vmem>>, %arg4: memref<1x12x4x256xf32, #tpu.memory_space<vmem>>, %arg5: memref<4x4xf32, #tpu.memory_space<vmem>>, %arg6: memref<4x1xf32, #tpu.memory_space<vmem>>, %arg7: memref<4x4xf32, #tpu.memory_space<vmem>>, %arg8: memref<4x4xf32, #tpu.memory_space<vmem>>, %arg9: memref<4x1xf32, #tpu.memory_space<vmem>>, %arg10: memref<1x4x256xf32, #tpu.memory_space<vmem>>) attributes {dimension_semantics = [#tpu.dimension_semantics<parallel>, #tpu.dimension_semantics<parallel>], iteration_bounds = array<i64: 2, 1>, scalar_prefetch = 0 : i64, scratch_operands = 0 : i64, tpu.core_type = #tpu.core_type<tc>, window_params = [{transform_indices = @transform_0, window_bounds = array<i64: 1, 4, 256>}, {transform_indices = @transform_1, window_bounds = array<i64: 12, 256>}, {transform_indices = @transform_2, window_bounds = array<i64: 1, 12, 4, 256>}, {pipeline_mode = #tpu.pipeline_mode<synchronous>, transform_indices = @transform_3, window_bounds = array<i64: 4, 4>}, {pipeline_mode = #tpu.pipeline_mode<synchronous>, transform_indices = @transform_4, window_bounds = array<i64: 4, 1>}, {pipeline_mode = #tpu.pipeline_mode<synchronous>, transform_indices = @transform_5, window_bounds = array<i64: 4, 4>}, {pipeline_mode = #tpu.pipeline_mode<synchronous>, transform_indices = @transform_6, window_bounds = array<i64: 4, 4>}, {pipeline_mode = #tpu.pipeline_mode<synchronous>, transform_indices = @transform_7, window_bounds = array<i64: 4, 1>}, {transform_indices = @transform_8, window_bounds = array<i64: 1, 4, 256>}]} {
    %c0 = arith.constant 0 : index
    %c0_0 = arith.constant 0 : index
    %c0_1 = arith.constant 0 : index
    %0 = vector.load %arg2[%c0, %c0_0, %c0_1] : memref<1x4x256xf32, #tpu.memory_space<vmem>>, vector<1x4x256xf32>
    %1 = vector.shape_cast %0 : vector<1x4x256xf32> to vector<4x256xf32>
    %c0_2 = arith.constant 0 : index
    %c0_3 = arith.constant 0 : index
    %2 = vector.load %arg5[%c0_2, %c0_3] : memref<4x4xf32, #tpu.memory_space<vmem>>, vector<4x4xf32>
    %c0_4 = arith.constant 0 : index
    %c0_5 = arith.constant 0 : index
    %3 = vector.load %arg6[%c0_4, %c0_5] : memref<4x1xf32, #tpu.memory_space<vmem>>, vector<4x1xf32>
    %c0_6 = arith.constant 0 : index
    %c0_7 = arith.constant 0 : index
    %4 = vector.load %arg7[%c0_6, %c0_7] : memref<4x4xf32, #tpu.memory_space<vmem>>, vector<4x4xf32>
    %c0_8 = arith.constant 0 : index
    %c0_9 = arith.constant 0 : index
    %5 = vector.load %arg8[%c0_8, %c0_9] : memref<4x4xf32, #tpu.memory_space<vmem>>, vector<4x4xf32>
    %c0_10 = arith.constant 0 : index
    %c0_11 = arith.constant 0 : index
    %6 = vector.load %arg9[%c0_10, %c0_11] : memref<4x1xf32, #tpu.memory_space<vmem>>, vector<4x1xf32>
    %cst = arith.constant 0.000000e+00 : f32
    %7 = vector.broadcast %cst : f32 to vector<4x256xf32>
    %cst_12 = arith.constant 0.000000e+00 : f32
    %8 = vector.broadcast %cst_12 : f32 to vector<4x256xf32>
    %c0_13 = arith.constant 0 : index
    %c0_14 = arith.constant 0 : index
    %9 = vector.load %arg3[%c0_13, %c0_14] : memref<12x256xf32, #tpu.memory_space<vmem>>, vector<1x256xf32>
    %c0_15 = arith.constant 0 : index
    %c0_16 = arith.constant 0 : index
    %c0_17 = arith.constant 0 : index
    %c0_18 = arith.constant 0 : index
    %10 = vector.load %arg4[%c0_15, %c0_16, %c0_17, %c0_18] : memref<1x12x4x256xf32, #tpu.memory_space<vmem>>, vector<1x1x4x256xf32>
    %11 = vector.shape_cast %10 : vector<1x1x4x256xf32> to vector<4x256xf32>
    %12 = vector.broadcast %9 : vector<1x256xf32> to vector<4x256xf32>
    %13 = arith.mulf %12, %11 : vector<4x256xf32>
    %14 = arith.subf %1, %13 : vector<4x256xf32>
    %15 = vector.extract_strided_slice %2 {offsets = [0, 0], sizes = [4, 1], strides = [1, 1]} : vector<4x4xf32> to vector<4x1xf32>
    %16 = vector.extract_strided_slice %14 {offsets = [0, 0], sizes = [1, 256], strides = [1, 1]} : vector<4x256xf32> to vector<1x256xf32>
    %17 = vector.broadcast %15 : vector<4x1xf32> to vector<4x256xf32>
    %18 = vector.broadcast %16 : vector<1x256xf32> to vector<4x256xf32>
    %19 = arith.mulf %17, %18 : vector<4x256xf32>
    %20 = vector.extract_strided_slice %2 {offsets = [0, 1], sizes = [4, 1], strides = [1, 1]} : vector<4x4xf32> to vector<4x1xf32>
    %21 = vector.extract_strided_slice %14 {offsets = [1, 0], sizes = [1, 256], strides = [1, 1]} : vector<4x256xf32> to vector<1x256xf32>
    %22 = vector.broadcast %20 : vector<4x1xf32> to vector<4x256xf32>
    %23 = vector.broadcast %21 : vector<1x256xf32> to vector<4x256xf32>
    %24 = arith.mulf %22, %23 : vector<4x256xf32>
    %25 = arith.addf %19, %24 : vector<4x256xf32>
    %26 = vector.extract_strided_slice %2 {offsets = [0, 2], sizes = [4, 1], strides = [1, 1]} : vector<4x4xf32> to vector<4x1xf32>
    %27 = vector.extract_strided_slice %14 {offsets = [2, 0], sizes = [1, 256], strides = [1, 1]} : vector<4x256xf32> to vector<1x256xf32>
    %28 = vector.broadcast %26 : vector<4x1xf32> to vector<4x256xf32>
    %29 = vector.broadcast %27 : vector<1x256xf32> to vector<4x256xf32>
    %30 = arith.mulf %28, %29 : vector<4x256xf32>
    %31 = arith.addf %25, %30 : vector<4x256xf32>
    %32 = vector.extract_strided_slice %2 {offsets = [0, 3], sizes = [4, 1], strides = [1, 1]} : vector<4x4xf32> to vector<4x1xf32>
    %33 = vector.extract_strided_slice %14 {offsets = [3, 0], sizes = [1, 256], strides = [1, 1]} : vector<4x256xf32> to vector<1x256xf32>
    %34 = vector.broadcast %32 : vector<4x1xf32> to vector<4x256xf32>
    %35 = vector.broadcast %33 : vector<1x256xf32> to vector<4x256xf32>
    %36 = arith.mulf %34, %35 : vector<4x256xf32>
    %37 = arith.addf %31, %36 : vector<4x256xf32>
    %38 = vector.broadcast %3 : vector<4x1xf32> to vector<4x256xf32>
    %39 = arith.addf %37, %38 : vector<4x256xf32>
    %cst_19 = arith.constant 0.000000e+00 : f32
    %40 = vector.broadcast %cst_19 : f32 to vector<4x256xf32>
    %41 = arith.subf %40, %39 : vector<4x256xf32>
    %42 = math.exp %41 : vector<4x256xf32>
    %cst_20 = arith.constant 1.000000e+00 : f32
    %43 = vector.broadcast %cst_20 : f32 to vector<4x256xf32>
    %44 = arith.addf %43, %42 : vector<4x256xf32>
    %45 = tpu.reciprocal %44 : vector<4x256xf32> -> vector<4x256xf32>
    %46 = arith.mulf %13, %45 : vector<4x256xf32>
    %47 = arith.addf %7, %46 : vector<4x256xf32>
    %48 = arith.addf %8, %45 : vector<4x256xf32>
    %c1 = arith.constant 1 : index
    %c0_21 = arith.constant 0 : index
    %49 = vector.load %arg3[%c1, %c0_21] : memref<12x256xf32, #tpu.memory_space<vmem>>, vector<1x256xf32>
    %c0_22 = arith.constant 0 : index
    %c1_23 = arith.constant 1 : index
    %c0_24 = arith.constant 0 : index
    %c0_25 = arith.constant 0 : index
    %50 = vector.load %arg4[%c0_22, %c1_23, %c0_24, %c0_25] : memref<1x12x4x256xf32, #tpu.memory_space<vmem>>, vector<1x1x4x256xf32>
    %51 = vector.shape_cast %50 : vector<1x1x4x256xf32> to vector<4x256xf32>
    %52 = vector.broadcast %49 : vector<1x256xf32> to vector<4x256xf32>
    %53 = arith.mulf %52, %51 : vector<4x256xf32>
    %c2 = arith.constant 2 : index
    %c0_26 = arith.constant 0 : index
    %54 = vector.load %arg3[%c2, %c0_26] : memref<12x256xf32, #tpu.memory_space<vmem>>, vector<1x256xf32>
    %c0_27 = arith.constant 0 : index
    %c2_28 = arith.constant 2 : index
    %c0_29 = arith.constant 0 : index
    %c0_30 = arith.constant 0 : index
    %55 = vector.load %arg4[%c0_27, %c2_28, %c0_29, %c0_30] : memref<1x12x4x256xf32, #tpu.memory_space<vmem>>, vector<1x1x4x256xf32>
    %56 = vector.shape_cast %55 : vector<1x1x4x256xf32> to vector<4x256xf32>
    %57 = vector.broadcast %54 : vector<1x256xf32> to vector<4x256xf32>
    %58 = arith.mulf %57, %56 : vector<4x256xf32>
    %59 = arith.addf %53, %58 : vector<4x256xf32>
    %60 = arith.subf %1, %59 : vector<4x256xf32>
    %61 = vector.extract_strided_slice %2 {offsets = [0, 0], sizes = [4, 1], strides = [1, 1]} : vector<4x4xf32> to vector<4x1xf32>
    %62 = vector.extract_strided_slice %60 {offsets = [0, 0], sizes = [1, 256], strides = [1, 1]} : vector<4x256xf32> to vector<1x256xf32>
    %63 = vector.broadcast %61 : vector<4x1xf32> to vector<4x256xf32>
    %64 = vector.broadcast %62 : vector<1x256xf32> to vector<4x256xf32>
    %65 = arith.mulf %63, %64 : vector<4x256xf32>
    %66 = vector.extract_strided_slice %2 {offsets = [0, 1], sizes = [4, 1], strides = [1, 1]} : vector<4x4xf32> to vector<4x1xf32>
    %67 = vector.extract_strided_slice %60 {offsets = [1, 0], sizes = [1, 256], strides = [1, 1]} : vector<4x256xf32> to vector<1x256xf32>
    %68 = vector.broadcast %66 : vector<4x1xf32> to vector<4x256xf32>
    %69 = vector.broadcast %67 : vector<1x256xf32> to vector<4x256xf32>
    %70 = arith.mulf %68, %69 : vector<4x256xf32>
    %71 = arith.addf %65, %70 : vector<4x256xf32>
    %72 = vector.extract_strided_slice %2 {offsets = [0, 2], sizes = [4, 1], strides = [1, 1]} : vector<4x4xf32> to vector<4x1xf32>
    %73 = vector.extract_strided_slice %60 {offsets = [2, 0], sizes = [1, 256], strides = [1, 1]} : vector<4x256xf32> to vector<1x256xf32>
    %74 = vector.broadcast %72 : vector<4x1xf32> to vector<4x256xf32>
    %75 = vector.broadcast %73 : vector<1x256xf32> to vector<4x256xf32>
    %76 = arith.mulf %74, %75 : vector<4x256xf32>
    %77 = arith.addf %71, %76 : vector<4x256xf32>
    %78 = vector.extract_strided_slice %2 {offsets = [0, 3], sizes = [4, 1], strides = [1, 1]} : vector<4x4xf32> to vector<4x1xf32>
    %79 = vector.extract_strided_slice %60 {offsets = [3, 0], sizes = [1, 256], strides = [1, 1]} : vector<4x256xf32> to vector<1x256xf32>
    %80 = vector.broadcast %78 : vector<4x1xf32> to vector<4x256xf32>
    %81 = vector.broadcast %79 : vector<1x256xf32> to vector<4x256xf32>
    %82 = arith.mulf %80, %81 : vector<4x256xf32>
    %83 = arith.addf %77, %82 : vector<4x256xf32>
    %84 = vector.broadcast %3 : vector<4x1xf32> to vector<4x256xf32>
    %85 = arith.addf %83, %84 : vector<4x256xf32>
    %cst_31 = arith.constant 0.000000e+00 : f32
    %86 = vector.broadcast %cst_31 : f32 to vector<4x256xf32>
    %87 = arith.subf %86, %85 : vector<4x256xf32>
    %88 = math.exp %87 : vector<4x256xf32>
    %cst_32 = arith.constant 1.000000e+00 : f32
    %89 = vector.broadcast %cst_32 : f32 to vector<4x256xf32>
    %90 = arith.addf %89, %88 : vector<4x256xf32>
    %91 = tpu.reciprocal %90 : vector<4x256xf32> -> vector<4x256xf32>
    %92 = arith.mulf %59, %91 : vector<4x256xf32>
    %93 = arith.addf %47, %92 : vector<4x256xf32>
    %94 = arith.addf %48, %91 : vector<4x256xf32>
    %c3 = arith.constant 3 : index
    %c0_33 = arith.constant 0 : index
    %95 = vector.load %arg3[%c3, %c0_33] : memref<12x256xf32, #tpu.memory_space<vmem>>, vector<1x256xf32>
    %c0_34 = arith.constant 0 : index
    %c3_35 = arith.constant 3 : index
    %c0_36 = arith.constant 0 : index
    %c0_37 = arith.constant 0 : index
    %96 = vector.load %arg4[%c0_34, %c3_35, %c0_36, %c0_37] : memref<1x12x4x256xf32, #tpu.memory_space<vmem>>, vector<1x1x4x256xf32>
    %97 = vector.shape_cast %96 : vector<1x1x4x256xf32> to vector<4x256xf32>
    %98 = vector.broadcast %95 : vector<1x256xf32> to vector<4x256xf32>
    %99 = arith.mulf %98, %97 : vector<4x256xf32>
    %c4 = arith.constant 4 : index
    %c0_38 = arith.constant 0 : index
    %100 = vector.load %arg3[%c4, %c0_38] : memref<12x256xf32, #tpu.memory_space<vmem>>, vector<1x256xf32>
    %c0_39 = arith.constant 0 : index
    %c4_40 = arith.constant 4 : index
    %c0_41 = arith.constant 0 : index
    %c0_42 = arith.constant 0 : index
    %101 = vector.load %arg4[%c0_39, %c4_40, %c0_41, %c0_42] : memref<1x12x4x256xf32, #tpu.memory_space<vmem>>, vector<1x1x4x256xf32>
    %102 = vector.shape_cast %101 : vector<1x1x4x256xf32> to vector<4x256xf32>
    %103 = vector.broadcast %100 : vector<1x256xf32> to vector<4x256xf32>
    %104 = arith.mulf %103, %102 : vector<4x256xf32>
    %105 = arith.addf %99, %104 : vector<4x256xf32>
    %c5 = arith.constant 5 : index
    %c0_43 = arith.constant 0 : index
    %106 = vector.load %arg3[%c5, %c0_43] : memref<12x256xf32, #tpu.memory_space<vmem>>, vector<1x256xf32>
    %c0_44 = arith.constant 0 : index
    %c5_45 = arith.constant 5 : index
    %c0_46 = arith.constant 0 : index
    %c0_47 = arith.constant 0 : index
    %107 = vector.load %arg4[%c0_44, %c5_45, %c0_46, %c0_47] : memref<1x12x4x256xf32, #tpu.memory_space<vmem>>, vector<1x1x4x256xf32>
    %108 = vector.shape_cast %107 : vector<1x1x4x256xf32> to vector<4x256xf32>
    %109 = vector.broadcast %106 : vector<1x256xf32> to vector<4x256xf32>
    %110 = arith.mulf %109, %108 : vector<4x256xf32>
    %111 = arith.addf %105, %110 : vector<4x256xf32>
    %112 = arith.subf %1, %111 : vector<4x256xf32>
    %113 = vector.extract_strided_slice %2 {offsets = [0, 0], sizes = [4, 1], strides = [1, 1]} : vector<4x4xf32> to vector<4x1xf32>
    %114 = vector.extract_strided_slice %112 {offsets = [0, 0], sizes = [1, 256], strides = [1, 1]} : vector<4x256xf32> to vector<1x256xf32>
    %115 = vector.broadcast %113 : vector<4x1xf32> to vector<4x256xf32>
    %116 = vector.broadcast %114 : vector<1x256xf32> to vector<4x256xf32>
    %117 = arith.mulf %115, %116 : vector<4x256xf32>
    %118 = vector.extract_strided_slice %2 {offsets = [0, 1], sizes = [4, 1], strides = [1, 1]} : vector<4x4xf32> to vector<4x1xf32>
    %119 = vector.extract_strided_slice %112 {offsets = [1, 0], sizes = [1, 256], strides = [1, 1]} : vector<4x256xf32> to vector<1x256xf32>
    %120 = vector.broadcast %118 : vector<4x1xf32> to vector<4x256xf32>
    %121 = vector.broadcast %119 : vector<1x256xf32> to vector<4x256xf32>
    %122 = arith.mulf %120, %121 : vector<4x256xf32>
    %123 = arith.addf %117, %122 : vector<4x256xf32>
    %124 = vector.extract_strided_slice %2 {offsets = [0, 2], sizes = [4, 1], strides = [1, 1]} : vector<4x4xf32> to vector<4x1xf32>
    %125 = vector.extract_strided_slice %112 {offsets = [2, 0], sizes = [1, 256], strides = [1, 1]} : vector<4x256xf32> to vector<1x256xf32>
    %126 = vector.broadcast %124 : vector<4x1xf32> to vector<4x256xf32>
    %127 = vector.broadcast %125 : vector<1x256xf32> to vector<4x256xf32>
    %128 = arith.mulf %126, %127 : vector<4x256xf32>
    %129 = arith.addf %123, %128 : vector<4x256xf32>
    %130 = vector.extract_strided_slice %2 {offsets = [0, 3], sizes = [4, 1], strides = [1, 1]} : vector<4x4xf32> to vector<4x1xf32>
    %131 = vector.extract_strided_slice %112 {offsets = [3, 0], sizes = [1, 256], strides = [1, 1]} : vector<4x256xf32> to vector<1x256xf32>
    %132 = vector.broadcast %130 : vector<4x1xf32> to vector<4x256xf32>
    %133 = vector.broadcast %131 : vector<1x256xf32> to vector<4x256xf32>
    %134 = arith.mulf %132, %133 : vector<4x256xf32>
    %135 = arith.addf %129, %134 : vector<4x256xf32>
    %136 = vector.broadcast %3 : vector<4x1xf32> to vector<4x256xf32>
    %137 = arith.addf %135, %136 : vector<4x256xf32>
    %cst_48 = arith.constant 0.000000e+00 : f32
    %138 = vector.broadcast %cst_48 : f32 to vector<4x256xf32>
    %139 = arith.subf %138, %137 : vector<4x256xf32>
    %140 = math.exp %139 : vector<4x256xf32>
    %cst_49 = arith.constant 1.000000e+00 : f32
    %141 = vector.broadcast %cst_49 : f32 to vector<4x256xf32>
    %142 = arith.addf %141, %140 : vector<4x256xf32>
    %143 = tpu.reciprocal %142 : vector<4x256xf32> -> vector<4x256xf32>
    %144 = arith.mulf %111, %143 : vector<4x256xf32>
    %145 = arith.addf %93, %144 : vector<4x256xf32>
    %146 = arith.addf %94, %143 : vector<4x256xf32>
    %c6 = arith.constant 6 : index
    %c0_50 = arith.constant 0 : index
    %147 = vector.load %arg3[%c6, %c0_50] : memref<12x256xf32, #tpu.memory_space<vmem>>, vector<1x256xf32>
    %c0_51 = arith.constant 0 : index
    %c6_52 = arith.constant 6 : index
    %c0_53 = arith.constant 0 : index
    %c0_54 = arith.constant 0 : index
    %148 = vector.load %arg4[%c0_51, %c6_52, %c0_53, %c0_54] : memref<1x12x4x256xf32, #tpu.memory_space<vmem>>, vector<1x1x4x256xf32>
    %149 = vector.shape_cast %148 : vector<1x1x4x256xf32> to vector<4x256xf32>
    %150 = vector.broadcast %147 : vector<1x256xf32> to vector<4x256xf32>
    %151 = arith.mulf %150, %149 : vector<4x256xf32>
    %c7 = arith.constant 7 : index
    %c0_55 = arith.constant 0 : index
    %152 = vector.load %arg3[%c7, %c0_55] : memref<12x256xf32, #tpu.memory_space<vmem>>, vector<1x256xf32>
    %c0_56 = arith.constant 0 : index
    %c7_57 = arith.constant 7 : index
    %c0_58 = arith.constant 0 : index
    %c0_59 = arith.constant 0 : index
    %153 = vector.load %arg4[%c0_56, %c7_57, %c0_58, %c0_59] : memref<1x12x4x256xf32, #tpu.memory_space<vmem>>, vector<1x1x4x256xf32>
    %154 = vector.shape_cast %153 : vector<1x1x4x256xf32> to vector<4x256xf32>
    %155 = vector.broadcast %152 : vector<1x256xf32> to vector<4x256xf32>
    %156 = arith.mulf %155, %154 : vector<4x256xf32>
    %157 = arith.addf %151, %156 : vector<4x256xf32>
    %c8 = arith.constant 8 : index
    %c0_60 = arith.constant 0 : index
    %158 = vector.load %arg3[%c8, %c0_60] : memref<12x256xf32, #tpu.memory_space<vmem>>, vector<1x256xf32>
    %c0_61 = arith.constant 0 : index
    %c8_62 = arith.constant 8 : index
    %c0_63 = arith.constant 0 : index
    %c0_64 = arith.constant 0 : index
    %159 = vector.load %arg4[%c0_61, %c8_62, %c0_63, %c0_64] : memref<1x12x4x256xf32, #tpu.memory_space<vmem>>, vector<1x1x4x256xf32>
    %160 = vector.shape_cast %159 : vector<1x1x4x256xf32> to vector<4x256xf32>
    %161 = vector.broadcast %158 : vector<1x256xf32> to vector<4x256xf32>
    %162 = arith.mulf %161, %160 : vector<4x256xf32>
    %163 = arith.addf %157, %162 : vector<4x256xf32>
    %c9 = arith.constant 9 : index
    %c0_65 = arith.constant 0 : index
    %164 = vector.load %arg3[%c9, %c0_65] : memref<12x256xf32, #tpu.memory_space<vmem>>, vector<1x256xf32>
    %c0_66 = arith.constant 0 : index
    %c9_67 = arith.constant 9 : index
    %c0_68 = arith.constant 0 : index
    %c0_69 = arith.constant 0 : index
    %165 = vector.load %arg4[%c0_66, %c9_67, %c0_68, %c0_69] : memref<1x12x4x256xf32, #tpu.memory_space<vmem>>, vector<1x1x4x256xf32>
    %166 = vector.shape_cast %165 : vector<1x1x4x256xf32> to vector<4x256xf32>
    %167 = vector.broadcast %164 : vector<1x256xf32> to vector<4x256xf32>
    %168 = arith.mulf %167, %166 : vector<4x256xf32>
    %169 = arith.addf %163, %168 : vector<4x256xf32>
    %c10 = arith.constant 10 : index
    %c0_70 = arith.constant 0 : index
    %170 = vector.load %arg3[%c10, %c0_70] : memref<12x256xf32, #tpu.memory_space<vmem>>, vector<1x256xf32>
    %c0_71 = arith.constant 0 : index
    %c10_72 = arith.constant 10 : index
    %c0_73 = arith.constant 0 : index
    %c0_74 = arith.constant 0 : index
    %171 = vector.load %arg4[%c0_71, %c10_72, %c0_73, %c0_74] : memref<1x12x4x256xf32, #tpu.memory_space<vmem>>, vector<1x1x4x256xf32>
    %172 = vector.shape_cast %171 : vector<1x1x4x256xf32> to vector<4x256xf32>
    %173 = vector.broadcast %170 : vector<1x256xf32> to vector<4x256xf32>
    %174 = arith.mulf %173, %172 : vector<4x256xf32>
    %175 = arith.addf %169, %174 : vector<4x256xf32>
    %c11 = arith.constant 11 : index
    %c0_75 = arith.constant 0 : index
    %176 = vector.load %arg3[%c11, %c0_75] : memref<12x256xf32, #tpu.memory_space<vmem>>, vector<1x256xf32>
    %c0_76 = arith.constant 0 : index
    %c11_77 = arith.constant 11 : index
    %c0_78 = arith.constant 0 : index
    %c0_79 = arith.constant 0 : index
    %177 = vector.load %arg4[%c0_76, %c11_77, %c0_78, %c0_79] : memref<1x12x4x256xf32, #tpu.memory_space<vmem>>, vector<1x1x4x256xf32>
    %178 = vector.shape_cast %177 : vector<1x1x4x256xf32> to vector<4x256xf32>
    %179 = vector.broadcast %176 : vector<1x256xf32> to vector<4x256xf32>
    %180 = arith.mulf %179, %178 : vector<4x256xf32>
    %181 = arith.addf %175, %180 : vector<4x256xf32>
    %182 = arith.subf %1, %181 : vector<4x256xf32>
    %183 = vector.extract_strided_slice %2 {offsets = [0, 0], sizes = [4, 1], strides = [1, 1]} : vector<4x4xf32> to vector<4x1xf32>
    %184 = vector.extract_strided_slice %182 {offsets = [0, 0], sizes = [1, 256], strides = [1, 1]} : vector<4x256xf32> to vector<1x256xf32>
    %185 = vector.broadcast %183 : vector<4x1xf32> to vector<4x256xf32>
    %186 = vector.broadcast %184 : vector<1x256xf32> to vector<4x256xf32>
    %187 = arith.mulf %185, %186 : vector<4x256xf32>
    %188 = vector.extract_strided_slice %2 {offsets = [0, 1], sizes = [4, 1], strides = [1, 1]} : vector<4x4xf32> to vector<4x1xf32>
    %189 = vector.extract_strided_slice %182 {offsets = [1, 0], sizes = [1, 256], strides = [1, 1]} : vector<4x256xf32> to vector<1x256xf32>
    %190 = vector.broadcast %188 : vector<4x1xf32> to vector<4x256xf32>
    %191 = vector.broadcast %189 : vector<1x256xf32> to vector<4x256xf32>
    %192 = arith.mulf %190, %191 : vector<4x256xf32>
    %193 = arith.addf %187, %192 : vector<4x256xf32>
    %194 = vector.extract_strided_slice %2 {offsets = [0, 2], sizes = [4, 1], strides = [1, 1]} : vector<4x4xf32> to vector<4x1xf32>
    %195 = vector.extract_strided_slice %182 {offsets = [2, 0], sizes = [1, 256], strides = [1, 1]} : vector<4x256xf32> to vector<1x256xf32>
    %196 = vector.broadcast %194 : vector<4x1xf32> to vector<4x256xf32>
    %197 = vector.broadcast %195 : vector<1x256xf32> to vector<4x256xf32>
    %198 = arith.mulf %196, %197 : vector<4x256xf32>
    %199 = arith.addf %193, %198 : vector<4x256xf32>
    %200 = vector.extract_strided_slice %2 {offsets = [0, 3], sizes = [4, 1], strides = [1, 1]} : vector<4x4xf32> to vector<4x1xf32>
    %201 = vector.extract_strided_slice %182 {offsets = [3, 0], sizes = [1, 256], strides = [1, 1]} : vector<4x256xf32> to vector<1x256xf32>
    %202 = vector.broadcast %200 : vector<4x1xf32> to vector<4x256xf32>
    %203 = vector.broadcast %201 : vector<1x256xf32> to vector<4x256xf32>
    %204 = arith.mulf %202, %203 : vector<4x256xf32>
    %205 = arith.addf %199, %204 : vector<4x256xf32>
    %206 = vector.broadcast %3 : vector<4x1xf32> to vector<4x256xf32>
    %207 = arith.addf %205, %206 : vector<4x256xf32>
    %cst_80 = arith.constant 0.000000e+00 : f32
    %208 = vector.broadcast %cst_80 : f32 to vector<4x256xf32>
    %209 = arith.subf %208, %207 : vector<4x256xf32>
    %210 = math.exp %209 : vector<4x256xf32>
    %cst_81 = arith.constant 1.000000e+00 : f32
    %211 = vector.broadcast %cst_81 : f32 to vector<4x256xf32>
    %212 = arith.addf %211, %210 : vector<4x256xf32>
    %213 = tpu.reciprocal %212 : vector<4x256xf32> -> vector<4x256xf32>
    %214 = arith.mulf %181, %213 : vector<4x256xf32>
    %215 = arith.addf %145, %214 : vector<4x256xf32>
    %216 = arith.addf %146, %213 : vector<4x256xf32>
    %217 = tpu.reciprocal %216 : vector<4x256xf32> -> vector<4x256xf32>
    %218 = arith.mulf %215, %217 : vector<4x256xf32>
    %219 = vector.extract_strided_slice %4 {offsets = [0, 0], sizes = [4, 1], strides = [1, 1]} : vector<4x4xf32> to vector<4x1xf32>
    %220 = vector.extract_strided_slice %218 {offsets = [0, 0], sizes = [1, 256], strides = [1, 1]} : vector<4x256xf32> to vector<1x256xf32>
    %221 = vector.broadcast %219 : vector<4x1xf32> to vector<4x256xf32>
    %222 = vector.broadcast %220 : vector<1x256xf32> to vector<4x256xf32>
    %223 = arith.mulf %221, %222 : vector<4x256xf32>
    %224 = vector.extract_strided_slice %4 {offsets = [0, 1], sizes = [4, 1], strides = [1, 1]} : vector<4x4xf32> to vector<4x1xf32>
    %225 = vector.extract_strided_slice %218 {offsets = [1, 0], sizes = [1, 256], strides = [1, 1]} : vector<4x256xf32> to vector<1x256xf32>
    %226 = vector.broadcast %224 : vector<4x1xf32> to vector<4x256xf32>
    %227 = vector.broadcast %225 : vector<1x256xf32> to vector<4x256xf32>
    %228 = arith.mulf %226, %227 : vector<4x256xf32>
    %229 = arith.addf %223, %228 : vector<4x256xf32>
    %230 = vector.extract_strided_slice %4 {offsets = [0, 2], sizes = [4, 1], strides = [1, 1]} : vector<4x4xf32> to vector<4x1xf32>
    %231 = vector.extract_strided_slice %218 {offsets = [2, 0], sizes = [1, 256], strides = [1, 1]} : vector<4x256xf32> to vector<1x256xf32>
    %232 = vector.broadcast %230 : vector<4x1xf32> to vector<4x256xf32>
    %233 = vector.broadcast %231 : vector<1x256xf32> to vector<4x256xf32>
    %234 = arith.mulf %232, %233 : vector<4x256xf32>
    %235 = arith.addf %229, %234 : vector<4x256xf32>
    %236 = vector.extract_strided_slice %4 {offsets = [0, 3], sizes = [4, 1], strides = [1, 1]} : vector<4x4xf32> to vector<4x1xf32>
    %237 = vector.extract_strided_slice %218 {offsets = [3, 0], sizes = [1, 256], strides = [1, 1]} : vector<4x256xf32> to vector<1x256xf32>
    %238 = vector.broadcast %236 : vector<4x1xf32> to vector<4x256xf32>
    %239 = vector.broadcast %237 : vector<1x256xf32> to vector<4x256xf32>
    %240 = arith.mulf %238, %239 : vector<4x256xf32>
    %241 = arith.addf %235, %240 : vector<4x256xf32>
    %242 = vector.broadcast %6 : vector<4x1xf32> to vector<4x256xf32>
    %243 = arith.addf %241, %242 : vector<4x256xf32>
    %244 = vector.extract_strided_slice %5 {offsets = [0, 0], sizes = [4, 1], strides = [1, 1]} : vector<4x4xf32> to vector<4x1xf32>
    %245 = vector.extract_strided_slice %1 {offsets = [0, 0], sizes = [1, 256], strides = [1, 1]} : vector<4x256xf32> to vector<1x256xf32>
    %246 = vector.broadcast %244 : vector<4x1xf32> to vector<4x256xf32>
    %247 = vector.broadcast %245 : vector<1x256xf32> to vector<4x256xf32>
    %248 = arith.mulf %246, %247 : vector<4x256xf32>
    %249 = vector.extract_strided_slice %5 {offsets = [0, 1], sizes = [4, 1], strides = [1, 1]} : vector<4x4xf32> to vector<4x1xf32>
    %250 = vector.extract_strided_slice %1 {offsets = [1, 0], sizes = [1, 256], strides = [1, 1]} : vector<4x256xf32> to vector<1x256xf32>
    %251 = vector.broadcast %249 : vector<4x1xf32> to vector<4x256xf32>
    %252 = vector.broadcast %250 : vector<1x256xf32> to vector<4x256xf32>
    %253 = arith.mulf %251, %252 : vector<4x256xf32>
    %254 = arith.addf %248, %253 : vector<4x256xf32>
    %255 = vector.extract_strided_slice %5 {offsets = [0, 2], sizes = [4, 1], strides = [1, 1]} : vector<4x4xf32> to vector<4x1xf32>
    %256 = vector.extract_strided_slice %1 {offsets = [2, 0], sizes = [1, 256], strides = [1, 1]} : vector<4x256xf32> to vector<1x256xf32>
    %257 = vector.broadcast %255 : vector<4x1xf32> to vector<4x256xf32>
    %258 = vector.broadcast %256 : vector<1x256xf32> to vector<4x256xf32>
    %259 = arith.mulf %257, %258 : vector<4x256xf32>
    %260 = arith.addf %254, %259 : vector<4x256xf32>
    %261 = vector.extract_strided_slice %5 {offsets = [0, 3], sizes = [4, 1], strides = [1, 1]} : vector<4x4xf32> to vector<4x1xf32>
    %262 = vector.extract_strided_slice %1 {offsets = [3, 0], sizes = [1, 256], strides = [1, 1]} : vector<4x256xf32> to vector<1x256xf32>
    %263 = vector.broadcast %261 : vector<4x1xf32> to vector<4x256xf32>
    %264 = vector.broadcast %262 : vector<1x256xf32> to vector<4x256xf32>
    %265 = arith.mulf %263, %264 : vector<4x256xf32>
    %266 = arith.addf %260, %265 : vector<4x256xf32>
    %267 = arith.addf %243, %266 : vector<4x256xf32>
    %cst_82 = arith.constant 0.000000e+00 : f32
    %268 = vector.broadcast %cst_82 : f32 to vector<4x256xf32>
    %269 = arith.maximumf %267, %268 : vector<4x256xf32>
    %c0_83 = arith.constant 0 : index
    %c0_84 = arith.constant 0 : index
    %c0_85 = arith.constant 0 : index
    %270 = vector.load %arg10[%c0_83, %c0_84, %c0_85] : memref<1x4x256xf32, #tpu.memory_space<vmem>>, vector<1x4x256xf32>
    %271 = vector.shape_cast %270 : vector<1x4x256xf32> to vector<4x256xf32>
    %272 = vector.shape_cast %269 : vector<4x256xf32> to vector<1x4x256xf32>
    tpu.vector_store %arg10[%c0_83, %c0_84, %c0_85], %272 {strides = array<i32>} : memref<1x4x256xf32, #tpu.memory_space<vmem>>, vector<1x4x256xf32>,
    return
  }
  func.func @transform_0(%arg0: i32, %arg1: i32) -> (i32, i32, i32) {
    %c0_i32 = arith.constant 0 : i32
    %c0_i32_0 = arith.constant 0 : i32
    return %arg0, %c0_i32, %arg1 : i32, i32, i32
  }
  func.func @transform_1(%arg0: i32, %arg1: i32) -> (i32, i32) {
    %c0_i32 = arith.constant 0 : i32
    %c0_i32_0 = arith.constant 0 : i32
    return %c0_i32, %arg1 : i32, i32
  }
  func.func @transform_2(%arg0: i32, %arg1: i32) -> (i32, i32, i32, i32) {
    %c0_i32 = arith.constant 0 : i32
    %c0_i32_0 = arith.constant 0 : i32
    %c0_i32_1 = arith.constant 0 : i32
    %c0_i32_2 = arith.constant 0 : i32
    return %arg0, %c0_i32, %c0_i32_0, %c0_i32_1 : i32, i32, i32, i32
  }
  func.func @transform_3(%arg0: i32, %arg1: i32) -> (i32, i32) {
    %c0_i32 = arith.constant 0 : i32
    %c0_i32_0 = arith.constant 0 : i32
    %c0_i32_1 = arith.constant 0 : i32
    return %c0_i32, %c0_i32_0 : i32, i32
  }
  func.func @transform_4(%arg0: i32, %arg1: i32) -> (i32, i32) {
    %c0_i32 = arith.constant 0 : i32
    %c0_i32_0 = arith.constant 0 : i32
    %c0_i32_1 = arith.constant 0 : i32
    return %c0_i32, %c0_i32_0 : i32, i32
  }
  func.func @transform_5(%arg0: i32, %arg1: i32) -> (i32, i32) {
    %c0_i32 = arith.constant 0 : i32
    %c0_i32_0 = arith.constant 0 : i32
    %c0_i32_1 = arith.constant 0 : i32
    return %c0_i32, %c0_i32_0 : i32, i32
  }
  func.func @transform_6(%arg0: i32, %arg1: i32) -> (i32, i32) {
    %c0_i32 = arith.constant 0 : i32
    %c0_i32_0 = arith.constant 0 : i32
    %c0_i32_1 = arith.constant 0 : i32
    return %c0_i32, %c0_i32_0 : i32, i32
  }
  func.func @transform_7(%arg0: i32, %arg1: i32) -> (i32, i32) {
    %c0_i32 = arith.constant 0 : i32
    %c0_i32_0 = arith.constant 0 : i32
    %c0_i32_1 = arith.constant 0 : i32
    return %c0_i32, %c0_i32_0 : i32, i32
  }
  func.func @transform_8(%arg0: i32, %arg1: i32) -> (i32, i32, i32) {
    %c0_i32 = arith.constant 0 : i32
    %c0_i32_0 = arith.constant 0 : i32
    return %arg0, %c0_i32, %arg1 : i32, i32, i32
  }
}

</mosaic_0001>

<bundles_post_ra>
// kernel: tile.9
= control target key start
LH: loop header
LB: loop body
LE: loop exit
PB: predicated region body
PF: predicated region fallthrough
CT: control target
= control target key end

     0   :  { %vm365_vm0 = vcmask 1043458   ;;  %s409_s6 = smov 3  ;;  %vm370_vm1 = vcmask 1045508   ;;  %vm375_vm2 = vcmask 1047558   ;;  %s412_s9 = smov 12  ;;  %vm4_vm3 = vcmask 1047556   ;;  %s9464_s0 = inlined_call_operand.vmem [shape: f32[2,12,4,16,16], index: 0, kind: input, shape index: {}]   ;;  %s9465_s1 = inlined_call_operand.vmem [shape: f32[2,12,4,256], index: 1, kind: output, shape index: {}]  }
   0x1   :  { %v4988_v0 = vld [vmem:[%s9464_s0 + $0x107] ss:$16 sm:%s409_s6]   ;;  %s417_s10 = smov 48  ;;  %s422_s15 = smov 192  ;;  %vm379_vm4 = vcmask 1048448   ;;  %vm6_vm5 = vcmask 130048  }
   0x2   :  { %v4989_v1 = vld [vmem:[%s9464_s0 + $0x107] ss:$16 sm:%s412_s9]   ;;  %v4990_v2 = vld [vmem:[%s9464_s0 + $0xcf] ss:$16 sm:%s417_s10]   ;;  %s360_s16 = smov 3  ;;  %s363_s21 = smov 12 }
   0x3   :  { %v415_v3 = vsel %vm365_vm0, %v4989_v1, %v4988_v0  ;;  %v4991_v4 = vld [vmem:[%s9464_s0 + $0xcf] ss:$16 sm:%s422_s15]   ;;  %v4980_v5 = vld [vmem:[%s9464_s0 + $0x7] ss:$16 sm:%s360_s16]   ;;  %s368_s22 = smov 48  ;;  %s373_s27 = smov 192 }
   0x4   :  { %v420_v6 = vsel %vm370_vm1, %v4990_v2, %v415_v3  ;;  %v4981_v7 = vld [vmem:[%s9464_s0 + $0x7] ss:$16 sm:%s363_s21]   ;;  %v4982_v8 = vld [vmem:[%s9464_s0 - $0x31] ss:$16 sm:%s368_s22]   ;;  %s434_s28 = smov 3  ;;  %s437_s4 = smov 12 }
   0x5   :  { %v425_v9 = vsel %vm375_vm2, %v4991_v4, %v420_v6  ;;  %v366_v10 = vsel %vm365_vm0, %v4981_v7, %v4980_v5  ;;  %v4983_v11 = vld [vmem:[%s9464_s0 - $0x31] ss:$16 sm:%s373_s27]   ;;  %v4992_v12 = vld [vmem:[%s9464_s0 + $0x187] ss:$16 sm:%s434_s28]   ;;  %s442_s5 = smov 48  ;;  %s5706_s6 = smov 112  }
   0x6   :  { %426 = vrot.lane.b32.xlu1 %v425_v9, %s5706_s6  ;;  %v371_v13 = vsel %vm370_vm1, %v4982_v8, %v366_v10  ;;  %v4993_v14 = vld [vmem:[%s9464_s0 + $0x187] ss:$16 sm:%s437_s4]   ;;  %s447_s9 = smov 192  ;;  %s384_s10 = smov 3  ;;  %vm978_vm6 = vcmask 917248   ;;  %vm1577_vm7 = vcmask 786048  }
   0x7   :  { %v376_v15 = vsel %vm375_vm2, %v4983_v11, %v371_v13  ;;  %v440_v16 = vsel %vm365_vm0, %v4993_v14, %v4992_v12  ;;  %v4994_v17 = vld [vmem:[%s9464_s0 + $0x14f] ss:$16 sm:%s442_s5]   ;;  %s387_s15 = smov 12  ;;  %s392_s16 = smov 48  ;;  %v4984_v20 = vld [vmem:[%s9464_s0 + $0x87] ss:$16 sm:%s384_s10]  }
   0x8   :  { %v4995_v18 = vld [vmem:[%s9464_s0 + $0x14f] ss:$16 sm:%s447_s9]   ;;  %377 = vrot.lane.b32.xlu0 %v376_v15, %s5706_s6  ;;  %v445_v19 = vsel %vm370_vm1, %v4994_v17, %v440_v16  ;;  %s397_s19 = smov 192  ;;  %s484_s20 = smov 3  ;;  %vm2176_vm8 = vcmask 654848   ;;  %vm2775_vm9 = vcmask 523648  }
   0x9   :  { %v450_v21 = vsel %vm375_vm2, %v4995_v18, %v445_v19  ;;  %v4985_v22 = vld [vmem:[%s9464_s0 + $0x87] ss:$16 sm:%s387_s15]   ;;  %v4986_v23 = vld [vmem:[%s9464_s0 + $0x4f] ss:$16 sm:%s392_s16]   ;;  %s487_s25 = smov 12  ;;  %s492_s26 = smov 48 }
   0xa   :  { %451 = vrot.lane.b32.xlu1 %v450_v21, %s5706_s6  ;;  %v390_v24 = vsel %vm365_vm0, %v4985_v22, %v4984_v20  ;;  %v4987_v25 = vld [vmem:[%s9464_s0 + $0x4f] ss:$16 sm:%s397_s19]   ;;  %s497_s29 = smov 192  ;;  %s459_s30 = smov 3  ;;  %vm3374_vm10 = vcmask 392448   ;;  %vm3973_vm11 = vcmask 261248  }
   0xb   :  { %v395_v26 = vsel %vm370_vm1, %v4986_v23, %v390_v24  ;;  %v5000_v27 = vld [vmem:[%s9464_s0 + $0x287] ss:$16 sm:%s484_s20]   ;;  %s462_s7 = smov 12  ;;  %s467_s8 = smov 48  ;;  %v5002_v31 = vld [vmem:[%s9464_s0 + $0x24f] ss:$16 sm:%s492_s26]  }
   0xc   :  { %v5001_v28 = vld [vmem:[%s9464_s0 + $0x287] ss:$16 sm:%s487_s25]   ;;  %v400_v29 = vsel %vm375_vm2, %v4987_v25, %v395_v26  ;;  %v5003_v32 = vld [vmem:[%s9464_s0 + $0x24f] ss:$16 sm:%s497_s29]   ;;  %s472_s13 = smov 192  ;;  %s534_s16 = smov 3 }
   0xd   :  { %v490_v30 = vsel %vm365_vm0, %v5001_v28, %v5000_v27  ;;  %401 = vrot.lane.b32.xlu0 %v400_v29, %s5706_s6  ;;  %v4996_v34 = vld [vmem:[%s9464_s0 + $0x207] ss:$16 sm:%s459_s30]   ;;  %s537_s17 = smov 12  ;;  %s542_s22 = smov 48 }
   0xe   :  { %v495_v33 = vsel %vm370_vm1, %v5002_v31, %v490_v30  ;;  %v4997_v36 = vld [vmem:[%s9464_s0 + $0x207] ss:$16 sm:%s462_s7]   ;;  %v4998_v37 = vld [vmem:[%s9464_s0 + $0x1cf] ss:$16 sm:%s467_s8]   ;;  %s547_s23 = smov 192  ;;  %s509_s26 = smov 3 }
   0xf   :  { %v500_v35 = vsel %vm375_vm2, %v5003_v32, %v495_v33  ;;  %v465_v38 = vsel %vm365_vm0, %v4997_v36, %v4996_v34  ;;  %v4999_v39 = vld [vmem:[%s9464_s0 + $0x1cf] ss:$16 sm:%s472_s13]   ;;  %v5008_v41 = vld [vmem:[%s9464_s0 + $0x387] ss:$16 sm:%s534_s16]   ;;  %s512_s2 = smov 12  ;;  %s517_s3 = smov 48 }
  0x10   :  { %501 = vrot.lane.b32.xlu1 %v500_v35, %s5706_s6  ;;  %v470_v40 = vsel %vm370_vm1, %v4998_v37, %v465_v38  ;;  %v5009_v42 = vld [vmem:[%s9464_s0 + $0x387] ss:$16 sm:%s537_s17]   ;;  %s522_s9 = smov 192  ;;  %s584_s12 = smov 3 }
  0x11   :  { %v475_v43 = vsel %vm375_vm2, %v4999_v39, %v470_v40  ;;  %v540_v44 = vsel %vm365_vm0, %v5009_v42, %v5008_v41  ;;  %v5010_v45 = vld [vmem:[%s9464_s0 + $0x34f] ss:$16 sm:%s542_s22]   ;;  %v5004_v48 = vld [vmem:[%s9464_s0 + $0x307] ss:$16 sm:%s509_s26]   ;;  %s587_s13 = smov 12  ;;  %s592_s18 = smov 48 }
  0x12   :  { %v5011_v46 = vld [vmem:[%s9464_s0 + $0x34f] ss:$16 sm:%s547_s23]   ;;  %476 = vrot.lane.b32.xlu0 %v475_v43, %s5706_s6  ;;  %v545_v47 = vsel %vm370_vm1, %v5010_v45, %v540_v44  ;;  %s597_s19 = smov 192  ;;  %s559_s22 = smov 3 }
  0x13   :  { %v550_v49 = vsel %vm375_vm2, %v5011_v46, %v545_v47  ;;  %v5005_v50 = vld [vmem:[%s9464_s0 + $0x307] ss:$16 sm:%s512_s2]   ;;  %v5006_v51 = vld [vmem:[%s9464_s0 + $0x2cf] ss:$16 sm:%s517_s3]   ;;  %s562_s27 = smov 12  ;;  %s567_s28 = smov 48 }
  0x14   :  { %551 = vrot.lane.b32.xlu1 %v550_v49, %s5706_s6  ;;  %v515_v52 = vsel %vm365_vm0, %v5005_v50, %v5004_v48  ;;  %v5007_v53 = vld [vmem:[%s9464_s0 + $0x2cf] ss:$16 sm:%s522_s9]   ;;  %s572_s4 = smov 192  ;;  %s634_s8 = smov 3 }
  0x15   :  { %v520_v54 = vsel %vm370_vm1, %v5006_v51, %v515_v52  ;;  %v5016_v55 = vld [vmem:[%s9464_s0 + $0x487] ss:$16 sm:%s584_s12]   ;;  %v5018_v59 = vld [vmem:[%s9464_s0 + $0x44f] ss:$16 sm:%s592_s18]   ;;  %s637_s9 = smov 12  ;;  %s642_s14 = smov 48 }
  0x16   :  { %v5017_v56 = vld [vmem:[%s9464_s0 + $0x487] ss:$16 sm:%s587_s13]   ;;  %v525_v57 = vsel %vm375_vm2, %v5007_v53, %v520_v54  ;;  %v5019_v60 = vld [vmem:[%s9464_s0 + $0x44f] ss:$16 sm:%s597_s19]   ;;  %s647_s15 = smov 192  ;;  %s609_s18 = smov 3 }
  0x17   :  { %v590_v58 = vsel %vm365_vm0, %v5017_v56, %v5016_v55  ;;  %526 = vrot.lane.b32.xlu0 %v525_v57, %s5706_s6  ;;  %v5012_v62 = vld [vmem:[%s9464_s0 + $0x407] ss:$16 sm:%s559_s22]   ;;  %s612_s23 = smov 12  ;;  %s617_s24 = smov 48 }
  0x18   :  { %v595_v61 = vsel %vm370_vm1, %v5018_v59, %v590_v58  ;;  %v5013_v0 = vld [vmem:[%s9464_s0 + $0x407] ss:$16 sm:%s562_s27]   ;;  %v5014_v1 = vld [vmem:[%s9464_s0 + $0x3cf] ss:$16 sm:%s567_s28]   ;;  %s622_s29 = smov 192  ;;  %s684_s3 = smov 3 }
  0x19   :  { %v600_v63 = vsel %vm375_vm2, %v5019_v60, %v595_v61  ;;  %v565_v2 = vsel %vm365_vm0, %v5013_v0, %v5012_v62  ;;  %v5015_v3 = vld [vmem:[%s9464_s0 + $0x3cf] ss:$16 sm:%s572_s4]   ;;  %v5024_v5 = vld [vmem:[%s9464_s0 + $0x587] ss:$16 sm:%s634_s8]   ;;  %s687_s4 = smov 12  ;;  %s692_s10 = smov 48 }
  0x1a   :  { %601 = vrot.lane.b32.xlu1 %v600_v63, %s5706_s6  ;;  %v570_v4 = vsel %vm370_vm1, %v5014_v1, %v565_v2  ;;  %v5025_v6 = vld [vmem:[%s9464_s0 + $0x587] ss:$16 sm:%s637_s9]   ;;  %s697_s11 = smov 192  ;;  %s662_s19 = smov 12 }
  0x1b   :  { %v575_v7 = vsel %vm375_vm2, %v5015_v3, %v570_v4  ;;  %v640_v8 = vsel %vm365_vm0, %v5025_v6, %v5024_v5  ;;  %v5026_v9 = vld [vmem:[%s9464_s0 + $0x54f] ss:$16 sm:%s642_s14]   ;;  %v5020_v12 = vld [vmem:[%s9464_s0 + $0x507] ss:$16 sm:%s609_s18]   ;;  %s659_s14 = smov 3  ;;  %s667_s20 = smov 48 }
  0x1c   :  { %v5027_v10 = vld [vmem:[%s9464_s0 + $0x54f] ss:$16 sm:%s647_s15]   ;;  %576 = vrot.lane.b32.xlu0 %v575_v7, %s5706_s6  ;;  %v645_v11 = vsel %vm370_vm1, %v5026_v9, %v640_v8  ;;  %s672_s25 = smov 192  ;;  %s734_s28 = smov 3 }
  0x1d   :  { %v650_v13 = vsel %vm375_vm2, %v5027_v10, %v645_v11  ;;  %v5021_v14 = vld [vmem:[%s9464_s0 + $0x507] ss:$16 sm:%s612_s23]   ;;  %v5022_v15 = vld [vmem:[%s9464_s0 + $0x4cf] ss:$16 sm:%s617_s24]   ;;  %s742_s5 = smov 48  ;;  %s747_s7 = smov 192 }
  0x1e   :  { %651 = vrot.lane.b32.xlu1 %v650_v13, %s5706_s6  ;;  %v615_v16 = vsel %vm365_vm0, %v5021_v14, %v5020_v12  ;;  %v5023_v17 = vld [vmem:[%s9464_s0 + $0x4cf] ss:$16 sm:%s622_s29]   ;;  %s737_s29 = smov 12  ;;  %s712_s15 = smov 12 }
  0x1f   :  { %v620_v18 = vsel %vm370_vm1, %v5022_v15, %v615_v16  ;;  %v5032_v19 = vld [vmem:[%s9464_s0 + $0xc7] ss:$16 sm:%s684_s3]   ;;  %v5034_v23 = vld [vmem:[%s9464_s0 + $0x8f] ss:$16 sm:%s692_s10]   ;;  %s709_s10 = smov 3  ;;  %s717_s16 = smov 48 }
  0x20   :  { %v5033_v20 = vld [vmem:[%s9464_s0 + $0xc7] ss:$16 sm:%s687_s4]   ;;  %v625_v21 = vsel %vm375_vm2, %v5023_v17, %v620_v18  ;;  %v5035_v24 = vld [vmem:[%s9464_s0 + $0x8f] ss:$16 sm:%s697_s11]   ;;  %s722_s21 = smov 192  ;;  %s784_s24 = smov 3 }
  0x21   :  { %v690_v22 = vsel %vm365_vm0, %v5033_v20, %v5032_v19  ;;  %626 = vrot.lane.b32.xlu0 %v625_v21, %s5706_s6  ;;  %v5028_v26 = vld [vmem:[%s9464_s0 + $0x47] ss:$16 sm:%s659_s14]   ;;  %s792_s30 = smov 48  ;;  %s797_s2 = smov 192 }
  0x22   :  { %v695_v25 = vsel %vm370_vm1, %v5034_v23, %v690_v22  ;;  %v5029_v28 = vld [vmem:[%s9464_s0 + $0x47] ss:$16 sm:%s662_s19]   ;;  %v5030_v29 = vld [vmem:[%s9464_s0 + $0xf] ss:$16 sm:%s667_s20]   ;;  %s762_s11 = smov 12  ;;  %s767_s12 = smov 48 }
  0x23   :  { %v700_v27 = vsel %vm375_vm2, %v5035_v24, %v695_v25  ;;  %v665_v30 = vsel %vm365_vm0, %v5029_v28, %v5028_v26  ;;  %v5031_v31 = vld [vmem:[%s9464_s0 + $0xf] ss:$16 sm:%s672_s25]   ;;  %v5040_v33 = vld [vmem:[%s9464_s0 + $0x1c7] ss:$16 sm:%s734_s28]   ;;  %s787_s25 = smov 12  ;;  %s772_s17 = smov 192 }
  0x24   :  { %701 = vrot.lane.b32.xlu1 %v700_v27, %s5706_s6  ;;  %v670_v32 = vsel %vm370_vm1, %v5030_v29, %v665_v30  ;;  %v5041_v34 = vld [vmem:[%s9464_s0 + $0x1c7] ss:$16 sm:%s737_s29]   ;;  %s834_s20 = smov 3  ;;  %s842_s26 = smov 48 }
  0x25   :  { %v675_v35 = vsel %vm375_vm2, %v5031_v31, %v670_v32  ;;  %v740_v36 = vsel %vm365_vm0, %v5041_v34, %v5040_v33  ;;  %v5042_v37 = vld [vmem:[%s9464_s0 + $0x18f] ss:$16 sm:%s742_s5]   ;;  %v5036_v40 = vld [vmem:[%s9464_s0 + $0x147] ss:$16 sm:%s709_s10]   ;;  %s759_s5 = smov 3  ;;  %s847_s27 = smov 192 }
  0x26   :  { %v5043_v38 = vld [vmem:[%s9464_s0 + $0x18f] ss:$16 sm:%s747_s7]   ;;  %676 = vrot.lane.b32.xlu0 %v675_v35, %s5706_s6  ;;  %v745_v39 = vsel %vm370_vm1, %v5042_v37, %v740_v36  ;;  %s812_s7 = smov 12  ;;  %s817_s8 = smov 48 }
  0x27   :  { %v750_v41 = vsel %vm375_vm2, %v5043_v38, %v745_v39  ;;  %v5037_v42 = vld [vmem:[%s9464_s0 + $0x147] ss:$16 sm:%s712_s15]   ;;  %v5038_v43 = vld [vmem:[%s9464_s0 + $0x10f] ss:$16 sm:%s717_s16]   ;;  %s822_s13 = smov 192  ;;  %s884_s16 = smov 3 }
  0x28   :  { %751 = vrot.lane.b32.xlu1 %v750_v41, %s5706_s6  ;;  %v715_v44 = vsel %vm365_vm0, %v5037_v42, %v5036_v40  ;;  %v5039_v45 = vld [vmem:[%s9464_s0 + $0x10f] ss:$16 sm:%s722_s21]   ;;  %s837_s21 = smov 12  ;;  %s892_s22 = smov 48 }
  0x29   :  { %v720_v46 = vsel %vm370_vm1, %v5038_v43, %v715_v44  ;;  %v5048_v47 = vld [vmem:[%s9464_s0 + $0x2c7] ss:$16 sm:%s784_s24]   ;;  %v5050_v51 = vld [vmem:[%s9464_s0 + $0x28f] ss:$16 sm:%s792_s30]   ;;  %s809_s30 = smov 3  ;;  %s897_s23 = smov 192 }
  0x2a   :  { %v5049_v48 = vld [vmem:[%s9464_s0 + $0x2c7] ss:$16 sm:%s787_s25]   ;;  %v725_v49 = vsel %vm375_vm2, %v5039_v45, %v720_v46  ;;  %v5051_v52 = vld [vmem:[%s9464_s0 + $0x28f] ss:$16 sm:%s797_s2]   ;;  %s862_s2 = smov 12  ;;  %s867_s3 = smov 48 }
  0x2b   :  { %v790_v50 = vsel %vm365_vm0, %v5049_v48, %v5048_v47  ;;  %726 = vrot.lane.b32.xlu0 %v725_v49, %s5706_s6  ;;  %v5044_v54 = vld [vmem:[%s9464_s0 + $0x247] ss:$16 sm:%s759_s5]   ;;  %s872_s9 = smov 192  ;;  %s942_s18 = smov 48 }
  0x2c   :  { %v795_v53 = vsel %vm370_vm1, %v5050_v51, %v790_v50  ;;  %v5045_v56 = vld [vmem:[%s9464_s0 + $0x247] ss:$16 sm:%s762_s11]   ;;  %v5046_v57 = vld [vmem:[%s9464_s0 + $0x20f] ss:$16 sm:%s767_s12]   ;;  %s934_s12 = smov 3  ;;  %s947_s19 = smov 192 }
  0x2d   :  { %v800_v55 = vsel %vm375_vm2, %v5051_v52, %v795_v53  ;;  %v765_v58 = vsel %vm365_vm0, %v5045_v56, %v5044_v54  ;;  %v5047_v59 = vld [vmem:[%s9464_s0 + $0x20f] ss:$16 sm:%s772_s17]   ;;  %v5056_v61 = vld [vmem:[%s9464_s0 + $0x3c7] ss:$16 sm:%s834_s20]   ;;  %s887_s17 = smov 12  ;;  %s917_s28 = smov 48 }
  0x2e   :  { %801 = vrot.lane.b32.xlu1 %v800_v55, %s5706_s6  ;;  %v770_v60 = vsel %vm370_vm1, %v5046_v57, %v765_v58  ;;  %v5057_v62 = vld [vmem:[%s9464_s0 + $0x3c7] ss:$16 sm:%s837_s21]   ;;  %s922_s4 = smov 192  ;;  %s991_s14 = smov 48 }
  0x2f   :  { %v775_v63 = vsel %vm375_vm2, %v5047_v59, %v770_v60  ;;  %v840_v0 = vsel %vm365_vm0, %v5057_v62, %v5056_v61  ;;  %v5058_v1 = vld [vmem:[%s9464_s0 + $0x38f] ss:$16 sm:%s842_s26]   ;;  %v5052_v4 = vld [vmem:[%s9464_s0 + $0x347] ss:$16 sm:%s809_s30]   ;;  %s859_s26 = smov 3  ;;  %s996_s15 = smov 192 }
  0x30   :  { %v5059_v2 = vld [vmem:[%s9464_s0 + $0x38f] ss:$16 sm:%s847_s27]   ;;  %776 = vrot.lane.b32.xlu0 %v775_v63, %s5706_s6  ;;  %v845_v3 = vsel %vm370_vm1, %v5058_v1, %v840_v0  ;;  %s912_s27 = smov 12  ;;  %s967_s24 = smov 48 }
  0x31   :  { %v850_v5 = vsel %vm375_vm2, %v5059_v2, %v845_v3  ;;  %v5053_v6 = vld [vmem:[%s9464_s0 + $0x347] ss:$16 sm:%s812_s7]   ;;  %v5054_v7 = vld [vmem:[%s9464_s0 + $0x30f] ss:$16 sm:%s817_s8]   ;;  %s983_s8 = smov 3  ;;  %s972_s29 = smov 192 }
  0x32   :  { %851 = vrot.lane.b32.xlu1 %v850_v5, %s5706_s6  ;;  %v815_v8 = vsel %vm365_vm0, %v5053_v6, %v5052_v4  ;;  %v5055_v9 = vld [vmem:[%s9464_s0 + $0x30f] ss:$16 sm:%s822_s13]   ;;  %s937_s13 = smov 12  ;;  %s1046_s10 = smov 192 }
  0x33   :  { %v820_v10 = vsel %vm370_vm1, %v5054_v7, %v815_v8  ;;  %v5064_v11 = vld [vmem:[%s9464_s0 + $0x4c7] ss:$16 sm:%s884_s16]   ;;  %v5066_v15 = vld [vmem:[%s9464_s0 + $0x48f] ss:$16 sm:%s892_s22]   ;;  %s909_s22 = smov 3  ;;  %s5707_s11 = smov 96  }
  0x34   :  { %v5065_v12 = vld [vmem:[%s9464_s0 + $0x4c7] ss:$16 sm:%s887_s17]   ;;  %v825_v13 = vsel %vm375_vm2, %v5055_v9, %v820_v10  ;;  %v5067_v16 = vld [vmem:[%s9464_s0 + $0x48f] ss:$16 sm:%s897_s23]   ;;  %s962_s23 = smov 12  ;;  %s1016_s20 = smov 48 }
  0x35   :  { %v890_v14 = vsel %vm365_vm0, %v5065_v12, %v5064_v11  ;;  %826 = vrot.lane.b32.xlu0 %v825_v13, %s5706_s6  ;;  %v5060_v18 = vld [vmem:[%s9464_s0 + $0x447] ss:$16 sm:%s859_s26]   ;;  %s1021_s25 = smov 192  ;;  %s1096_s5 = smov 192 }
  0x36   :  { %v895_v17 = vsel %vm370_vm1, %v5066_v15, %v890_v14  ;;  %v5061_v20 = vld [vmem:[%s9464_s0 + $0x447] ss:$16 sm:%s862_s2]   ;;  %v5062_v21 = vld [vmem:[%s9464_s0 + $0x40f] ss:$16 sm:%s867_s3]   ;;  %s1033_s2 = smov 3  ;;  %s1036_s3 = smov 12 }
  0x37   :  { %v900_v19 = vsel %vm375_vm2, %v5067_v16, %v895_v17  ;;  %v865_v22 = vsel %vm365_vm0, %v5061_v20, %v5060_v18  ;;  %v5063_v23 = vld [vmem:[%s9464_s0 + $0x40f] ss:$16 sm:%s872_s9]   ;;  %v5072_v25 = vld [vmem:[%s9464_s0 + $0x5c7] ss:$16 sm:%s934_s12]   ;;  %s986_s9 = smov 12  ;;  %s1066_s16 = smov 48 }
  0x38   :  { %901 = vrot.lane.b32.xlu1 %v900_v19, %s5706_s6  ;;  %v870_v24 = vsel %vm370_vm1, %v5062_v21, %v865_v22  ;;  %v5073_v26 = vld [vmem:[%s9464_s0 + $0x5c7] ss:$16 sm:%s937_s13]   ;;  %s1071_s21 = smov 192  ;;  %s1146_s30 = smov 192 }
  0x39   :  { %v875_v27 = vsel %vm375_vm2, %v5063_v23, %v870_v24  ;;  %v940_v28 = vsel %vm365_vm0, %v5073_v26, %v5072_v25  ;;  %v5074_v29 = vld [vmem:[%s9464_s0 + $0x58f] ss:$16 sm:%s942_s18]   ;;  %v5068_v32 = vld [vmem:[%s9464_s0 + $0x547] ss:$16 sm:%s909_s22]   ;;  %s959_s18 = smov 3  ;;  %s1116_s12 = smov 48 }
  0x3a   :  { %v5075_v30 = vld [vmem:[%s9464_s0 + $0x58f] ss:$16 sm:%s947_s19]   ;;  %876 = vrot.lane.b32.xlu0 %v875_v27, %s5706_s6  ;;  %v945_v31 = vsel %vm370_vm1, %v5074_v29, %v940_v28  ;;  %s1011_s19 = smov 12  ;;  %s1121_s17 = smov 192 }
  0x3b   :  { %v950_v33 = vsel %vm375_vm2, %v5075_v30, %v945_v31  ;;  %v5069_v34 = vld [vmem:[%s9464_s0 + $0x547] ss:$16 sm:%s912_s27]   ;;  %v5070_v35 = vld [vmem:[%s9464_s0 + $0x50f] ss:$16 sm:%s917_s28]   ;;  %s1083_s28 = smov 3  ;;  %s1191_s26 = smov 48 }
  0x3c   :  { %951 = vrot.lane.b32.xlu1 %v950_v33, %s5706_s6  ;;  %v915_v36 = vsel %vm365_vm0, %v5069_v34, %v5068_v32  ;;  %v5071_v37 = vld [vmem:[%s9464_s0 + $0x50f] ss:$16 sm:%s922_s4]   ;;  %s1091_s4 = smov 48  ;;  %s1196_s27 = smov 192 }
  0x3d   :  { %v920_v38 = vsel %vm370_vm1, %v5070_v35, %v915_v36  ;;  %v5080_v39 = vld [vmem:[%s9464_s0 + $0x86] ss:$16 sm:%s983_s8]   ;;  %v5082_v43 = vld [vmem:[%s9464_s0 + $0x4e] ss:$16 sm:%s991_s14]   ;;  %s1008_s14 = smov 3  ;;  %s1166_s7 = smov 48 }
  0x3e   :  { %v5081_v40 = vld [vmem:[%s9464_s0 + $0x86] ss:$16 sm:%s986_s9]   ;;  %v925_v41 = vsel %vm375_vm2, %v5071_v37, %v920_v38  ;;  %v5083_v44 = vld [vmem:[%s9464_s0 + $0x4e] ss:$16 sm:%s996_s15]   ;;  %s1041_s9 = smov 48  ;;  %s1061_s15 = smov 12 }
  0x3f   :  { %v989_v42 = vsel %vm365_vm0, %v5081_v40, %v5080_v39  ;;  %926 = vrot.lane.b32.xlu0 %v925_v41, %s5706_s6  ;;  %v5076_v46 = vld [vmem:[%s9464_s0 + $0x6] ss:$16 sm:%s959_s18]   ;;  %s1141_s6 = smov 48  ;;  %s1171_s13 = smov 192 }
  0x40   :  { %v994_v45 = vsel %vm370_vm1, %v5082_v43, %v989_v42  ;;  %v5077_v48 = vld [vmem:[%s9464_s0 + $0x6] ss:$16 sm:%s962_s23]   ;;  %v5078_v49 = vld [vmem:[%s9464_s0 - $0x32] ss:$16 sm:%s967_s24]   ;;  %s1133_s24 = smov 3  ;;  %s1241_s22 = smov 48 }
  0x41   :  { %v999_v47 = vsel %vm375_vm2, %v5083_v44, %v994_v45  ;;  %v965_v50 = vsel %vm365_vm0, %v5077_v48, %v5076_v46  ;;  %v5079_v51 = vld [vmem:[%s9464_s0 - $0x32] ss:$16 sm:%s972_s29]   ;;  %v5088_v53 = vld [vmem:[%s9464_s0 + $0x186] ss:$16 sm:%s1033_s2]   ;;  %s1086_s29 = smov 12  ;;  %s1246_s23 = smov 192 }
  0x42   :  { %1000 = vrot.lane.b32.xlu1 %v999_v47, %s5707_s11  ;;  %v970_v52 = vsel %vm370_vm1, %v5078_v49, %v965_v50  ;;  %v5089_v54 = vld [vmem:[%s9464_s0 + $0x186] ss:$16 sm:%s1036_s3]   ;;  %s1216_s2 = smov 48  ;;  %s1221_s8 = smov 192 }
  0x43   :  { %v975_v55 = vsel %vm375_vm2, %v5079_v51, %v970_v52  ;;  %v1039_v56 = vsel %vm365_vm0, %v5089_v54, %v5088_v53  ;;  %v5090_v57 = vld [vmem:[%s9464_s0 + $0x14e] ss:$16 sm:%s1041_s9]   ;;  %v5084_v60 = vld [vmem:[%s9464_s0 + $0x106] ss:$16 sm:%s1008_s14]   ;;  %s1058_s9 = smov 3  ;;  %s1291_s18 = smov 48 }
  0x44   :  { %v5091_v58 = vld [vmem:[%s9464_s0 + $0x14e] ss:$16 sm:%s1046_s10]   ;;  %976 = vrot.lane.b32.xlu0 %v975_v55, %s5707_s11  ;;  %v1044_v59 = vsel %vm370_vm1, %v5090_v57, %v1039_v56  ;;  %s1111_s10 = smov 12  ;;  %s1271_s3 = smov 192 }
  0x45   :  { %v1049_v61 = vsel %vm375_vm2, %v5091_v58, %v1044_v59  ;;  %v5085_v62 = vld [vmem:[%s9464_s0 + $0x106] ss:$16 sm:%s1011_s19]   ;;  %v5086_v63 = vld [vmem:[%s9464_s0 + $0xce] ss:$16 sm:%s1016_s20]   ;;  %s1183_s20 = smov 3  ;;  %s1296_s19 = smov 192 }
  0x46   :  { %1050 = vrot.lane.b32.xlu1 %v1049_v61, %s5707_s11  ;;  %v1014_v0 = vsel %vm365_vm0, %v5085_v62, %v5084_v60  ;;  %v5087_v1 = vld [vmem:[%s9464_s0 + $0xce] ss:$16 sm:%s1021_s25]   ;;  %s1136_s25 = smov 12  ;;  %s1341_s14 = smov 48 }
  0x47   :  { %v1019_v2 = vsel %vm370_vm1, %v5086_v63, %v1014_v0  ;;  %v5096_v3 = vld [vmem:[%s9464_s0 + $0x286] ss:$16 sm:%s1083_s28]   ;;  %v5098_v7 = vld [vmem:[%s9464_s0 + $0x24e] ss:$16 sm:%s1091_s4]   ;;  %s1108_s4 = smov 3  ;;  %s1266_s28 = smov 48 }
  0x48   :  { %v5097_v4 = vld [vmem:[%s9464_s0 + $0x286] ss:$16 sm:%s1086_s29]   ;;  %v1024_v5 = vsel %vm375_vm2, %v5087_v1, %v1019_v2  ;;  %v5099_v8 = vld [vmem:[%s9464_s0 + $0x24e] ss:$16 sm:%s1096_s5]   ;;  %s1161_s5 = smov 12  ;;  %s1321_s29 = smov 192 }
  0x49   :  { %v1089_v6 = vsel %vm365_vm0, %v5097_v4, %v5096_v3  ;;  %1025 = vrot.lane.b32.xlu0 %v1024_v5, %s5707_s11  ;;  %v5092_v10 = vld [vmem:[%s9464_s0 + $0x206] ss:$16 sm:%s1058_s9]   ;;  %s1391_s9 = smov 48 }
  0x4a   :  { %v1094_v9 = vsel %vm370_vm1, %v5098_v7, %v1089_v6  ;;  %v5093_v12 = vld [vmem:[%s9464_s0 + $0x206] ss:$16 sm:%s1061_s15]   ;;  %v5094_v13 = vld [vmem:[%s9464_s0 + $0x1ce] ss:$16 sm:%s1066_s16]   ;;  %s1233_s16 = smov 3  ;;  %s1346_s15 = smov 192 }
  0x4b   :  { %v1099_v11 = vsel %vm375_vm2, %v5099_v8, %v1094_v9  ;;  %v1064_v14 = vsel %vm365_vm0, %v5093_v12, %v5092_v10  ;;  %v5095_v15 = vld [vmem:[%s9464_s0 + $0x1ce] ss:$16 sm:%s1071_s21]   ;;  %v5104_v17 = vld [vmem:[%s9464_s0 + $0x386] ss:$16 sm:%s1133_s24]   ;;  %s1186_s21 = smov 12  ;;  %s1316_s24 = smov 48 }
  0x4c   :  { %1100 = vrot.lane.b32.xlu1 %v1099_v11, %s5707_s11  ;;  %v1069_v16 = vsel %vm370_vm1, %v5094_v13, %v1064_v14  ;;  %v5105_v18 = vld [vmem:[%s9464_s0 + $0x386] ss:$16 sm:%s1136_s25]   ;;  %s1371_s25 = smov 192 }
  0x4d   :  { %v1074_v19 = vsel %vm375_vm2, %v5095_v15, %v1069_v16  ;;  %v1139_v20 = vsel %vm365_vm0, %v5105_v18, %v5104_v17  ;;  %v5106_v21 = vld [vmem:[%s9464_s0 + $0x34e] ss:$16 sm:%s1141_s6]   ;;  %v5100_v24 = vld [vmem:[%s9464_s0 + $0x306] ss:$16 sm:%s1108_s4]   ;;  %s1158_s6 = smov 3  ;;  %s1441_s4 = smov 48 }
  0x4e   :  { %v5107_v22 = vld [vmem:[%s9464_s0 + $0x34e] ss:$16 sm:%s1146_s30]   ;;  %1075 = vrot.lane.b32.xlu0 %v1074_v19, %s5707_s11  ;;  %v1144_v23 = vsel %vm370_vm1, %v5106_v21, %v1139_v20  ;;  %s1211_s30 = smov 12 }
  0x4f   :  { %v1149_v25 = vsel %vm375_vm2, %v5107_v22, %v1144_v23  ;;  %v5101_v26 = vld [vmem:[%s9464_s0 + $0x306] ss:$16 sm:%s1111_s10]   ;;  %v5102_v27 = vld [vmem:[%s9464_s0 + $0x2ce] ss:$16 sm:%s1116_s12]   ;;  %s1283_s12 = smov 3  ;;  %s1396_s10 = smov 192 }
  0x50   :  { %1150 = vrot.lane.b32.xlu1 %v1149_v25, %s5707_s11  ;;  %v1114_v28 = vsel %vm365_vm0, %v5101_v26, %v5100_v24  ;;  %v5103_v29 = vld [vmem:[%s9464_s0 + $0x2ce] ss:$16 sm:%s1121_s17]   ;;  %s1236_s17 = smov 12 }
  0x51   :  { %v1119_v30 = vsel %vm370_vm1, %v5102_v27, %v1114_v28  ;;  %v5112_v31 = vld [vmem:[%s9464_s0 + $0x486] ss:$16 sm:%s1183_s20]   ;;  %v5114_v35 = vld [vmem:[%s9464_s0 + $0x44e] ss:$16 sm:%s1191_s26]   ;;  %s1208_s26 = smov 3  ;;  %s1366_s20 = smov 48 }
  0x52   :  { %v5113_v32 = vld [vmem:[%s9464_s0 + $0x486] ss:$16 sm:%s1186_s21]   ;;  %v1124_v33 = vsel %vm375_vm2, %v5103_v29, %v1119_v30  ;;  %v5115_v36 = vld [vmem:[%s9464_s0 + $0x44e] ss:$16 sm:%s1196_s27]   ;;  %s1261_s27 = smov 12  ;;  %s1421_s21 = smov 192 }
  0x53   :  { %v1189_v34 = vsel %vm365_vm0, %v5113_v32, %v5112_v31  ;;  %1125 = vrot.lane.b32.xlu0 %v1124_v33, %s5707_s11  ;;  %v5108_v38 = vld [vmem:[%s9464_s0 + $0x406] ss:$16 sm:%s1158_s6]   ;;  %s1491_s6 = smov 48 }
  0x54   :  { %v1194_v37 = vsel %vm370_vm1, %v5114_v35, %v1189_v34  ;;  %v5109_v40 = vld [vmem:[%s9464_s0 + $0x406] ss:$16 sm:%s1161_s5]   ;;  %v5110_v41 = vld [vmem:[%s9464_s0 + $0x3ce] ss:$16 sm:%s1166_s7]   ;;  %s1333_s7 = smov 3  ;;  %s1446_s5 = smov 192 }
  0x55   :  { %v1199_v39 = vsel %vm375_vm2, %v5115_v36, %v1194_v37  ;;  %v1164_v42 = vsel %vm365_vm0, %v5109_v40, %v5108_v38  ;;  %v5111_v43 = vld [vmem:[%s9464_s0 + $0x3ce] ss:$16 sm:%s1171_s13]   ;;  %v5120_v45 = vld [vmem:[%s9464_s0 + $0x586] ss:$16 sm:%s1233_s16]   ;;  %s1286_s13 = smov 12  ;;  %s1416_s16 = smov 48 }
  0x56   :  { %1200 = vrot.lane.b32.xlu1 %v1199_v39, %s5707_s11  ;;  %v1169_v44 = vsel %vm370_vm1, %v5110_v41, %v1164_v42  ;;  %v5121_v46 = vld [vmem:[%s9464_s0 + $0x586] ss:$16 sm:%s1236_s17]   ;;  %s1471_s17 = smov 192 }
  0x57   :  { %v1174_v47 = vsel %vm375_vm2, %v5111_v43, %v1169_v44  ;;  %v1239_v48 = vsel %vm365_vm0, %v5121_v46, %v5120_v45  ;;  %v5122_v49 = vld [vmem:[%s9464_s0 + $0x54e] ss:$16 sm:%s1241_s22]   ;;  %v5116_v52 = vld [vmem:[%s9464_s0 + $0x506] ss:$16 sm:%s1208_s26]   ;;  %s1258_s22 = smov 3  ;;  %s1541_s26 = smov 48 }
  0x58   :  { %v5123_v50 = vld [vmem:[%s9464_s0 + $0x54e] ss:$16 sm:%s1246_s23]   ;;  %1175 = vrot.lane.b32.xlu0 %v1174_v47, %s5707_s11  ;;  %v1244_v51 = vsel %vm370_vm1, %v5122_v49, %v1239_v48  ;;  %s1311_s23 = smov 12 }
  0x59   :  { %v1249_v53 = vsel %vm375_vm2, %v5123_v50, %v1244_v51  ;;  %v5117_v54 = vld [vmem:[%s9464_s0 + $0x506] ss:$16 sm:%s1211_s30]   ;;  %v5118_v55 = vld [vmem:[%s9464_s0 + $0x4ce] ss:$16 sm:%s1216_s2]   ;;  %s1383_s2 = smov 3  ;;  %s1496_s30 = smov 192 }
  0x5a   :  { %1250 = vrot.lane.b32.xlu1 %v1249_v53, %s5707_s11  ;;  %v1214_v56 = vsel %vm365_vm0, %v5117_v54, %v5116_v52  ;;  %v5119_v57 = vld [vmem:[%s9464_s0 + $0x4ce] ss:$16 sm:%s1221_s8]   ;;  %s1336_s8 = smov 12 }
  0x5b   :  { %v1219_v58 = vsel %vm370_vm1, %v5118_v55, %v1214_v56  ;;  %v5128_v59 = vld [vmem:[%s9464_s0 + $0xc6] ss:$16 sm:%s1283_s12]   ;;  %v5130_v63 = vld [vmem:[%s9464_s0 + $0x8e] ss:$16 sm:%s1291_s18]   ;;  %s1308_s18 = smov 3  ;;  %s1466_s12 = smov 48 }
  0x5c   :  { %v5129_v60 = vld [vmem:[%s9464_s0 + $0xc6] ss:$16 sm:%s1286_s13]   ;;  %v1224_v61 = vsel %vm375_vm2, %v5119_v57, %v1219_v58  ;;  %v5131_v0 = vld [vmem:[%s9464_s0 + $0x8e] ss:$16 sm:%s1296_s19]   ;;  %s1361_s19 = smov 12  ;;  %s1521_s13 = smov 192 }
  0x5d   :  { %v1289_v62 = vsel %vm365_vm0, %v5129_v60, %v5128_v59  ;;  %1225 = vrot.lane.b32.xlu0 %v1224_v61, %s5707_s11  ;;  %v5124_v2 = vld [vmem:[%s9464_s0 + $0x46] ss:$16 sm:%s1258_s22]   ;;  %s1590_s22 = smov 48 }
  0x5e   :  { %v1294_v1 = vsel %vm370_vm1, %v5130_v63, %v1289_v62  ;;  %v5125_v4 = vld [vmem:[%s9464_s0 + $0x46] ss:$16 sm:%s1261_s27]   ;;  %v5126_v5 = vld [vmem:[%s9464_s0 + $0xe] ss:$16 sm:%s1266_s28]   ;;  %s1433_s28 = smov 3  ;;  %s1546_s27 = smov 192 }
  0x5f   :  { %v1299_v3 = vsel %vm375_vm2, %v5131_v0, %v1294_v1  ;;  %v1264_v6 = vsel %vm365_vm0, %v5125_v4, %v5124_v2  ;;  %v5127_v7 = vld [vmem:[%s9464_s0 + $0xe] ss:$16 sm:%s1271_s3]   ;;  %v5136_v9 = vld [vmem:[%s9464_s0 + $0x1c6] ss:$16 sm:%s1333_s7]   ;;  %s1386_s3 = smov 12  ;;  %s1516_s7 = smov 48 }
  0x60   :  { %1300 = vrot.lane.b32.xlu1 %v1299_v3, %s5707_s11  ;;  %v1269_v8 = vsel %vm370_vm1, %v5126_v5, %v1264_v6  ;;  %v5137_v10 = vld [vmem:[%s9464_s0 + $0x1c6] ss:$16 sm:%s1336_s8]   ;;  %s1571_s8 = smov 192 }
  0x61   :  { %v1274_v11 = vsel %vm375_vm2, %v5127_v7, %v1269_v8  ;;  %v1339_v12 = vsel %vm365_vm0, %v5137_v10, %v5136_v9  ;;  %v5138_v13 = vld [vmem:[%s9464_s0 + $0x18e] ss:$16 sm:%s1341_s14]   ;;  %v5132_v16 = vld [vmem:[%s9464_s0 + $0x146] ss:$16 sm:%s1308_s18]   ;;  %s1358_s14 = smov 3  ;;  %s1645_s18 = smov 192 }
  0x62   :  { %v5139_v14 = vld [vmem:[%s9464_s0 + $0x18e] ss:$16 sm:%s1346_s15]   ;;  %1275 = vrot.lane.b32.xlu0 %v1274_v11, %s5707_s11  ;;  %v1344_v15 = vsel %vm370_vm1, %v5138_v13, %v1339_v12  ;;  %s1411_s15 = smov 12 }
  0x63   :  { %v1349_v17 = vsel %vm375_vm2, %v5139_v14, %v1344_v15  ;;  %v5133_v18 = vld [vmem:[%s9464_s0 + $0x146] ss:$16 sm:%s1311_s23]   ;;  %v5134_v19 = vld [vmem:[%s9464_s0 + $0x10e] ss:$16 sm:%s1316_s24]   ;;  %s1483_s24 = smov 3  ;;  %s1595_s23 = smov 192 }
  0x64   :  { %1350 = vrot.lane.b32.xlu1 %v1349_v17, %s5707_s11  ;;  %v1314_v20 = vsel %vm365_vm0, %v5133_v18, %v5132_v16  ;;  %v5135_v21 = vld [vmem:[%s9464_s0 + $0x10e] ss:$16 sm:%s1321_s29]   ;;  %s1436_s29 = smov 12 }
  0x65   :  { %v1319_v22 = vsel %vm370_vm1, %v5134_v19, %v1314_v20  ;;  %v5144_v23 = vld [vmem:[%s9464_s0 + $0x2c6] ss:$16 sm:%s1383_s2]   ;;  %v5146_v27 = vld [vmem:[%s9464_s0 + $0x28e] ss:$16 sm:%s1391_s9]   ;;  %s1408_s9 = smov 3  ;;  %s1566_s2 = smov 48 }
  0x66   :  { %v5145_v24 = vld [vmem:[%s9464_s0 + $0x2c6] ss:$16 sm:%s1386_s3]   ;;  %v1324_v25 = vsel %vm375_vm2, %v5135_v21, %v1319_v22  ;;  %v5147_v28 = vld [vmem:[%s9464_s0 + $0x28e] ss:$16 sm:%s1396_s10]   ;;  %s1461_s10 = smov 12  ;;  %s1620_s3 = smov 192 }
  0x67   :  { %v1389_v26 = vsel %vm365_vm0, %v5145_v24, %v5144_v23  ;;  %1325 = vrot.lane.b32.xlu0 %v1324_v25, %s5707_s11  ;;  %v5140_v30 = vld [vmem:[%s9464_s0 + $0x246] ss:$16 sm:%s1358_s14]   ;;  %s1695_s14 = smov 192 }
  0x68   :  { %v1394_v29 = vsel %vm370_vm1, %v5146_v27, %v1389_v26  ;;  %v5141_v32 = vld [vmem:[%s9464_s0 + $0x246] ss:$16 sm:%s1361_s19]   ;;  %v5142_v33 = vld [vmem:[%s9464_s0 + $0x20e] ss:$16 sm:%s1366_s20]   ;;  %s1533_s20 = smov 3  ;;  %s5708_s19 = smov 80  }
  0x69   :  { %v1399_v31 = vsel %vm375_vm2, %v5147_v28, %v1394_v29  ;;  %v1364_v34 = vsel %vm365_vm0, %v5141_v32, %v5140_v30  ;;  %v5143_v35 = vld [vmem:[%s9464_s0 + $0x20e] ss:$16 sm:%s1371_s25]   ;;  %v5152_v37 = vld [vmem:[%s9464_s0 + $0x3c6] ss:$16 sm:%s1433_s28]   ;;  %s1486_s25 = smov 12  ;;  %s1615_s28 = smov 48 }
  0x6a   :  { %1400 = vrot.lane.b32.xlu1 %v1399_v31, %s5707_s11  ;;  %v1369_v36 = vsel %vm370_vm1, %v5142_v33, %v1364_v34  ;;  %v5153_v38 = vld [vmem:[%s9464_s0 + $0x3c6] ss:$16 sm:%s1436_s29]   ;;  %s1670_s29 = smov 192 }
  0x6b   :  { %v1374_v39 = vsel %vm375_vm2, %v5143_v35, %v1369_v36  ;;  %v1439_v40 = vsel %vm365_vm0, %v5153_v38, %v5152_v37  ;;  %v5154_v41 = vld [vmem:[%s9464_s0 + $0x38e] ss:$16 sm:%s1441_s4]   ;;  %v5148_v44 = vld [vmem:[%s9464_s0 + $0x346] ss:$16 sm:%s1408_s9]   ;;  %s1458_s4 = smov 3  ;;  %s1745_s9 = smov 192 }
  0x6c   :  { %v5155_v42 = vld [vmem:[%s9464_s0 + $0x38e] ss:$16 sm:%s1446_s5]   ;;  %1375 = vrot.lane.b32.xlu0 %v1374_v39, %s5707_s11  ;;  %v1444_v43 = vsel %vm370_vm1, %v5154_v41, %v1439_v40  ;;  %s1511_s5 = smov 12 }
  0x6d   :  { %v1449_v45 = vsel %vm375_vm2, %v5155_v42, %v1444_v43  ;;  %v5149_v46 = vld [vmem:[%s9464_s0 + $0x346] ss:$16 sm:%s1411_s15]   ;;  %v5150_v47 = vld [vmem:[%s9464_s0 + $0x30e] ss:$16 sm:%s1416_s16]   ;;  %s1582_s16 = smov 3  ;;  %s1765_s15 = smov 48 }
  0x6e   :  { %1450 = vrot.lane.b32.xlu1 %v1449_v45, %s5707_s11  ;;  %v1414_v48 = vsel %vm365_vm0, %v5149_v46, %v5148_v44  ;;  %v5151_v49 = vld [vmem:[%s9464_s0 + $0x30e] ss:$16 sm:%s1421_s21]   ;;  %s1536_s21 = smov 12 }
  0x6f   :  { %v1419_v50 = vsel %vm370_vm1, %v5150_v47, %v1414_v48  ;;  %v5160_v51 = vld [vmem:[%s9464_s0 + $0x4c6] ss:$16 sm:%s1483_s24]   ;;  %v5162_v55 = vld [vmem:[%s9464_s0 + $0x48e] ss:$16 sm:%s1491_s6]   ;;  %s1508_s6 = smov 3  ;;  %s1665_s24 = smov 48 }
  0x70   :  { %v5161_v52 = vld [vmem:[%s9464_s0 + $0x4c6] ss:$16 sm:%s1486_s25]   ;;  %v1424_v53 = vsel %vm375_vm2, %v5151_v49, %v1419_v50  ;;  %v5163_v56 = vld [vmem:[%s9464_s0 + $0x48e] ss:$16 sm:%s1496_s30]   ;;  %s1561_s30 = smov 12  ;;  %s1720_s25 = smov 192 }
  0x71   :  { %v1489_v54 = vsel %vm365_vm0, %v5161_v52, %v5160_v51  ;;  %1425 = vrot.lane.b32.xlu0 %v1424_v53, %s5707_s11  ;;  %v5156_v58 = vld [vmem:[%s9464_s0 + $0x446] ss:$16 sm:%s1458_s4]   ;;  %s1790_s4 = smov 48 }
  0x72   :  { %v1494_v57 = vsel %vm370_vm1, %v5162_v55, %v1489_v54  ;;  %v5157_v60 = vld [vmem:[%s9464_s0 + $0x446] ss:$16 sm:%s1461_s10]   ;;  %v5158_v61 = vld [vmem:[%s9464_s0 + $0x40e] ss:$16 sm:%s1466_s12]   ;;  %s1632_s10 = smov 3  ;;  %s1635_s12 = smov 12 }
  0x73   :  { %v1499_v59 = vsel %vm375_vm2, %v5163_v56, %v1494_v57  ;;  %v1464_v62 = vsel %vm365_vm0, %v5157_v60, %v5156_v58  ;;  %v5159_v63 = vld [vmem:[%s9464_s0 + $0x40e] ss:$16 sm:%s1471_s17]   ;;  %v5168_v1 = vld [vmem:[%s9464_s0 + $0x5c6] ss:$16 sm:%s1533_s20]   ;;  %s1585_s17 = smov 12  ;;  %s1715_s20 = smov 48 }
  0x74   :  { %1500 = vrot.lane.b32.xlu1 %v1499_v59, %s5707_s11  ;;  %v1469_v0 = vsel %vm370_vm1, %v5158_v61, %v1464_v62  ;;  %v5169_v2 = vld [vmem:[%s9464_s0 + $0x5c6] ss:$16 sm:%s1536_s21]   ;;  %s1770_s21 = smov 192 }
  0x75   :  { %v1474_v3 = vsel %vm375_vm2, %v5159_v63, %v1469_v0  ;;  %v1539_v4 = vsel %vm365_vm0, %v5169_v2, %v5168_v1  ;;  %v5170_v5 = vld [vmem:[%s9464_s0 + $0x58e] ss:$16 sm:%s1541_s26]   ;;  %v5164_v8 = vld [vmem:[%s9464_s0 + $0x546] ss:$16 sm:%s1508_s6]   ;;  %s1558_s26 = smov 3  ;;  %s1840_s6 = smov 48 }
  0x76   :  { %v5171_v6 = vld [vmem:[%s9464_s0 + $0x58e] ss:$16 sm:%s1546_s27]   ;;  %1475 = vrot.lane.b32.xlu0 %v1474_v3, %s5707_s11  ;;  %v1544_v7 = vsel %vm370_vm1, %v5170_v5, %v1539_v4  ;;  %s1610_s27 = smov 12 }
  0x77   :  { %v1549_v9 = vsel %vm375_vm2, %v5171_v6, %v1544_v7  ;;  %v5165_v10 = vld [vmem:[%s9464_s0 + $0x546] ss:$16 sm:%s1511_s5]   ;;  %v5166_v11 = vld [vmem:[%s9464_s0 + $0x50e] ss:$16 sm:%s1516_s7]   ;;  %s1682_s7 = smov 3  ;;  %s1795_s5 = smov 192 }
  0x78   :  { %1550 = vrot.lane.b32.xlu1 %v1549_v9, %s5707_s11  ;;  %v1514_v12 = vsel %vm365_vm0, %v5165_v10, %v5164_v8  ;;  %v5167_v13 = vld [vmem:[%s9464_s0 + $0x50e] ss:$16 sm:%s1521_s13]   ;;  %v6488_v14 = vpop.permute.xlu1 %426   ;;  %s1690_s13 = smov 48 }
  0x79   :  { %v1519_v15 = vsel %vm370_vm1, %v5166_v11, %v1514_v12  ;;  %v5176_v16 = vld [vmem:[%s9464_s0 + $0x85] ss:$16 sm:%s1582_s16]   ;;  %v5178_v20 = vld [vmem:[%s9464_s0 + $0x4d] ss:$16 sm:%s1590_s22]   ;;  %s1607_s22 = smov 3  ;;  %s1820_s16 = smov 192 }
  0x7a   :  { %v5177_v17 = vld [vmem:[%s9464_s0 + $0x85] ss:$16 sm:%s1585_s17]   ;;  %v1524_v18 = vsel %vm375_vm2, %v5167_v13, %v1519_v15  ;;  %v5179_v21 = vld [vmem:[%s9464_s0 + $0x4d] ss:$16 sm:%s1595_s23]   ;;  %v6505_v22 = vpop.permute.xlu0 %377   ;;  %s1640_s17 = smov 48  ;;  %s1660_s23 = smov 12 }
  0x7b   :  { %v1588_v19 = vsel %vm365_vm0, %v5177_v17, %v5176_v16  ;;  %1525 = vrot.lane.b32.xlu0 %v1524_v18, %s5707_s11  ;;  %v5172_v24 = vld [vmem:[%s9464_s0 + $0x5] ss:$16 sm:%s1558_s26]   ;;  %s1740_s11 = smov 48  ;;  %s1890_s26 = smov 48 }
  0x7c   :  { %v1593_v23 = vsel %vm370_vm1, %v5178_v20, %v1588_v19  ;;  %v5173_v26 = vld [vmem:[%s9464_s0 + $0x5] ss:$16 sm:%s1561_s30]   ;;  %v5174_v27 = vld [vmem:[%s9464_s0 - $0x33] ss:$16 sm:%s1566_s2]   ;;  %v6519_v28 = vpop.permute.xlu1 %451   ;;  %s1732_s2 = smov 3  ;;  %s1845_s30 = smov 192 }
  0x7d   :  { %v1598_v25 = vsel %vm375_vm2, %v5179_v21, %v1593_v23  ;;  %v1564_v29 = vsel %vm365_vm0, %v5173_v26, %v5172_v24  ;;  %v5175_v30 = vld [vmem:[%s9464_s0 - $0x33] ss:$16 sm:%s1571_s8]   ;;  %v5184_v32 = vld [vmem:[%s9464_s0 + $0x185] ss:$16 sm:%s1632_s10]   ;;  %s1685_s8 = smov 12  ;;  %s1815_s10 = smov 48 }
  0x7e   :  { %1599 = vrot.lane.b32.xlu1 %v1598_v25, %s5708_s19  ;;  %v1569_v31 = vsel %vm370_vm1, %v5174_v27, %v1564_v29  ;;  %v5185_v33 = vld [vmem:[%s9464_s0 + $0x185] ss:$16 sm:%s1635_s12]   ;;  %s1870_s12 = smov 192 }
  0x7f   :  { %v1574_v34 = vsel %vm375_vm2, %v5175_v30, %v1569_v31  ;;  %v1638_v35 = vsel %vm365_vm0, %v5185_v33, %v5184_v32  ;;  %v5186_v36 = vld [vmem:[%s9464_s0 + $0x14d] ss:$16 sm:%s1640_s17]   ;;  %v6541_v38 = vpop.permute.xlu0 %401   ;;  %v5180_v40 = vld [vmem:[%s9464_s0 + $0x105] ss:$16 sm:%s1607_s22]   ;;  %s1657_s17 = smov 3  ;;  %s1940_s22 = smov 48 }
  0x80   :  { %v5187_v37 = vld [vmem:[%s9464_s0 + $0x14d] ss:$16 sm:%s1645_s18]   ;;  %1575 = vrot.lane.b32.xlu0 %v1574_v34, %s5708_s19  ;;  %v1643_v39 = vsel %vm370_vm1, %v5186_v36, %v1638_v35  ;;  %s1710_s18 = smov 12 }
  0x81   :  { %v1648_v41 = vsel %vm375_vm2, %v5187_v37, %v1643_v39  ;;  %v5181_v42 = vld [vmem:[%s9464_s0 + $0x105] ss:$16 sm:%s1610_s27]   ;;  %v5182_v43 = vld [vmem:[%s9464_s0 + $0xcd] ss:$16 sm:%s1615_s28]   ;;  %s1782_s28 = smov 3  ;;  %s1895_s27 = smov 192 }
  0x82   :  { %v6555_v44 = vpop.permute.xlu1 %501   ;;  %1649 = vrot.lane.b32.xlu1 %v1648_v41, %s5708_s19  ;;  %v1613_v45 = vsel %vm365_vm0, %v5181_v42, %v5180_v40  ;;  %v5183_v46 = vld [vmem:[%s9464_s0 + $0xcd] ss:$16 sm:%s1620_s3]   ;;  %s1735_s3 = smov 12 }
  0x83   :  { %v1618_v47 = vsel %vm370_vm1, %v5182_v43, %v1613_v45  ;;  %v5192_v48 = vld [vmem:[%s9464_s0 + $0x285] ss:$16 sm:%s1682_s7]   ;;  %v5194_v52 = vld [vmem:[%s9464_s0 + $0x24d] ss:$16 sm:%s1690_s13]   ;;  %s1707_s13 = smov 3  ;;  %s1865_s7 = smov 48 }
  0x84   :  { %v5193_v49 = vld [vmem:[%s9464_s0 + $0x285] ss:$16 sm:%s1685_s8]   ;;  %v1623_v50 = vsel %vm375_vm2, %v5183_v46, %v1618_v47  ;;  %v5195_v53 = vld [vmem:[%s9464_s0 + $0x24d] ss:$16 sm:%s1695_s14]   ;;  %v6577_v54 = vpop.permute.xlu0 %476   ;;  %s1760_s14 = smov 12  ;;  %s1920_s8 = smov 192 }
  0x85   :  { %v1688_v51 = vsel %vm365_vm0, %v5193_v49, %v5192_v48  ;;  %1624 = vrot.lane.b32.xlu0 %v1623_v50, %s5708_s19  ;;  %v5188_v56 = vld [vmem:[%s9464_s0 + $0x205] ss:$16 sm:%s1657_s17]   ;;  %s1990_s17 = smov 48 }
  0x86   :  { %v1693_v55 = vsel %vm370_vm1, %v5194_v52, %v1688_v51  ;;  %v5189_v58 = vld [vmem:[%s9464_s0 + $0x205] ss:$16 sm:%s1660_s23]   ;;  %v5190_v59 = vld [vmem:[%s9464_s0 + $0x1cd] ss:$16 sm:%s1665_s24]   ;;  %v6591_v60 = vpop.permute.xlu1 %551   ;;  %s1832_s24 = smov 3  ;;  %s1945_s23 = smov 192 }
  0x87   :  { %v1698_v57 = vsel %vm375_vm2, %v5195_v53, %v1693_v55  ;;  %v1663_v61 = vsel %vm365_vm0, %v5189_v58, %v5188_v56  ;;  %v5191_v62 = vld [vmem:[%s9464_s0 + $0x1cd] ss:$16 sm:%s1670_s29]   ;;  %v5200_v0 = vld [vmem:[%s9464_s0 + $0x385] ss:$16 sm:%s1732_s2]   ;;  %s1785_s29 = smov 12  ;;  %s1915_s2 = smov 48 }
  0x88   :  { %1699 = vrot.lane.b32.xlu1 %v1698_v57, %s5708_s19  ;;  %v1668_v63 = vsel %vm370_vm1, %v5190_v59, %v1663_v61  ;;  %v5201_v1 = vld [vmem:[%s9464_s0 + $0x385] ss:$16 sm:%s1735_s3]   ;;  %s1970_s3 = smov 192 }
  0x89   :  { %v1673_v2 = vsel %vm375_vm2, %v5191_v62, %v1668_v63  ;;  %v1738_v3 = vsel %vm365_vm0, %v5201_v1, %v5200_v0  ;;  %v5202_v4 = vld [vmem:[%s9464_s0 + $0x34d] ss:$16 sm:%s1740_s11]   ;;  %v6613_v6 = vpop.permute.xlu0 %526   ;;  %v5196_v8 = vld [vmem:[%s9464_s0 + $0x305] ss:$16 sm:%s1707_s13]   ;;  %s1757_s11 = smov 3  ;;  %s2057_s13 = smov 3 }
  0x8a   :  { %v5203_v5 = vld [vmem:[%s9464_s0 + $0x34d] ss:$16 sm:%s1745_s9]   ;;  %1674 = vrot.lane.b32.xlu0 %v1673_v2, %s5708_s19  ;;  %v1743_v7 = vsel %vm370_vm1, %v5202_v4, %v1738_v3  ;;  %s1810_s9 = smov 12 }
  0x8b   :  { %v1748_v9 = vsel %vm375_vm2, %v5203_v5, %v1743_v7  ;;  %v5197_v10 = vld [vmem:[%s9464_s0 + $0x305] ss:$16 sm:%s1710_s18]   ;;  %v5198_v11 = vld [vmem:[%s9464_s0 + $0x2cd] ss:$16 sm:%s1715_s20]   ;;  %s1882_s20 = smov 3  ;;  %s1995_s18 = smov 192 }
  0x8c   :  { %v6627_v12 = vpop.permute.xlu1 %601   ;;  %1749 = vrot.lane.b32.xlu1 %v1748_v9, %s5708_s19  ;;  %v1713_v13 = vsel %vm365_vm0, %v5197_v10, %v5196_v8  ;;  %v5199_v15 = vld [vmem:[%s9464_s0 + $0x2cd] ss:$16 sm:%s1720_s25]   ;;  %s1835_s25 = smov 12 }
  0x8d   :  { %v1718_v16 = vsel %vm370_vm1, %v5198_v11, %v1713_v13  ;;  %v5208_v17 = vld [vmem:[%s9464_s0 + $0x485] ss:$16 sm:%s1782_s28]   ;;  %v5210_v21 = vld [vmem:[%s9464_s0 + $0x44d] ss:$16 sm:%s1790_s4]   ;;  %s1807_s4 = smov 3  ;;  %s1965_s28 = smov 48 }
  0x8e   :  { %v5209_v18 = vld [vmem:[%s9464_s0 + $0x485] ss:$16 sm:%s1785_s29]   ;;  %v1723_v19 = vsel %vm375_vm2, %v5199_v15, %v1718_v16  ;;  %v5211_v23 = vld [vmem:[%s9464_s0 + $0x44d] ss:$16 sm:%s1795_s5]   ;;  %v6649_v24 = vpop.permute.xlu0 %576   ;;  %s1860_s5 = smov 12  ;;  %s7945_s29 = smov 3 }
  0x8f   :  { %v1788_v20 = vsel %vm365_vm0, %v5209_v18, %v5208_v17  ;;  %1724 = vrot.lane.b32.xlu0 %v1723_v19, %s5708_s19  ;;  %v5204_v26 = vld [vmem:[%s9464_s0 + $0x405] ss:$16 sm:%s1757_s11]   ;;  %s2040_s11 = smov 48 }
  0x90   :  { %v1793_v25 = vsel %vm370_vm1, %v5210_v21, %v1788_v20  ;;  %v5205_v29 = vld [vmem:[%s9464_s0 + $0x405] ss:$16 sm:%s1760_s14]   ;;  %v5206_v30 = vld [vmem:[%s9464_s0 + $0x3cd] ss:$16 sm:%s1765_s15]   ;;  %v6663_v31 = vpop.permute.xlu1 %651   ;;  %s1932_s15 = smov 3  ;;  %s2045_s14 = smov 192 }
  0x91   :  { %v1798_v27 = vsel %vm375_vm2, %v5211_v23, %v1793_v25  ;;  %v1763_v32 = vsel %vm365_vm0, %v5205_v29, %v5204_v26  ;;  %v5207_v33 = vld [vmem:[%s9464_s0 + $0x3cd] ss:$16 sm:%s1770_s21]   ;;  %v5216_v35 = vld [vmem:[%s9464_s0 + $0x585] ss:$16 sm:%s1832_s24]   ;;  %s1885_s21 = smov 12  ;;  %s2165_s24 = smov 48 }
  0x92   :  { %1799 = vrot.lane.b32.xlu1 %v1798_v27, %s5708_s19  ;;  %v1768_v34 = vsel %vm370_vm1, %v5206_v30, %v1763_v32  ;;  %v5217_v36 = vld [vmem:[%s9464_s0 + $0x585] ss:$16 sm:%s1835_s25]   ;;  %s2020_s25 = smov 192 }
  0x93   :  { %v1773_v37 = vsel %vm375_vm2, %v5207_v33, %v1768_v34  ;;  %v1838_v39 = vsel %vm365_vm0, %v5217_v36, %v5216_v35  ;;  %v5218_v40 = vld [vmem:[%s9464_s0 + $0x54d] ss:$16 sm:%s1840_s6]   ;;  %v6685_v42 = vpop.permute.xlu0 %626   ;;  %v5212_v45 = vld [vmem:[%s9464_s0 + $0x505] ss:$16 sm:%s1807_s4]   ;;  %s1857_s6 = smov 3  ;;  %s2032_s4 = smov 3 }
  0x94   :  { %v5219_v41 = vld [vmem:[%s9464_s0 + $0x54d] ss:$16 sm:%s1845_s30]   ;;  %1774 = vrot.lane.b32.xlu0 %v1773_v37, %s5708_s19  ;;  %v1843_v43 = vsel %vm370_vm1, %v5218_v40, %v1838_v39  ;;  %s1910_s30 = smov 12 }
  0x95   :  { %v1848_v46 = vsel %vm375_vm2, %v5219_v41, %v1843_v43  ;;  %v5213_v47 = vld [vmem:[%s9464_s0 + $0x505] ss:$16 sm:%s1810_s9]   ;;  %v5214_v48 = vld [vmem:[%s9464_s0 + $0x4cd] ss:$16 sm:%s1815_s10]   ;;  %s1982_s10 = smov 3  ;;  %s7657_s9 = smov 48 }
  0x96   :  { %v6699_v49 = vpop.permute.xlu1 %701   ;;  %1849 = vrot.lane.b32.xlu1 %v1848_v46, %s5708_s19  ;;  %v1813_v50 = vsel %vm365_vm0, %v5213_v47, %v5212_v45  ;;  %v5215_v51 = vld [vmem:[%s9464_s0 + $0x4cd] ss:$16 sm:%s1820_s16]   ;;  %s1935_s16 = smov 12 }
  0x97   :  { %v1818_v52 = vsel %vm370_vm1, %v5214_v48, %v1813_v50  ;;  %v5224_v53 = vld [vmem:[%s9464_s0 + $0xc5] ss:$16 sm:%s1882_s20]   ;;  %v5226_v58 = vld [vmem:[%s9464_s0 + $0x8d] ss:$16 sm:%s1890_s26]   ;;  %s1907_s26 = smov 3  ;;  %s2015_s20 = smov 48 }
  0x98   :  { %v5225_v55 = vld [vmem:[%s9464_s0 + $0xc5] ss:$16 sm:%s1885_s21]   ;;  %v1823_v56 = vsel %vm375_vm2, %v5215_v51, %v1818_v52  ;;  %v5227_v59 = vld [vmem:[%s9464_s0 + $0x8d] ss:$16 sm:%s1895_s27]   ;;  %v6721_v61 = vpop.permute.xlu0 %676   ;;  %s1960_s27 = smov 12  ;;  %s7850_s21 = smov 192 }
  0x99   :  { %v1888_v57 = vsel %vm365_vm0, %v5225_v55, %v5224_v53  ;;  %1824 = vrot.lane.b32.xlu0 %v1823_v56, %s5708_s19  ;;  %v5220_v63 = vld [vmem:[%s9464_s0 + $0x45] ss:$16 sm:%s1857_s6]   ;;  %s2181_s6 = smov 3 }
  0x9a   :  { %v1893_v62 = vsel %vm370_vm1, %v5226_v58, %v1888_v57  ;;  %v5221_v1 = vld [vmem:[%s9464_s0 + $0x45] ss:$16 sm:%s1860_s5]   ;;  %v5222_v2 = vld [vmem:[%s9464_s0 + $0xd] ss:$16 sm:%s1865_s7]   ;;  %v6735_v3 = vpop.permute.xlu1 %751   ;;  %s2095_s5 = smov 192  ;;  %s7734_s7 = smov 3 }
  0x9b   :  { %v1898_v0 = vsel %vm375_vm2, %v5227_v59, %v1893_v62  ;;  %v1863_v4 = vsel %vm365_vm0, %v5221_v1, %v5220_v63  ;;  %v5223_v5 = vld [vmem:[%s9464_s0 + $0xd] ss:$16 sm:%s1870_s12]   ;;  %v5232_v8 = vld [vmem:[%s9464_s0 + $0x1c5] ss:$16 sm:%s1932_s15]   ;;  %s1985_s12 = smov 12  ;;  %s2007_s15 = smov 3 }
  0x9c   :  { %1899 = vrot.lane.b32.xlu1 %v1898_v0, %s5708_s19  ;;  %v1868_v7 = vsel %vm370_vm1, %v5222_v2, %v1863_v4  ;;  %v5233_v9 = vld [vmem:[%s9464_s0 + $0x1c5] ss:$16 sm:%s1935_s16]   ;;  %v4936_v62 = vld [vmem:[%s9464_s0 + $0x80] ss:$8 sm:$0xf]   ;;  %s6968_s16 = smov 12 }
  0x9d   :  { %v1873_v10 = vsel %vm375_vm2, %v5223_v5, %v1868_v7  ;;  %v1938_v11 = vsel %vm365_vm0, %v5233_v9, %v5232_v8  ;;  %v5234_v13 = vld [vmem:[%s9464_s0 + $0x18d] ss:$16 sm:%s1940_s22]   ;;  %v6757_v16 = vpop.permute.xlu0 %726   ;;  %v5228_v18 = vld [vmem:[%s9464_s0 + $0x145] ss:$16 sm:%s1907_s26]   ;;  %s1957_s22 = smov 3  ;;  %s2082_s26 = smov 3 }
  0x9e   :  { %v5235_v15 = vld [vmem:[%s9464_s0 + $0x18d] ss:$16 sm:%s1945_s23]   ;;  %1874 = vrot.lane.b32.xlu0 %v1873_v10, %s5708_s19  ;;  %v1943_v17 = vsel %vm370_vm1, %v5234_v13, %v1938_v11  ;;  %v4937_v7 = vld [vmem:[%s9464_s0 + $0x80] ss:$8 sm:$0xf0]   ;;  %s8007_s23 = smov 12 }
  0x9f   :  { %v1948_v19 = vsel %vm375_vm2, %v5235_v15, %v1943_v17  ;;  %v5229_v20 = vld [vmem:[%s9464_s0 + $0x145] ss:$16 sm:%s1910_s30]   ;;  %v5230_v21 = vld [vmem:[%s9464_s0 + $0x10d] ss:$16 sm:%s1915_s2]   ;;  %s2085_s30 = smov 12  ;;  %s2090_s2 = smov 48  ;;  %v34_v11 = vsel %vm4_vm3, %v4937_v7, %v4936_v62 }
  0xa0   :  { %v6771_v23 = vpop.permute.xlu1 %801   ;;  %1949 = vrot.lane.b32.xlu1 %v1948_v19, %s5708_s19  ;;  %v1913_v25 = vsel %vm365_vm0, %v5229_v20, %v5228_v18  ;;  %v5231_v26 = vld [vmem:[%s9464_s0 + $0x10d] ss:$16 sm:%s1920_s8]   ;;  %s2035_s8 = smov 12  ;;  %37 = vst.msk [vmem:[#allocation0 + $0x20] ss:$8 sm:$0x3] %vm6_vm5, %v34_v11  }
  0xa1   :  { %v1918_v27 = vsel %vm370_vm1, %v5230_v21, %v1913_v25  ;;  %v5240_v29 = vld [vmem:[%s9464_s0 + $0x2c5] ss:$16 sm:%s1982_s10]   ;;  %v5242_v34 = vld [vmem:[%s9464_s0 + $0x28d] ss:$16 sm:%s1990_s17]   ;;  %s2065_s17 = smov 48  ;;  %s2244_s10 = smov 192 }
  0xa2   :  { %v5241_v30 = vld [vmem:[%s9464_s0 + $0x2c5] ss:$16 sm:%s1985_s12]   ;;  %v1923_v32 = vsel %vm375_vm2, %v5231_v26, %v1918_v27  ;;  %v5243_v35 = vld [vmem:[%s9464_s0 + $0x28d] ss:$16 sm:%s1995_s18]   ;;  %v6793_v36 = vpop.permute.xlu0 %776   ;;  %s2010_s18 = smov 12  ;;  %s2194_s12 = smov 192 }
  0xa3   :  { %v1988_v33 = vsel %vm365_vm0, %v5241_v30, %v5240_v29  ;;  %1924 = vrot.lane.b32.xlu0 %v1923_v32, %s5708_s19  ;;  %v5236_v39 = vld [vmem:[%s9464_s0 + $0x245] ss:$16 sm:%s1957_s22]   ;;  %39 = vst.msk [vmem:[#allocation0 + $0x11] ss:$8 sm:$0xc] %vm6_vm5, %v34_v11   ;;  %s7765_s22 = smov 3 }
  0xa4   :  { %v1993_v37 = vsel %vm370_vm1, %v5242_v34, %v1988_v33  ;;  %v5237_v41 = vld [vmem:[%s9464_s0 + $0x245] ss:$16 sm:%s1960_s27]   ;;  %v5238_v43 = vld [vmem:[%s9464_s0 + $0x20d] ss:$16 sm:%s1965_s28]   ;;  %v6807_v45 = vpop.permute.xlu1 %851   ;;  %s7694_s27 = smov 12  ;;  %s7696_s28 = smov 48 }
  0xa5   :  { %v1998_v40 = vsel %vm375_vm2, %v5243_v35, %v1993_v37  ;;  %v1963_v46 = vsel %vm365_vm0, %v5237_v41, %v5236_v39  ;;  %v5239_v47 = vld [vmem:[%s9464_s0 + $0x20d] ss:$16 sm:%s1970_s3]   ;;  %v5248_v50 = vld [vmem:[%s9464_s0 + $0x3c5] ss:$16 sm:%s2032_s4]   ;;  %s2189_s4 = smov 48  ;;  %s2239_s3 = smov 48 }
  0xa6   :  { %1999 = vrot.lane.b32.xlu1 %v1998_v40, %s5708_s19  ;;  %v1968_v48 = vsel %vm370_vm1, %v5238_v43, %v1963_v46  ;;  %v5249_v51 = vld [vmem:[%s9464_s0 + $0x3c5] ss:$16 sm:%s2035_s8]   ;;  %41 = vst.msk [vmem:[#allocation0 + $0x2] ss:$8 sm:$0x30] %vm6_vm5, %v34_v11   ;;  %s7736_s8 = smov 12 }
  0xa7   :  { %v1973_v52 = vsel %vm375_vm2, %v5239_v47, %v1968_v48  ;;  %v2038_v53 = vsel %vm365_vm0, %v5249_v51, %v5248_v50  ;;  %v5250_v55 = vld [vmem:[%s9464_s0 + $0x38d] ss:$16 sm:%s2040_s11]   ;;  %v6829_v57 = vpop.permute.xlu0 %826   ;;  %v5244_v59 = vld [vmem:[%s9464_s0 + $0x345] ss:$16 sm:%s2007_s15]   ;;  %s7753_s15 = smov 192  ;;  %s2913_s11 = smov 48 }
  0xa8   :  { %v5251_v56 = vld [vmem:[%s9464_s0 + $0x38d] ss:$16 sm:%s2045_s14]   ;;  %1974 = vrot.lane.b32.xlu0 %v1973_v52, %s5708_s19  ;;  %v2043_v58 = vsel %vm370_vm1, %v5250_v55, %v2038_v53  ;;  %s6846_s14 = smov 12  ;;  %43 = vst.msk [vmem:[#allocation0 - $0xd] ss:$8 sm:$0xc0] %vm6_vm5, %v34_v11  }
  0xa9   :  { %v2048_v63 = vsel %vm375_vm2, %v5251_v56, %v2043_v58  ;;  %v5245_v0 = vld [vmem:[%s9464_s0 + $0x345] ss:$16 sm:%s2010_s18]   ;;  %v5246_v1 = vld [vmem:[%s9464_s0 + $0x30d] ss:$16 sm:%s2015_s20]   ;;  %405 = vst.msk [vmem:[#allocation0 + $0x20] sm:$0xf] %vm379_vm4, %v6541_v38  }
  0xaa   :  { %v6848_v2 = vpop.permute.xlu1 %901   ;;  %2049 = vrot.lane.b32.xlu1 %v2048_v63, %s5708_s19  ;;  %v2013_v4 = vsel %vm365_vm0, %v5245_v0, %v5244_v59  ;;  %v5247_v5 = vld [vmem:[%s9464_s0 + $0x30d] ss:$16 sm:%s2020_s25]   ;;  %s6865_s25 = smov 192  ;;  %407 = vst.msk [vmem:[#allocation0 + $0x24] sm:$0xf0] %vm379_vm4, %v6541_v38   ;;  %s2709_s18 = smov 12 }
  0xab   :  { %v2018_v8 = vsel %vm370_vm1, %v5246_v1, %v2013_v4  ;;  %v5256_v9 = vld [vmem:[%s9464_s0 + $0x4c5] ss:$16 sm:%s2082_s26]   ;;  %s6867_s26 = smov 3  ;;  %v5258_v17 = vld [vmem:[%s9464_s0 + $0x48d] ss:$16 sm:%s2090_s2]   ;;  %s6878_s2 = smov 48 }
  0xac   :  { %v5257_v10 = vld [vmem:[%s9464_s0 + $0x4c5] ss:$16 sm:%s2085_s30]   ;;  %v2023_v13 = vsel %vm375_vm2, %v5247_v5, %v2018_v8  ;;  %v5259_v18 = vld [vmem:[%s9464_s0 + $0x48d] ss:$16 sm:%s2095_s5]   ;;  %s2135_s30 = smov 12  ;;  %v6880_v19 = vpop.permute.xlu0 %876   ;;  %s2145_s5 = smov 192 }
  0xad   :  { %v2088_v15 = vsel %vm365_vm0, %v5257_v10, %v5256_v9  ;;  %2024 = vrot.lane.b32.xlu0 %v2023_v13, %s5708_s19  ;;  %v5252_v21 = vld [vmem:[%s9464_s0 + $0x445] ss:$16 sm:%s2057_s13]   ;;  %v2_v38 = vld [vmem:[%s9464_s0] ss:$8 sm:$0xf]   ;;  %s2107_s13 = smov 3 }
  0xae   :  { %v2093_v20 = vsel %vm370_vm1, %v5258_v17, %v2088_v15  ;;  %v5253_v26 = vld [vmem:[%s9464_s0 + $0x445] ss:$16 sm:%s6846_s14]   ;;  %v5254_v27 = vld [vmem:[%s9464_s0 + $0x40d] ss:$16 sm:%s2065_s17]   ;;  %s6906_s14 = smov 12  ;;  %v6908_v29 = vpop.permute.xlu1 %951   ;;  %s2115_s17 = smov 48 }
  0xaf   :  { %v2098_v25 = vsel %vm375_vm2, %v5259_v18, %v2093_v20  ;;  %v2063_v30 = vsel %vm365_vm0, %v5253_v26, %v5252_v21  ;;  %v5255_v32 = vld [vmem:[%s9464_s0 + $0x40d] ss:$16 sm:%s6865_s25]   ;;  %v3_v33 = vld [vmem:[%s9464_s0] ss:$8 sm:$0xf0]   ;;  %s2120_s25 = smov 192 }
  0xb0   :  { %2099 = vrot.lane.b32.xlu1 %v2098_v25, %s5708_s19  ;;  %v2068_v34 = vsel %vm370_vm1, %v5254_v27, %v2063_v30  ;;  %v5264_v35 = vld [vmem:[%s9464_s0 + $0x5c5] ss:$16 sm:%s6867_s26]   ;;  %v5_v39 = vsel %vm4_vm3, %v3_v33, %v2_v38  ;;  %v4945_v59 = vld [vmem:[%s9464_s0 + $0x180] ss:$8 sm:$0xf0]   ;;  %s7848_s20 = smov 48 }
  0xb1   :  { %v5265_v37 = vld [vmem:[%s9464_s0 + $0x5c5] ss:$16 sm:%s2135_s30]   ;;  %v2073_v40 = vsel %vm375_vm2, %v5255_v32, %v2068_v34  ;;  %v5266_v43 = vld [vmem:[%s9464_s0 + $0x58d] ss:$16 sm:%s6878_s2]   ;;  %s2184_s30 = smov 12  ;;  %v6937_v47 = vpop.permute.xlu0 %926   ;;  %s7860_s26 = smov 3 }
  0xb2   :  { %v2138_v41 = vsel %vm365_vm0, %v5265_v37, %v5264_v35  ;;  %v5267_v46 = vld [vmem:[%s9464_s0 + $0x58d] ss:$16 sm:%s2145_s5]   ;;  %7 = vst.msk [vmem:[#allocation0] ss:$8 sm:$0x3] %vm6_vm5, %v5_v39   ;;  %2074 = vrot.lane.b32.xlu0 %v2073_v40, %s5708_s19  ;;  %s2739_s5 = smov 48 }
  0xb3   :  { %9 = vst.msk [vmem:[#allocation0 - $0xf] ss:$8 sm:$0xc] %vm6_vm5, %v5_v39   ;;  %11 = vst.msk [vmem:[#allocation0 - $0x1e] ss:$8 sm:$0x30] %vm6_vm5, %v5_v39   ;;  %v2143_v48 = vsel %vm370_vm1, %v5266_v43, %v2138_v41 }
  0xb4   :  { %13 = vst.msk [vmem:[#allocation0 - $0x2d] ss:$8 sm:$0xc0] %vm6_vm5, %v5_v39   ;;  %v5260_v50 = vld [vmem:[%s9464_s0 + $0x545] ss:$16 sm:%s2107_s13]   ;;  %v2148_v51 = vsel %vm375_vm2, %v5267_v46, %v2143_v48  ;;  %s2157_s13 = smov 3  ;;  %v1001_v55 = vpop.permute.xlu1 %1000  }
  0xb5   :  { %380 = vst.msk [vmem:[#allocation0] sm:$0xf] %vm379_vm4, %v6505_v22   ;;  %382 = vst.msk [vmem:[#allocation0 + $0x4] sm:$0xf0] %vm379_vm4, %v6505_v22   ;;  %v5261_v52 = vld [vmem:[%s9464_s0 + $0x545] ss:$16 sm:%s6906_s14]   ;;  %2149 = vrot.lane.b32.xlu1 %v2148_v51, %s5708_s19 }
  0xb6   :  { %v4944_v22 = vld [vmem:[%s9464_s0 + $0x180] ss:$8 sm:$0xf]   ;;  %v5262_v53 = vld [vmem:[%s9464_s0 + $0x50d] ss:$16 sm:%s2115_s17]   ;;  %v2113_v56 = vsel %vm365_vm0, %v5261_v52, %v5260_v50  ;;  %v977_v9 = vpop.permute.xlu0 %976   ;;  %s7669_s17 = smov 3 }
  0xb7   :  { %v5263_v58 = vld [vmem:[%s9464_s0 + $0x50d] ss:$16 sm:%s2120_s25]   ;;  %1004 = vst.msk [vmem:[#allocation0 + $0x20] sm:$0xf] %vm978_vm6, %v1001_v55   ;;  %1006 = vst.msk [vmem:[#allocation0 + $0x24] sm:$0xf0] %vm978_vm6, %v1001_v55   ;;  %v2118_v62 = vsel %vm370_vm1, %v5262_v53, %v2113_v56  ;;  %v94_v1 = vsel %vm4_vm3, %v4945_v59, %v4944_v22 }
  0xb8   :  { %v5272_v63 = vld [vmem:[%s9464_s0 + $0x84] ss:$16 sm:%s2181_s6]   ;;  %s6982_s25 = smov 192  ;;  %v2123_v4 = vsel %vm375_vm2, %v5263_v58, %v2118_v62  ;;  %v5274_v7 = vld [vmem:[%s9464_s0 + $0x4c] ss:$16 sm:%s2189_s4]   ;;  %s6993_s6 = smov 3  ;;  %v1051_v18 = vpop.permute.xlu1 %1050  }
  0xb9   :  { %v5273_v0 = vld [vmem:[%s9464_s0 + $0x84] ss:$16 sm:%s2184_s30]   ;;  %v5275_v8 = vld [vmem:[%s9464_s0 + $0x4c] ss:$16 sm:%s2194_s12]   ;;  %s6995_s30 = smov 12  ;;  %s7023_s12 = smov 3 }
  0xba   :  { %v2187_v5 = vsel %vm365_vm0, %v5273_v0, %v5272_v63  ;;  %97 = vst.msk [vmem:[#allocation0 + $0x60] ss:$8 sm:$0x3] %vm6_vm5, %v94_v1   ;;  %99 = vst.msk [vmem:[#allocation0 + $0x51] ss:$8 sm:$0xc] %vm6_vm5, %v94_v1   ;;  %2124 = vrot.lane.b32.xlu0 %v2123_v4, %s5708_s19 }
  0xbb   :  { %101 = vst.msk [vmem:[#allocation0 + $0x42] ss:$8 sm:$0x30] %vm6_vm5, %v94_v1   ;;  %103 = vst.msk [vmem:[#allocation0 + $0x33] ss:$8 sm:$0xc0] %vm6_vm5, %v94_v1   ;;  %v2192_v10 = vsel %vm370_vm1, %v5274_v7, %v2187_v5  ;;  %v1026_v37 = vpop.permute.xlu0 %1025  }
  0xbc   :  { %v5268_v11 = vld [vmem:[%s9464_s0 + $0x4] ss:$16 sm:%s2157_s13]   ;;  %979 = vst.msk [vmem:[#allocation0] sm:$0xf] %vm978_vm6, %v977_v9   ;;  %981 = vst.msk [vmem:[#allocation0 + $0x4] sm:$0xf0] %vm978_vm6, %v977_v9   ;;  %v2197_v13 = vsel %vm375_vm2, %v5275_v8, %v2192_v10 }
  0xbd   :  { %455 = vst.msk [vmem:[#allocation0 + $0x60] sm:$0xf] %vm379_vm4, %v6519_v28   ;;  %457 = vst.msk [vmem:[#allocation0 + $0x64] sm:$0xf0] %vm379_vm4, %v6519_v28   ;;  %v5269_v15 = vld [vmem:[%s9464_s0 + $0x4] ss:$16 sm:%s6968_s16]  }
  0xbe   :  { %v4940_v28 = vld [vmem:[%s9464_s0 + $0x100] ss:$8 sm:$0xf]   ;;  %v5270_v17 = vld [vmem:[%s9464_s0 - $0x34] ss:$16 sm:%s2165_s24]   ;;  %s5709_s13 = smov 64   ;;  %v2163_v20 = vsel %vm365_vm0, %v5269_v15, %v5268_v11  ;;  %v1101_v48 = vpop.permute.xlu1 %1100  }
  0xbf   :  { %2198 = vrot.lane.b32.xlu1 %v2197_v13, %s5709_s13  ;;  %v5271_v21 = vld [vmem:[%s9464_s0 - $0x34] ss:$16 sm:%s6982_s25]   ;;  %s7031_s16 = smov 12  ;;  %1054 = vst.msk [vmem:[#allocation0 + $0x60] sm:$0xf] %vm978_vm6, %v1051_v18   ;;  %v2168_v25 = vsel %vm370_vm1, %v5270_v17, %v2163_v20  ;;  %s2214_s24 = smov 48 }
  0xc0   :  { %1056 = vst.msk [vmem:[#allocation0 + $0x64] sm:$0xf0] %vm978_vm6, %v1051_v18   ;;  %v4941_v38 = vld [vmem:[%s9464_s0 + $0x100] ss:$8 sm:$0xf0]   ;;  %s7047_s25 = smov 192  ;;  %v2173_v32 = vsel %vm375_vm2, %v5271_v21, %v2168_v25  ;;  %v1076_v0 = vpop.permute.xlu0 %1075  }
  0xc1   :  { %v5280_v26 = vld [vmem:[%s9464_s0 + $0x184] ss:$16 sm:%s6993_s6]   ;;  %v64_v30 = vsel %vm4_vm3, %v4941_v38, %v4940_v28  ;;  %v5282_v34 = vld [vmem:[%s9464_s0 + $0x14c] ss:$16 sm:%s2239_s3]   ;;  %s2281_s6 = smov 3  ;;  %s2289_s3 = smov 48 }
  0xc2   :  { %v5281_v27 = vld [vmem:[%s9464_s0 + $0x184] ss:$16 sm:%s6995_s30]   ;;  %v5283_v35 = vld [vmem:[%s9464_s0 + $0x14c] ss:$16 sm:%s2244_s10]   ;;  %s2284_s30 = smov 12  ;;  %s2294_s10 = smov 192  ;;  %v7137_v9 = vpop.permute.xlu1 %1150  }
  0xc3   :  { %v2237_v33 = vsel %vm365_vm0, %v5281_v27, %v5280_v26  ;;  %67 = vst.msk [vmem:[#allocation0 + $0x40] ss:$8 sm:$0x3] %vm6_vm5, %v64_v30   ;;  %69 = vst.msk [vmem:[#allocation0 + $0x31] ss:$8 sm:$0xc] %vm6_vm5, %v64_v30   ;;  %2174 = vrot.lane.b32.xlu0 %v2173_v32, %s5709_s13 }
  0xc4   :  { %71 = vst.msk [vmem:[#allocation0 + $0x22] ss:$8 sm:$0x30] %vm6_vm5, %v64_v30   ;;  %73 = vst.msk [vmem:[#allocation0 + $0x13] ss:$8 sm:$0xc0] %vm6_vm5, %v64_v30   ;;  %v2242_v39 = vsel %vm370_vm1, %v5282_v34, %v2237_v33 }
  0xc5   :  { %v5276_v40 = vld [vmem:[%s9464_s0 + $0x104] ss:$16 sm:%s7023_s12]   ;;  %430 = vst.msk [vmem:[#allocation0 + $0x40] sm:$0xf] %vm379_vm4, %v6488_v14   ;;  %432 = vst.msk [vmem:[#allocation0 + $0x44] sm:$0xf0] %vm379_vm4, %v6488_v14   ;;  %v2247_v41 = vsel %vm375_vm2, %v5283_v35, %v2242_v39  ;;  %v7170_v26 = vpop.permute.xlu0 %1125  }
  0xc6   :  { %v4952_v14 = vld [vmem:[%s9464_s0 + $0x280] ss:$8 sm:$0xf]   ;;  %v5277_v43 = vld [vmem:[%s9464_s0 + $0x104] ss:$16 sm:%s7031_s16]   ;;  %s2256_s12 = smov 3  ;;  %2248 = vrot.lane.b32.xlu1 %v2247_v41, %s5709_s13 }
  0xc7   :  { %v5278_v46 = vld [vmem:[%s9464_s0 + $0xcc] ss:$16 sm:%s2214_s24]   ;;  %1029 = vst.msk [vmem:[#allocation0 + $0x40] sm:$0xf] %vm978_vm6, %v1026_v37   ;;  %1031 = vst.msk [vmem:[#allocation0 + $0x44] sm:$0xf0] %vm978_vm6, %v1026_v37   ;;  %v2212_v50 = vsel %vm365_vm0, %v5277_v43, %v5276_v40 }
  0xc8   :  { %v5279_v22 = vld [vmem:[%s9464_s0 + $0xcc] ss:$16 sm:%s7047_s25]   ;;  %s2259_s16 = smov 12  ;;  %v4953_v51 = vld [vmem:[%s9464_s0 + $0x280] ss:$8 sm:$0xf0]   ;;  %v2217_v52 = vsel %vm370_vm1, %v5278_v46, %v2212_v50  ;;  %v7193_v35 = vpop.permute.xlu1 %1200  }
  0xc9   :  { %v5288_v53 = vld [vmem:[%s9464_s0 + $0x284] ss:$16 sm:%s2281_s6]   ;;  %s2264_s24 = smov 48  ;;  %s7101_s25 = smov 192  ;;  %v154_v56 = vsel %vm4_vm3, %v4953_v51, %v4952_v14  ;;  %v2222_v58 = vsel %vm375_vm2, %v5279_v22, %v2217_v52  ;;  %v5290_v62 = vld [vmem:[%s9464_s0 + $0x24c] ss:$16 sm:%s2289_s3]  }
  0xca   :  { %v5289_v55 = vld [vmem:[%s9464_s0 + $0x284] ss:$16 sm:%s2284_s30]   ;;  %v5291_v63 = vld [vmem:[%s9464_s0 + $0x24c] ss:$16 sm:%s2294_s10]   ;;  %s2331_s6 = smov 3  ;;  %s2334_s30 = smov 12  ;;  %v7226_v52 = vpop.permute.xlu0 %1175  }
  0xcb   :  { %v2287_v59 = vsel %vm365_vm0, %v5289_v55, %v5288_v53  ;;  %157 = vst.msk [vmem:[#allocation0 + $0xa0] ss:$8 sm:$0x3] %vm6_vm5, %v154_v56   ;;  %159 = vst.msk [vmem:[#allocation0 + $0x91] ss:$8 sm:$0xc] %vm6_vm5, %v154_v56   ;;  %2223 = vrot.lane.b32.xlu0 %v2222_v58, %s5709_s13 }
  0xcc   :  { %161 = vst.msk [vmem:[#allocation0 + $0x82] ss:$8 sm:$0x30] %vm6_vm5, %v154_v56   ;;  %163 = vst.msk [vmem:[#allocation0 + $0x73] ss:$8 sm:$0xc0] %vm6_vm5, %v154_v56   ;;  %v2292_v1 = vsel %vm370_vm1, %v5290_v62, %v2287_v59  ;;  %v7251_v62 = vpop.permute.xlu1 %1250  }
  0xcd   :  { %v5284_v4 = vld [vmem:[%s9464_s0 + $0x204] ss:$16 sm:%s2256_s12]   ;;  %s2339_s3 = smov 48  ;;  %505 = vst.msk [vmem:[#allocation0 + $0xa0] sm:$0xf] %vm379_vm4, %v6555_v44   ;;  %v2297_v5 = vsel %vm375_vm2, %v5291_v63, %v2292_v1  ;;  %s2344_s10 = smov 192 }
  0xce   :  { %507 = vst.msk [vmem:[#allocation0 + $0xa4] sm:$0xf0] %vm379_vm4, %v6555_v44   ;;  %v4948_v44 = vld [vmem:[%s9464_s0 + $0x200] ss:$8 sm:$0xf]   ;;  %s2306_s12 = smov 3  ;;  %2298 = vrot.lane.b32.xlu1 %v2297_v5, %s5709_s13 }
  0xcf   :  { %v5285_v7 = vld [vmem:[%s9464_s0 + $0x204] ss:$16 sm:%s2259_s16]   ;;  %v5286_v8 = vld [vmem:[%s9464_s0 + $0x1cc] ss:$16 sm:%s2264_s24]   ;;  %1104 = vst.msk [vmem:[#allocation0 + $0xa0] sm:$0xf] %vm978_vm6, %v1101_v48  }
  0xd0   :  { %1106 = vst.msk [vmem:[#allocation0 + $0xa4] sm:$0xf0] %vm978_vm6, %v1101_v48   ;;  %v2262_v10 = vsel %vm365_vm0, %v5285_v7, %v5284_v4  ;;  %v5287_v11 = vld [vmem:[%s9464_s0 + $0x1cc] ss:$16 sm:%s7101_s25]   ;;  %s2309_s16 = smov 12  ;;  %s2314_s24 = smov 48 }
  0xd1   :  { %v4949_v28 = vld [vmem:[%s9464_s0 + $0x200] ss:$8 sm:$0xf0]   ;;  %v2267_v13 = vsel %vm370_vm1, %v5286_v8, %v2262_v10  ;;  %v5296_v15 = vld [vmem:[%s9464_s0 + $0x384] ss:$16 sm:%s2331_s6]   ;;  %s7155_s25 = smov 192 }
  0xd2   :  { %v5297_v17 = vld [vmem:[%s9464_s0 + $0x384] ss:$16 sm:%s2334_s30]   ;;  %v124_v18 = vsel %vm4_vm3, %v4949_v28, %v4948_v44  ;;  %v2272_v20 = vsel %vm375_vm2, %v5287_v11, %v2267_v13  ;;  %v5298_v38 = vld [vmem:[%s9464_s0 + $0x34c] ss:$16 sm:%s2339_s3]   ;;  %s2381_s6 = smov 3  ;;  %s2384_s30 = smov 12  ;;  %v7284_v28 = vpop.permute.xlu0 %1225  }
  0xd3   :  { %v2337_v21 = vsel %vm365_vm0, %v5297_v17, %v5296_v15  ;;  %v5299_v25 = vld [vmem:[%s9464_s0 + $0x34c] ss:$16 sm:%s2344_s10]   ;;  %127 = vst.msk [vmem:[#allocation0 + $0x80] ss:$8 sm:$0x3] %vm6_vm5, %v124_v18   ;;  %2273 = vrot.lane.b32.xlu0 %v2272_v20, %s5709_s13  ;;  %s2389_s3 = smov 48 }
  0xd4   :  { %129 = vst.msk [vmem:[#allocation0 + $0x71] ss:$8 sm:$0xc] %vm6_vm5, %v124_v18   ;;  %131 = vst.msk [vmem:[#allocation0 + $0x62] ss:$8 sm:$0x30] %vm6_vm5, %v124_v18   ;;  %v2342_v27 = vsel %vm370_vm1, %v5298_v38, %v2337_v21  ;;  %v7309_v21 = vpop.permute.xlu1 %1300  }
  0xd5   :  { %133 = vst.msk [vmem:[#allocation0 + $0x53] ss:$8 sm:$0xc0] %vm6_vm5, %v124_v18   ;;  %v5292_v30 = vld [vmem:[%s9464_s0 + $0x304] ss:$16 sm:%s2306_s12]   ;;  %v2347_v32 = vsel %vm375_vm2, %v5299_v25, %v2342_v27  ;;  %s2394_s10 = smov 192 }
  0xd6   :  { %480 = vst.msk [vmem:[#allocation0 + $0x80] sm:$0xf] %vm379_vm4, %v6577_v54   ;;  %482 = vst.msk [vmem:[#allocation0 + $0x84] sm:$0xf0] %vm379_vm4, %v6577_v54   ;;  %v5293_v33 = vld [vmem:[%s9464_s0 + $0x304] ss:$16 sm:%s2309_s16]   ;;  %2348 = vrot.lane.b32.xlu1 %v2347_v32, %s5709_s13 }
  0xd7   :  { %v4960_v54 = vld [vmem:[%s9464_s0 + $0x380] ss:$8 sm:$0xf]   ;;  %v5294_v34 = vld [vmem:[%s9464_s0 + $0x2cc] ss:$16 sm:%s2314_s24]   ;;  %s2356_s12 = smov 3  ;;  %v2312_v37 = vsel %vm365_vm0, %v5293_v33, %v5292_v30 }
  0xd8   :  { %1079 = vst.msk [vmem:[#allocation0 + $0x80] sm:$0xf] %vm978_vm6, %v1076_v0   ;;  %1081 = vst.msk [vmem:[#allocation0 + $0x84] sm:$0xf0] %vm978_vm6, %v1076_v0   ;;  %v5295_v39 = vld [vmem:[%s9464_s0 + $0x2cc] ss:$16 sm:%s7155_s25]   ;;  %v2317_v14 = vsel %vm370_vm1, %v5294_v34, %v2312_v37 }
  0xd9   :  { %s2359_s16 = smov 12  ;;  %v4961_v40 = vld [vmem:[%s9464_s0 + $0x380] ss:$8 sm:$0xf0]   ;;  %v5304_v41 = vld [vmem:[%s9464_s0 + $0x484] ss:$16 sm:%s2381_s6]   ;;  %v2322_v48 = vsel %vm375_vm2, %v5295_v39, %v2317_v14 }
  0xda   :  { %v5305_v43 = vld [vmem:[%s9464_s0 + $0x484] ss:$16 sm:%s2384_s30]   ;;  %s2364_s24 = smov 48  ;;  %s7211_s25 = smov 192  ;;  %v214_v46 = vsel %vm4_vm3, %v4961_v40, %v4960_v54  ;;  %v5306_v22 = vld [vmem:[%s9464_s0 + $0x44c] ss:$16 sm:%s2389_s3]   ;;  %v7342_v40 = vpop.permute.xlu0 %1275  }
  0xdb   :  { %v2387_v50 = vsel %vm365_vm0, %v5305_v43, %v5304_v41  ;;  %v5307_v51 = vld [vmem:[%s9464_s0 + $0x44c] ss:$16 sm:%s2394_s10]   ;;  %s2431_s6 = smov 3  ;;  %s2434_s30 = smov 12  ;;  %2323 = vrot.lane.b32.xlu0 %v2322_v48, %s5709_s13 }
  0xdc   :  { %217 = vst.msk [vmem:[#allocation0 + $0xe0] ss:$8 sm:$0x3] %vm6_vm5, %v214_v46   ;;  %219 = vst.msk [vmem:[#allocation0 + $0xd1] ss:$8 sm:$0xc] %vm6_vm5, %v214_v46   ;;  %v2392_v53 = vsel %vm370_vm1, %v5306_v22, %v2387_v50 }
  0xdd   :  { %221 = vst.msk [vmem:[#allocation0 + $0xc2] ss:$8 sm:$0x30] %vm6_vm5, %v214_v46   ;;  %223 = vst.msk [vmem:[#allocation0 + $0xb3] ss:$8 sm:$0xc0] %vm6_vm5, %v214_v46   ;;  %v2397_v56 = vsel %vm375_vm2, %v5307_v51, %v2392_v53 }
  0xde   :  { %v5300_v55 = vld [vmem:[%s9464_s0 + $0x404] ss:$16 sm:%s2356_s12]   ;;  %s2439_s3 = smov 48  ;;  %555 = vst.msk [vmem:[#allocation0 + $0xe0] sm:$0xf] %vm379_vm4, %v6591_v60   ;;  %s2444_s10 = smov 192  ;;  %2398 = vrot.lane.b32.xlu1 %v2397_v56, %s5709_s13 }
  0xdf   :  { %557 = vst.msk [vmem:[#allocation0 + $0xe4] sm:$0xf0] %vm379_vm4, %v6591_v60   ;;  %v4956_v60 = vld [vmem:[%s9464_s0 + $0x300] ss:$8 sm:$0xf]   ;;  %s2406_s12 = smov 3 }
  0xe0   :  { %v5301_v58 = vld [vmem:[%s9464_s0 + $0x404] ss:$16 sm:%s2359_s16]   ;;  %v5302_v59 = vld [vmem:[%s9464_s0 + $0x3cc] ss:$16 sm:%s2364_s24]   ;;  %1154 = vst.msk [vmem:[#allocation0 + $0xe0] sm:$0xf] %vm978_vm6, %v7137_v9  }
  0xe1   :  { %1156 = vst.msk [vmem:[#allocation0 + $0xe4] sm:$0xf0] %vm978_vm6, %v7137_v9   ;;  %v2362_v63 = vsel %vm365_vm0, %v5301_v58, %v5300_v55  ;;  %v5303_v0 = vld [vmem:[%s9464_s0 + $0x3cc] ss:$16 sm:%s7211_s25]   ;;  %s2409_s16 = smov 12  ;;  %s2414_s24 = smov 48 }
  0xe2   :  { %v4957_v1 = vld [vmem:[%s9464_s0 + $0x300] ss:$8 sm:$0xf0]   ;;  %v2367_v4 = vsel %vm370_vm1, %v5302_v59, %v2362_v63  ;;  %v5312_v44 = vld [vmem:[%s9464_s0 + $0x584] ss:$16 sm:%s2431_s6]   ;;  %s7269_s25 = smov 192 }
  0xe3   :  { %v5313_v5 = vld [vmem:[%s9464_s0 + $0x584] ss:$16 sm:%s2434_s30]   ;;  %v184_v7 = vsel %vm4_vm3, %v4957_v1, %v4956_v60  ;;  %v2372_v8 = vsel %vm375_vm2, %v5303_v0, %v2367_v4  ;;  %v5314_v10 = vld [vmem:[%s9464_s0 + $0x54c] ss:$16 sm:%s2439_s3]   ;;  %s2481_s6 = smov 3  ;;  %s2484_s30 = smov 12  ;;  %v7400_v1 = vpop.permute.xlu0 %1325  }
  0xe4   :  { %v2437_v9 = vsel %vm365_vm0, %v5313_v5, %v5312_v44  ;;  %v5315_v11 = vld [vmem:[%s9464_s0 + $0x54c] ss:$16 sm:%s2444_s10]   ;;  %187 = vst.msk [vmem:[#allocation0 + $0xc0] ss:$8 sm:$0x3] %vm6_vm5, %v184_v7   ;;  %2373 = vrot.lane.b32.xlu0 %v2372_v8, %s5709_s13  ;;  %s2489_s3 = smov 48 }
  0xe5   :  { %189 = vst.msk [vmem:[#allocation0 + $0xb1] ss:$8 sm:$0xc] %vm6_vm5, %v184_v7   ;;  %191 = vst.msk [vmem:[#allocation0 + $0xa2] ss:$8 sm:$0x30] %vm6_vm5, %v184_v7   ;;  %v2442_v13 = vsel %vm370_vm1, %v5314_v10, %v2437_v9 }
  0xe6   :  { %193 = vst.msk [vmem:[#allocation0 + $0x93] ss:$8 sm:$0xc0] %vm6_vm5, %v184_v7   ;;  %v5308_v15 = vld [vmem:[%s9464_s0 + $0x504] ss:$16 sm:%s2406_s12]   ;;  %v2447_v17 = vsel %vm375_vm2, %v5315_v11, %v2442_v13  ;;  %s2494_s10 = smov 192 }
  0xe7   :  { %530 = vst.msk [vmem:[#allocation0 + $0xc0] sm:$0xf] %vm379_vm4, %v6613_v6   ;;  %532 = vst.msk [vmem:[#allocation0 + $0xc4] sm:$0xf0] %vm379_vm4, %v6613_v6   ;;  %v5309_v18 = vld [vmem:[%s9464_s0 + $0x504] ss:$16 sm:%s2409_s16]   ;;  %2448 = vrot.lane.b32.xlu1 %v2447_v17, %s5709_s13 }
  0xe8   :  { %v4968_v6 = vld [vmem:[%s9464_s0 + $0x480] ss:$8 sm:$0xf]   ;;  %v5310_v20 = vld [vmem:[%s9464_s0 + $0x4cc] ss:$16 sm:%s2414_s24]   ;;  %s2456_s12 = smov 3  ;;  %v2412_v38 = vsel %vm365_vm0, %v5309_v18, %v5308_v15 }
  0xe9   :  { %1129 = vst.msk [vmem:[#allocation0 + $0xc0] sm:$0xf] %vm978_vm6, %v7170_v26   ;;  %1131 = vst.msk [vmem:[#allocation0 + $0xc4] sm:$0xf0] %vm978_vm6, %v7170_v26   ;;  %v5311_v25 = vld [vmem:[%s9464_s0 + $0x4cc] ss:$16 sm:%s7269_s25]   ;;  %v2417_v27 = vsel %vm370_vm1, %v5310_v20, %v2412_v38 }
  0xea   :  { %s2459_s16 = smov 12  ;;  %v4969_v26 = vld [vmem:[%s9464_s0 + $0x480] ss:$8 sm:$0xf0]   ;;  %v5320_v30 = vld [vmem:[%s9464_s0 + $0xc4] ss:$16 sm:%s2481_s6]   ;;  %v2422_v33 = vsel %vm375_vm2, %v5311_v25, %v2417_v27 }
  0xeb   :  { %v5321_v54 = vld [vmem:[%s9464_s0 + $0xc4] ss:$16 sm:%s2484_s30]   ;;  %s2464_s24 = smov 48  ;;  %s7327_s25 = smov 192  ;;  %v274_v32 = vsel %vm4_vm3, %v4969_v26, %v4968_v6  ;;  %v5322_v37 = vld [vmem:[%s9464_s0 + $0x8c] ss:$16 sm:%s2489_s3]   ;;  %v7458_v26 = vpop.permute.xlu0 %1375  }
  0xec   :  { %v2487_v34 = vsel %vm365_vm0, %v5321_v54, %v5320_v30  ;;  %v5323_v39 = vld [vmem:[%s9464_s0 + $0x8c] ss:$16 sm:%s2494_s10]   ;;  %s2531_s6 = smov 3  ;;  %s2534_s30 = smov 12  ;;  %2423 = vrot.lane.b32.xlu0 %v2422_v33, %s5709_s13 }
  0xed   :  { %277 = vst.msk [vmem:[#allocation0 + $0x120] ss:$8 sm:$0x3] %vm6_vm5, %v274_v32   ;;  %279 = vst.msk [vmem:[#allocation0 + $0x111] ss:$8 sm:$0xc] %vm6_vm5, %v274_v32   ;;  %v2492_v14 = vsel %vm370_vm1, %v5322_v37, %v2487_v34 }
  0xee   :  { %281 = vst.msk [vmem:[#allocation0 + $0x102] ss:$8 sm:$0x30] %vm6_vm5, %v274_v32   ;;  %283 = vst.msk [vmem:[#allocation0 + $0xf3] ss:$8 sm:$0xc0] %vm6_vm5, %v274_v32   ;;  %v2497_v43 = vsel %vm375_vm2, %v5323_v39, %v2492_v14 }
  0xef   :  { %v5316_v41 = vld [vmem:[%s9464_s0 + $0x44] ss:$16 sm:%s2456_s12]   ;;  %s2539_s3 = smov 48  ;;  %605 = vst.msk [vmem:[#allocation0 + $0x120] sm:$0xf] %vm379_vm4, %v6627_v12   ;;  %s2544_s10 = smov 192  ;;  %2498 = vrot.lane.b32.xlu1 %v2497_v43, %s5709_s13 }
  0xf0   :  { %607 = vst.msk [vmem:[#allocation0 + $0x124] sm:$0xf0] %vm379_vm4, %v6627_v12   ;;  %v4964_v12 = vld [vmem:[%s9464_s0 + $0x400] ss:$8 sm:$0xf]   ;;  %s2506_s12 = smov 3 }
  0xf1   :  { %v5317_v46 = vld [vmem:[%s9464_s0 + $0x44] ss:$16 sm:%s2459_s16]   ;;  %v5318_v48 = vld [vmem:[%s9464_s0 + $0xc] ss:$16 sm:%s2464_s24]   ;;  %1204 = vst.msk [vmem:[#allocation0 + $0x120] sm:$0xf] %vm978_vm6, %v7193_v35  }
  0xf2   :  { %1206 = vst.msk [vmem:[#allocation0 + $0x124] sm:$0xf0] %vm978_vm6, %v7193_v35   ;;  %v7367_v35 = vpop.permute.xlu1 %1350   ;;  %v2462_v50 = vsel %vm365_vm0, %v5317_v46, %v5316_v41  ;;  %v5319_v22 = vld [vmem:[%s9464_s0 + $0xc] ss:$16 sm:%s7327_s25]   ;;  %s2509_s16 = smov 12  ;;  %s2514_s24 = smov 48 }
  0xf3   :  { %v4965_v51 = vld [vmem:[%s9464_s0 + $0x400] ss:$8 sm:$0xf0]   ;;  %v2467_v53 = vsel %vm370_vm1, %v5318_v48, %v2462_v50  ;;  %v5328_v55 = vld [vmem:[%s9464_s0 + $0x1c4] ss:$16 sm:%s2531_s6]   ;;  %s7385_s25 = smov 192 }
  0xf4   :  { %v5329_v60 = vld [vmem:[%s9464_s0 + $0x1c4] ss:$16 sm:%s2534_s30]   ;;  %v244_v56 = vsel %vm4_vm3, %v4965_v51, %v4964_v12  ;;  %v2472_v58 = vsel %vm375_vm2, %v5319_v22, %v2467_v53  ;;  %v5330_v63 = vld [vmem:[%s9464_s0 + $0x18c] ss:$16 sm:%s2539_s3]   ;;  %s2581_s6 = smov 3  ;;  %s2584_s30 = smov 12  ;;  %v7516_v51 = vpop.permute.xlu0 %1425  }
  0xf5   :  { %v2537_v59 = vsel %vm365_vm0, %v5329_v60, %v5328_v55  ;;  %v5331_v0 = vld [vmem:[%s9464_s0 + $0x18c] ss:$16 sm:%s2544_s10]   ;;  %247 = vst.msk [vmem:[#allocation0 + $0x100] ss:$8 sm:$0x3] %vm6_vm5, %v244_v56   ;;  %2473 = vrot.lane.b32.xlu0 %v2472_v58, %s5709_s13  ;;  %s2589_s3 = smov 48 }
  0xf6   :  { %249 = vst.msk [vmem:[#allocation0 + $0xf1] ss:$8 sm:$0xc] %vm6_vm5, %v244_v56   ;;  %251 = vst.msk [vmem:[#allocation0 + $0xe2] ss:$8 sm:$0x30] %vm6_vm5, %v244_v56   ;;  %v2542_v4 = vsel %vm370_vm1, %v5330_v63, %v2537_v59 }
  0xf7   :  { %253 = vst.msk [vmem:[#allocation0 + $0xd3] ss:$8 sm:$0xc0] %vm6_vm5, %v244_v56   ;;  %v5324_v44 = vld [vmem:[%s9464_s0 + $0x144] ss:$16 sm:%s2506_s12]   ;;  %v2547_v5 = vsel %vm375_vm2, %v5331_v0, %v2542_v4  ;;  %s2594_s10 = smov 192 }
  0xf8   :  { %580 = vst.msk [vmem:[#allocation0 + $0x100] sm:$0xf] %vm379_vm4, %v6649_v24   ;;  %582 = vst.msk [vmem:[#allocation0 + $0x104] sm:$0xf0] %vm379_vm4, %v6649_v24   ;;  %v5325_v7 = vld [vmem:[%s9464_s0 + $0x144] ss:$16 sm:%s2509_s16]   ;;  %2548 = vrot.lane.b32.xlu1 %v2547_v5, %s5709_s13 }
  0xf9   :  { %v4976_v24 = vld [vmem:[%s9464_s0 + $0x580] ss:$8 sm:$0xf]   ;;  %v5326_v8 = vld [vmem:[%s9464_s0 + $0x10c] ss:$16 sm:%s2514_s24]   ;;  %s2556_s12 = smov 3  ;;  %v2512_v9 = vsel %vm365_vm0, %v5325_v7, %v5324_v44 }
  0xfa   :  { %1179 = vst.msk [vmem:[#allocation0 + $0x100] sm:$0xf] %vm978_vm6, %v7226_v52   ;;  %1181 = vst.msk [vmem:[#allocation0 + $0x104] sm:$0xf0] %vm978_vm6, %v7226_v52   ;;  %v7425_v52 = vpop.permute.xlu1 %1400   ;;  %v5327_v10 = vld [vmem:[%s9464_s0 + $0x10c] ss:$16 sm:%s7385_s25]   ;;  %v2517_v13 = vsel %vm370_vm1, %v5326_v8, %v2512_v9 }
  0xfb   :  { %s2559_s16 = smov 12  ;;  %v4977_v11 = vld [vmem:[%s9464_s0 + $0x580] ss:$8 sm:$0xf0]   ;;  %v5336_v15 = vld [vmem:[%s9464_s0 + $0x2c4] ss:$16 sm:%s2581_s6]   ;;  %v2522_v18 = vsel %vm375_vm2, %v5327_v10, %v2517_v13 }
  0xfc   :  { %v5337_v6 = vld [vmem:[%s9464_s0 + $0x2c4] ss:$16 sm:%s2584_s30]   ;;  %s2564_s24 = smov 48  ;;  %s7443_s25 = smov 192  ;;  %v334_v17 = vsel %vm4_vm3, %v4977_v11, %v4976_v24  ;;  %v5338_v38 = vld [vmem:[%s9464_s0 + $0x28c] ss:$16 sm:%s2589_s3]   ;;  %v7574_v11 = vpop.permute.xlu0 %1475  }
  0xfd   :  { %v2587_v20 = vsel %vm365_vm0, %v5337_v6, %v5336_v15  ;;  %v5339_v25 = vld [vmem:[%s9464_s0 + $0x28c] ss:$16 sm:%s2594_s10]   ;;  %s2631_s6 = smov 3  ;;  %s2634_s30 = smov 12  ;;  %2523 = vrot.lane.b32.xlu0 %v2522_v18, %s5709_s13 }
  0xfe   :  { %337 = vst.msk [vmem:[#allocation0 + $0x160] ss:$8 sm:$0x3] %vm6_vm5, %v334_v17   ;;  %339 = vst.msk [vmem:[#allocation0 + $0x151] ss:$8 sm:$0xc] %vm6_vm5, %v334_v17   ;;  %v2592_v27 = vsel %vm370_vm1, %v5338_v38, %v2587_v20 }
  0xff   :  { %341 = vst.msk [vmem:[#allocation0 + $0x142] ss:$8 sm:$0x30] %vm6_vm5, %v334_v17   ;;  %343 = vst.msk [vmem:[#allocation0 + $0x133] ss:$8 sm:$0xc0] %vm6_vm5, %v334_v17   ;;  %v2597_v54 = vsel %vm375_vm2, %v5339_v25, %v2592_v27 }
 0x100   :  { %v5332_v30 = vld [vmem:[%s9464_s0 + $0x244] ss:$16 sm:%s2556_s12]   ;;  %s2639_s3 = smov 48  ;;  %655 = vst.msk [vmem:[#allocation0 + $0x160] sm:$0xf] %vm379_vm4, %v6663_v31   ;;  %s2644_s10 = smov 192  ;;  %2598 = vrot.lane.b32.xlu1 %v2597_v54, %s5709_s13 }
 0x101   :  { %657 = vst.msk [vmem:[#allocation0 + $0x164] sm:$0xf0] %vm379_vm4, %v6663_v31   ;;  %v4972_v31 = vld [vmem:[%s9464_s0 + $0x500] ss:$8 sm:$0xf]   ;;  %s2606_s12 = smov 3 }
 0x102   :  { %v5333_v32 = vld [vmem:[%s9464_s0 + $0x244] ss:$16 sm:%s2559_s16]   ;;  %v5334_v33 = vld [vmem:[%s9464_s0 + $0x20c] ss:$16 sm:%s2564_s24]   ;;  %1254 = vst.msk [vmem:[#allocation0 + $0x160] sm:$0xf] %vm978_vm6, %v7251_v62  }
 0x103   :  { %1256 = vst.msk [vmem:[#allocation0 + $0x164] sm:$0xf0] %vm978_vm6, %v7251_v62   ;;  %v7483_v62 = vpop.permute.xlu1 %1450   ;;  %v2562_v34 = vsel %vm365_vm0, %v5333_v32, %v5332_v30  ;;  %v5335_v37 = vld [vmem:[%s9464_s0 + $0x20c] ss:$16 sm:%s7443_s25]   ;;  %s2609_s16 = smov 12  ;;  %s2614_s24 = smov 48 }
 0x104   :  { %v4973_v39 = vld [vmem:[%s9464_s0 + $0x500] ss:$8 sm:$0xf0]   ;;  %v2567_v14 = vsel %vm370_vm1, %v5334_v33, %v2562_v34  ;;  %v5344_v41 = vld [vmem:[%s9464_s0 + $0x3c4] ss:$16 sm:%s2631_s6]   ;;  %s7501_s25 = smov 192 }
 0x105   :  { %v5345_v12 = vld [vmem:[%s9464_s0 + $0x3c4] ss:$16 sm:%s2634_s30]   ;;  %v304_v43 = vsel %vm4_vm3, %v4973_v39, %v4972_v31  ;;  %v2572_v46 = vsel %vm375_vm2, %v5335_v37, %v2567_v14  ;;  %v5346_v50 = vld [vmem:[%s9464_s0 + $0x38c] ss:$16 sm:%s2639_s3]   ;;  %s2681_s6 = smov 3  ;;  %s2684_s30 = smov 12  ;;  %v7632_v39 = vpop.permute.xlu0 %1525  }
 0x106   :  { %v2637_v48 = vsel %vm365_vm0, %v5345_v12, %v5344_v41  ;;  %v5347_v22 = vld [vmem:[%s9464_s0 + $0x38c] ss:$16 sm:%s2644_s10]   ;;  %307 = vst.msk [vmem:[#allocation0 + $0x140] ss:$8 sm:$0x3] %vm6_vm5, %v304_v43   ;;  %2573 = vrot.lane.b32.xlu0 %v2572_v46, %s5709_s13  ;;  %s2689_s3 = smov 48 }
 0x107   :  { %309 = vst.msk [vmem:[#allocation0 + $0x131] ss:$8 sm:$0xc] %vm6_vm5, %v304_v43   ;;  %311 = vst.msk [vmem:[#allocation0 + $0x122] ss:$8 sm:$0x30] %vm6_vm5, %v304_v43   ;;  %v2642_v53 = vsel %vm370_vm1, %v5346_v50, %v2637_v48 }
 0x108   :  { %313 = vst.msk [vmem:[#allocation0 + $0x113] ss:$8 sm:$0xc0] %vm6_vm5, %v304_v43   ;;  %v5340_v55 = vld [vmem:[%s9464_s0 + $0x344] ss:$16 sm:%s2606_s12]   ;;  %v2647_v60 = vsel %vm375_vm2, %v5347_v22, %v2642_v53  ;;  %s2694_s10 = smov 192 }
 0x109   :  { %630 = vst.msk [vmem:[#allocation0 + $0x140] sm:$0xf] %vm379_vm4, %v6685_v42   ;;  %632 = vst.msk [vmem:[#allocation0 + $0x144] sm:$0xf0] %vm379_vm4, %v6685_v42   ;;  %v5341_v56 = vld [vmem:[%s9464_s0 + $0x344] ss:$16 sm:%s2609_s16]   ;;  %2648 = vrot.lane.b32.xlu1 %v2647_v60, %s5709_s13 }
 0x10a   :  { %v4938_v42 = vld [vmem:[%s9464_s0 + $0xc0] ss:$8 sm:$0xf]   ;;  %v5342_v58 = vld [vmem:[%s9464_s0 + $0x30c] ss:$16 sm:%s2614_s24]   ;;  %s2656_s12 = smov 3  ;;  %v2612_v59 = vsel %vm365_vm0, %v5341_v56, %v5340_v55 }
 0x10b   :  { %1229 = vst.msk [vmem:[#allocation0 + $0x140] sm:$0xf] %vm978_vm6, %v7284_v28   ;;  %1231 = vst.msk [vmem:[#allocation0 + $0x144] sm:$0xf0] %vm978_vm6, %v7284_v28   ;;  %v7541_v28 = vpop.permute.xlu1 %1500   ;;  %v5343_v63 = vld [vmem:[%s9464_s0 + $0x30c] ss:$16 sm:%s7501_s25]   ;;  %v2617_v4 = vsel %vm370_vm1, %v5342_v58, %v2612_v59 }
 0x10c   :  { %s2659_s16 = smov 12  ;;  %v4939_v0 = vld [vmem:[%s9464_s0 + $0xc0] ss:$8 sm:$0xf0]   ;;  %v5352_v44 = vld [vmem:[%s9464_s0 + $0x4c4] ss:$16 sm:%s2681_s6]   ;;  %v2622_v7 = vsel %vm375_vm2, %v5343_v63, %v2617_v4 }
 0x10d   :  { %v5353_v24 = vld [vmem:[%s9464_s0 + $0x4c4] ss:$16 sm:%s2684_s30]   ;;  %s2664_s24 = smov 48  ;;  %s7559_s25 = smov 192  ;;  %v49_v5 = vsel %vm4_vm3, %v4939_v0, %v4938_v42  ;;  %v5354_v9 = vld [vmem:[%s9464_s0 + $0x48c] ss:$16 sm:%s2689_s3]   ;;  %v1576_v0 = vpop.permute.xlu0 %1575  }
 0x10e   :  { %v2687_v8 = vsel %vm365_vm0, %v5353_v24, %v5352_v44  ;;  %v5355_v10 = vld [vmem:[%s9464_s0 + $0x48c] ss:$16 sm:%s2694_s10]   ;;  %52 = vst.msk [vmem:[#allocation0 + $0x30] ss:$8 sm:$0x3] %vm6_vm5, %v49_v5   ;;  %s2731_s6 = smov 3  ;;  %2623 = vrot.lane.b32.xlu0 %v2622_v7, %s5709_s13 }
 0x10f   :  { %54 = vst.msk [vmem:[#allocation0 + $0x21] ss:$8 sm:$0xc] %vm6_vm5, %v49_v5   ;;  %56 = vst.msk [vmem:[#allocation0 + $0x12] ss:$8 sm:$0x30] %vm6_vm5, %v49_v5   ;;  %v2692_v13 = vsel %vm370_vm1, %v5354_v9, %v2687_v8 }
 0x110   :  { %58 = vst.msk [vmem:[#allocation0 + $0x3] ss:$8 sm:$0xc0] %vm6_vm5, %v49_v5   ;;  %s2734_s30 = smov 12  ;;  %v5348_v15 = vld [vmem:[%s9464_s0 + $0x444] ss:$16 sm:%s2656_s12]   ;;  %v2697_v6 = vsel %vm375_vm2, %v5355_v10, %v2692_v13 }
 0x111   :  { %705 = vst.msk [vmem:[#allocation0 + $0x30] sm:$0xf] %vm379_vm4, %v6699_v49   ;;  %707 = vst.msk [vmem:[#allocation0 + $0x34] sm:$0xf0] %vm379_vm4, %v6699_v49   ;;  %v5349_v17 = vld [vmem:[%s9464_s0 + $0x444] ss:$16 sm:%s2659_s16]   ;;  %2698 = vrot.lane.b32.xlu1 %v2697_v6, %s5709_s13 }
 0x112   :  { %v4934_v49 = vld [vmem:[%s9464_s0 + $0x40] ss:$8 sm:$0xf]   ;;  %v5350_v18 = vld [vmem:[%s9464_s0 + $0x40c] ss:$16 sm:%s2664_s24]   ;;  %s2744_s10 = smov 192  ;;  %v2662_v20 = vsel %vm365_vm0, %v5349_v17, %v5348_v15 }
 0x113   :  { %1304 = vst.msk [vmem:[#allocation0 + $0x30] sm:$0xf] %vm978_vm6, %v7309_v21   ;;  %1306 = vst.msk [vmem:[#allocation0 + $0x34] sm:$0xf0] %vm978_vm6, %v7309_v21   ;;  %s2706_s12 = smov 3  ;;  %v7599_v21 = vpop.permute.xlu1 %1550   ;;  %v2667_v27 = vsel %vm370_vm1, %v5350_v18, %v2662_v20  ;;  %s2714_s24 = smov 48  ;;  %v1625_v18 = vpop.permute.xlu0 %1624  }
 0x114   :  { %v5351_v38 = vld [vmem:[%s9464_s0 + $0x40c] ss:$16 sm:%s7559_s25]   ;;  %v4935_v25 = vld [vmem:[%s9464_s0 + $0x40] ss:$8 sm:$0xf0]   ;;  %s2719_s25 = smov 192 }
 0x115   :  { %v19_v30 = vsel %vm4_vm3, %v4935_v25, %v4934_v49  ;;  %v5360_v31 = vld [vmem:[%s9464_s0 + $0x5c4] ss:$16 sm:%s2731_s6]   ;;  %v2672_v32 = vsel %vm375_vm2, %v5351_v38, %v2667_v27  ;;  %v5362_v34 = vld [vmem:[%s9464_s0 + $0x58c] ss:$16 sm:%s2739_s5]   ;;  %s7630_s6 = smov 3  ;;  %s2783_s4 = smov 12 }
 0x116   :  { %v5361_v54 = vld [vmem:[%s9464_s0 + $0x5c4] ss:$16 sm:%s2734_s30]   ;;  %22 = vst.msk [vmem:[#allocation0 + $0x10] ss:$8 sm:$0x3] %vm6_vm5, %v19_v30   ;;  %2673 = vrot.lane.b32.xlu0 %v2672_v32, %s5709_s13  ;;  %s7751_s14 = smov 48 }
 0x117   :  { %24 = vst.msk [vmem:[#allocation0 + $0x1] ss:$8 sm:$0xc] %vm6_vm5, %v19_v30   ;;  %26 = vst.msk [vmem:[#allocation0 - $0xe] ss:$8 sm:$0x30] %vm6_vm5, %v19_v30   ;;  %v2737_v33 = vsel %vm365_vm0, %v5361_v54, %v5360_v31  ;;  %v1600_v46 = vpop.permute.xlu1 %1599  }
 0x118   :  { %28 = vst.msk [vmem:[#allocation0 - $0x1d] ss:$8 sm:$0xc0] %vm6_vm5, %v19_v30   ;;  %v5363_v37 = vld [vmem:[%s9464_s0 + $0x58c] ss:$16 sm:%s2744_s10]   ;;  %s7659_s10 = smov 192 }
 0x119   :  { %680 = vst.msk [vmem:[#allocation0 + $0x10] sm:$0xf] %vm379_vm4, %v6721_v61   ;;  %682 = vst.msk [vmem:[#allocation0 + $0x14] sm:$0xf0] %vm379_vm4, %v6721_v61   ;;  %v2742_v61 = vsel %vm370_vm1, %v5362_v34, %v2737_v33  ;;  %v5356_v14 = vld [vmem:[%s9464_s0 + $0x544] ss:$16 sm:%s2706_s12]  }
 0x11a   :  { %v4946_v41 = vld [vmem:[%s9464_s0 + $0x1c0] ss:$8 sm:$0xf]   ;;  %1279 = vst.msk [vmem:[#allocation0 + $0x10] sm:$0xf] %vm978_vm6, %v7342_v40   ;;  %s5710_s16 = smov 48  }
 0x11b   :  { %1281 = vst.msk [vmem:[#allocation0 + $0x14] sm:$0xf0] %vm978_vm6, %v7342_v40   ;;  %v2747_v40 = vsel %vm375_vm2, %v5363_v37, %v2742_v61  ;;  %v5357_v12 = vld [vmem:[%s9464_s0 + $0x544] ss:$16 sm:%s2709_s18]   ;;  %v5358_v43 = vld [vmem:[%s9464_s0 + $0x50c] ss:$16 sm:%s2714_s24]   ;;  %v1650_v5 = vpop.permute.xlu1 %1649  }
 0x11c   :  { %2748 = vrot.lane.b32.xlu1 %v2747_v40, %s5709_s13  ;;  %v2712_v48 = vsel %vm365_vm0, %v5357_v12, %v5356_v14  ;;  %v5359_v50 = vld [vmem:[%s9464_s0 + $0x50c] ss:$16 sm:%s2719_s25]   ;;  %v4947_v22 = vld [vmem:[%s9464_s0 + $0x1c0] ss:$8 sm:$0xf0]   ;;  %s7791_s30 = smov 48 }
 0x11d   :  { %1603 = vst.msk [vmem:[#allocation0 + $0x20] sm:$0xf] %vm1577_vm7, %v1600_v46   ;;  %1605 = vst.msk [vmem:[#allocation0 + $0x24] sm:$0xf0] %vm1577_vm7, %v1600_v46   ;;  %v2717_v53 = vsel %vm370_vm1, %v5358_v43, %v2712_v48  ;;  %v109_v55 = vsel %vm4_vm3, %v4947_v22, %v4946_v41  ;;  %v5368_v59 = vld [vmem:[%s9464_s0 + $0x83] ss:$16 sm:%s7630_s6]   ;;  %v1675_v41 = vpop.permute.xlu0 %1674  }
 0x11e   :  { %v4942_v42 = vld [vmem:[%s9464_s0 + $0x140] ss:$8 sm:$0xf]   ;;  %v2722_v56 = vsel %vm375_vm2, %v5359_v50, %v2717_v53  ;;  %112 = vst.msk [vmem:[#allocation0 + $0x70] ss:$8 sm:$0x3] %vm6_vm5, %v109_v55  }
 0x11f   :  { %v4943_v60 = vld [vmem:[%s9464_s0 + $0x140] ss:$8 sm:$0xf0]   ;;  %114 = vst.msk [vmem:[#allocation0 + $0x61] ss:$8 sm:$0xc] %vm6_vm5, %v109_v55   ;;  %2723 = vrot.lane.b32.xlu0 %v2722_v56, %s5709_s13  ;;  %v1700_v54 = vpop.permute.xlu1 %1699  }
 0x120   :  { %116 = vst.msk [vmem:[#allocation0 + $0x52] ss:$8 sm:$0x30] %vm6_vm5, %v109_v55   ;;  %118 = vst.msk [vmem:[#allocation0 + $0x43] ss:$8 sm:$0xc0] %vm6_vm5, %v109_v55   ;;  %v79_v58 = vsel %vm4_vm3, %v4943_v60, %v4942_v42 }
 0x121   :  { %v5369_v63 = vld [vmem:[%s9464_s0 + $0x83] ss:$16 sm:%s2783_s4]   ;;  %755 = vst.msk [vmem:[#allocation0 + $0x70] sm:$0xf] %vm379_vm4, %v6735_v3   ;;  %757 = vst.msk [vmem:[#allocation0 + $0x74] sm:$0xf0] %vm379_vm4, %v6735_v3  }
 0x122   :  { %82 = vst.msk [vmem:[#allocation0 + $0x50] ss:$8 sm:$0x3] %vm6_vm5, %v79_v58   ;;  %84 = vst.msk [vmem:[#allocation0 + $0x41] ss:$8 sm:$0xc] %vm6_vm5, %v79_v58   ;;  %v2786_v3 = vsel %vm365_vm0, %v5369_v63, %v5368_v59  ;;  %v1725_v63 = vpop.permute.xlu0 %1724  }
 0x123   :  { %86 = vst.msk [vmem:[#allocation0 + $0x32] ss:$8 sm:$0x30] %vm6_vm5, %v79_v58   ;;  %88 = vst.msk [vmem:[#allocation0 + $0x23] ss:$8 sm:$0xc0] %vm6_vm5, %v79_v58   ;;  %v1750_v55 = vpop.permute.xlu1 %1749  }
 0x124   :  { %v5370_v4 = vld [vmem:[%s9464_s0 + $0x4b] ss:$16 sm:%s7657_s9]   ;;  %s2769_s6 = smov 192  ;;  %v4954_v44 = vld [vmem:[%s9464_s0 + $0x2c0] ss:$8 sm:$0xf]  }
 0x125   :  { %1578 = vst.msk [vmem:[#allocation0] sm:$0xf] %vm1577_vm7, %v1576_v0   ;;  %1580 = vst.msk [vmem:[#allocation0 + $0x4] sm:$0xf0] %vm1577_vm7, %v1576_v0   ;;  %v5364_v24 = vld [vmem:[%s9464_s0 + $0x3] ss:$16 sm:%s7669_s17]  }
 0x126   :  { %1354 = vst.msk [vmem:[#allocation0 + $0x70] sm:$0xf] %vm978_vm6, %v7367_v35   ;;  %1356 = vst.msk [vmem:[#allocation0 + $0x74] sm:$0xf0] %vm978_vm6, %v7367_v35   ;;  %v5371_v35 = vld [vmem:[%s9464_s0 + $0x4b] ss:$16 sm:%s7659_s10]  }
 0x127   :  { %730 = vst.msk [vmem:[#allocation0 + $0x50] sm:$0xf] %vm379_vm4, %v6757_v16   ;;  %732 = vst.msk [vmem:[#allocation0 + $0x54] sm:$0xf0] %vm379_vm4, %v6757_v16   ;;  %v2791_v16 = vsel %vm370_vm1, %v5370_v4, %v2786_v3  ;;  %v5365_v7 = vld [vmem:[%s9464_s0 + $0x3] ss:$16 sm:%s7694_s27]  }
 0x128   :  { %1329 = vst.msk [vmem:[#allocation0 + $0x50] sm:$0xf] %vm978_vm6, %v7400_v1   ;;  %1331 = vst.msk [vmem:[#allocation0 + $0x54] sm:$0xf0] %vm978_vm6, %v7400_v1   ;;  %v2796_v1 = vsel %vm375_vm2, %v5371_v35, %v2791_v16  ;;  %v5366_v8 = vld [vmem:[%s9464_s0 - $0x35] ss:$16 sm:%s7696_s28]   ;;  %v2762_v9 = vsel %vm365_vm0, %v5365_v7, %v5364_v24 }
 0x129   :  { %1653 = vst.msk [vmem:[#allocation0 + $0x60] sm:$0xf] %vm1577_vm7, %v1650_v5   ;;  %1655 = vst.msk [vmem:[#allocation0 + $0x64] sm:$0xf0] %vm1577_vm7, %v1650_v5   ;;  %2797 = vrot.lane.b32.xlu1 %v2796_v1, %s5710_s16  ;;  %v5367_v10 = vld [vmem:[%s9464_s0 - $0x35] ss:$16 sm:%s2769_s6]   ;;  %v2767_v15 = vsel %vm370_vm1, %v5366_v8, %v2762_v9  ;;  %v1800_v5 = vpop.permute.xlu1 %1799  }
 0x12a   :  { %v4955_v13 = vld [vmem:[%s9464_s0 + $0x2c0] ss:$8 sm:$0xf0]   ;;  %v2772_v20 = vsel %vm375_vm2, %v5367_v10, %v2767_v15  ;;  %v5376_v25 = vld [vmem:[%s9464_s0 + $0x183] ss:$16 sm:%s7734_s7]   ;;  %s7789_s6 = smov 12 }
 0x12b   :  { %v169_v49 = vsel %vm4_vm3, %v4955_v13, %v4954_v44  ;;  %v4950_v6 = vld [vmem:[%s9464_s0 + $0x240] ss:$8 sm:$0xf]   ;;  %v5377_v27 = vld [vmem:[%s9464_s0 + $0x183] ss:$16 sm:%s7736_s8]   ;;  %2773 = vrot.lane.b32.xlu0 %v2772_v20, %s5710_s16  ;;  %s2818_s3 = smov 192 }
 0x12c   :  { %v4951_v17 = vld [vmem:[%s9464_s0 + $0x240] ss:$8 sm:$0xf0]   ;;  %172 = vst.msk [vmem:[#allocation0 + $0xb0] ss:$8 sm:$0x3] %vm6_vm5, %v169_v49  }
 0x12d   :  { %174 = vst.msk [vmem:[#allocation0 + $0xa1] ss:$8 sm:$0xc] %vm6_vm5, %v169_v49   ;;  %176 = vst.msk [vmem:[#allocation0 + $0x92] ss:$8 sm:$0x30] %vm6_vm5, %v169_v49   ;;  %v139_v38 = vsel %vm4_vm3, %v4951_v17, %v4950_v6 }
 0x12e   :  { %178 = vst.msk [vmem:[#allocation0 + $0x83] ss:$8 sm:$0xc0] %vm6_vm5, %v169_v49   ;;  %142 = vst.msk [vmem:[#allocation0 + $0x90] ss:$8 sm:$0x3] %vm6_vm5, %v139_v38   ;;  %v1775_v49 = vpop.permute.xlu0 %1774  }
 0x12f   :  { %1628 = vst.msk [vmem:[#allocation0 + $0x40] sm:$0xf] %vm1577_vm7, %v1625_v18   ;;  %1630 = vst.msk [vmem:[#allocation0 + $0x44] sm:$0xf0] %vm1577_vm7, %v1625_v18   ;;  %v5378_v30 = vld [vmem:[%s9464_s0 + $0x14b] ss:$16 sm:%s7751_s14]  }
 0x130   :  { %805 = vst.msk [vmem:[#allocation0 + $0xb0] sm:$0xf] %vm379_vm4, %v6771_v23   ;;  %807 = vst.msk [vmem:[#allocation0 + $0xb4] sm:$0xf0] %vm379_vm4, %v6771_v23   ;;  %v2836_v23 = vsel %vm365_vm0, %v5377_v27, %v5376_v25  ;;  %v5372_v32 = vld [vmem:[%s9464_s0 + $0x103] ss:$16 sm:%s7765_s22]   ;;  %v1850_v25 = vpop.permute.xlu1 %1849  }
 0x131   :  { %144 = vst.msk [vmem:[#allocation0 + $0x81] ss:$8 sm:$0xc] %vm6_vm5, %v139_v38   ;;  %146 = vst.msk [vmem:[#allocation0 + $0x72] ss:$8 sm:$0x30] %vm6_vm5, %v139_v38  }
 0x132   :  { %148 = vst.msk [vmem:[#allocation0 + $0x63] ss:$8 sm:$0xc0] %vm6_vm5, %v139_v38   ;;  %v4962_v31 = vld [vmem:[%s9464_s0 + $0x3c0] ss:$8 sm:$0xf]  }
 0x133   :  { %1404 = vst.msk [vmem:[#allocation0 + $0xb0] sm:$0xf] %vm978_vm6, %v7425_v52   ;;  %1406 = vst.msk [vmem:[#allocation0 + $0xb4] sm:$0xf0] %vm978_vm6, %v7425_v52   ;;  %v5379_v52 = vld [vmem:[%s9464_s0 + $0x14b] ss:$16 sm:%s7753_s15]  }
 0x134   :  { %780 = vst.msk [vmem:[#allocation0 + $0x90] sm:$0xf] %vm379_vm4, %v6793_v36   ;;  %782 = vst.msk [vmem:[#allocation0 + $0x94] sm:$0xf0] %vm379_vm4, %v6793_v36   ;;  %v2841_v36 = vsel %vm370_vm1, %v5378_v30, %v2836_v23  ;;  %s7829_s10 = smov 3  ;;  %s7831_s12 = smov 12 }
 0x135   :  { %1703 = vst.msk [vmem:[#allocation0 + $0xa0] sm:$0xf] %vm1577_vm7, %v1700_v54   ;;  %1705 = vst.msk [vmem:[#allocation0 + $0xa4] sm:$0xf0] %vm1577_vm7, %v1700_v54   ;;  %v5373_v33 = vld [vmem:[%s9464_s0 + $0x103] ss:$16 sm:%s7789_s6]  }
 0x136   :  { %1379 = vst.msk [vmem:[#allocation0 + $0x90] sm:$0xf] %vm978_vm6, %v7458_v26   ;;  %1381 = vst.msk [vmem:[#allocation0 + $0x94] sm:$0xf0] %vm978_vm6, %v7458_v26   ;;  %v2846_v26 = vsel %vm375_vm2, %v5379_v52, %v2841_v36  ;;  %v5374_v34 = vld [vmem:[%s9464_s0 + $0xcb] ss:$16 sm:%s7791_s30]   ;;  %v2811_v37 = vsel %vm365_vm0, %v5373_v33, %v5372_v32  ;;  %v1825_v33 = vpop.permute.xlu0 %1824  }
 0x137   :  { %2847 = vrot.lane.b32.xlu1 %v2846_v26, %s5710_s16  ;;  %v5375_v61 = vld [vmem:[%s9464_s0 + $0xcb] ss:$16 sm:%s2818_s3]   ;;  %v4963_v14 = vld [vmem:[%s9464_s0 + $0x3c0] ss:$8 sm:$0xf0]   ;;  %v2816_v40 = vsel %vm370_vm1, %v5374_v34, %v2811_v37  ;;  %s2858_s3 = smov 12 }
 0x138   :  { %v229_v12 = vsel %vm4_vm3, %v4963_v14, %v4962_v31  ;;  %v4958_v43 = vld [vmem:[%s9464_s0 + $0x340] ss:$8 sm:$0xf]   ;;  %1678 = vst.msk [vmem:[#allocation0 + $0x80] sm:$0xf] %vm1577_vm7, %v1675_v41   ;;  %v2821_v48 = vsel %vm375_vm2, %v5375_v61, %v2816_v40  ;;  %s2863_s4 = smov 48  ;;  %v1900_v14 = vpop.permute.xlu1 %1899  }
 0x139   :  { %v4959_v46 = vld [vmem:[%s9464_s0 + $0x340] ss:$8 sm:$0xf0]   ;;  %1680 = vst.msk [vmem:[#allocation0 + $0x84] sm:$0xf0] %vm1577_vm7, %v1675_v41   ;;  %2822 = vrot.lane.b32.xlu0 %v2821_v48, %s5710_s16  ;;  %s2868_s8 = smov 192 }
 0x13a   :  { %232 = vst.msk [vmem:[#allocation0 + $0xf0] ss:$8 sm:$0x3] %vm6_vm5, %v229_v12   ;;  %234 = vst.msk [vmem:[#allocation0 + $0xe1] ss:$8 sm:$0xc] %vm6_vm5, %v229_v12   ;;  %v199_v50 = vsel %vm4_vm3, %v4959_v46, %v4958_v43 }
 0x13b   :  { %236 = vst.msk [vmem:[#allocation0 + $0xd2] ss:$8 sm:$0x30] %vm6_vm5, %v229_v12   ;;  %238 = vst.msk [vmem:[#allocation0 + $0xc3] ss:$8 sm:$0xc0] %vm6_vm5, %v229_v12  }
 0x13c   :  { %v5384_v22 = vld [vmem:[%s9464_s0 + $0x283] ss:$16 sm:%s7829_s10]   ;;  %855 = vst.msk [vmem:[#allocation0 + $0xf0] sm:$0xf] %vm379_vm4, %v6807_v45   ;;  %857 = vst.msk [vmem:[#allocation0 + $0xf4] sm:$0xf0] %vm379_vm4, %v6807_v45  }
 0x13d   :  { %v5385_v53 = vld [vmem:[%s9464_s0 + $0x283] ss:$16 sm:%s7831_s12]   ;;  %202 = vst.msk [vmem:[#allocation0 + $0xd0] ss:$8 sm:$0x3] %vm6_vm5, %v199_v50   ;;  %s2930_s17 = smov 3 }
 0x13e   :  { %204 = vst.msk [vmem:[#allocation0 + $0xc1] ss:$8 sm:$0xc] %vm6_vm5, %v199_v50   ;;  %206 = vst.msk [vmem:[#allocation0 + $0xb2] ss:$8 sm:$0x30] %vm6_vm5, %v199_v50   ;;  %v2886_v45 = vsel %vm365_vm0, %v5385_v53, %v5384_v22 }
 0x13f   :  { %208 = vst.msk [vmem:[#allocation0 + $0xa3] ss:$8 sm:$0xc0] %vm6_vm5, %v199_v50   ;;  %v5386_v42 = vld [vmem:[%s9464_s0 + $0x24b] ss:$16 sm:%s7848_s20]   ;;  %s2933_s18 = smov 12 }
 0x140   :  { %v4970_v60 = vld [vmem:[%s9464_s0 + $0x4c0] ss:$8 sm:$0xf]   ;;  %1753 = vst.msk [vmem:[#allocation0 + $0xe0] sm:$0xf] %vm1577_vm7, %v1750_v55   ;;  %s7933_s24 = smov 48 }
 0x141   :  { %1755 = vst.msk [vmem:[#allocation0 + $0xe4] sm:$0xf0] %vm1577_vm7, %v1750_v55   ;;  %v5380_v56 = vld [vmem:[%s9464_s0 + $0x203] ss:$16 sm:%s7860_s26]   ;;  %v5382_v59 = vld [vmem:[%s9464_s0 + $0x1cb] ss:$16 sm:%s2863_s4]   ;;  %v1875_v55 = vpop.permute.xlu0 %1874  }
 0x142   :  { %1454 = vst.msk [vmem:[#allocation0 + $0xf0] sm:$0xf] %vm978_vm6, %v7483_v62   ;;  %1456 = vst.msk [vmem:[#allocation0 + $0xf4] sm:$0xf0] %vm978_vm6, %v7483_v62   ;;  %v5387_v62 = vld [vmem:[%s9464_s0 + $0x24b] ss:$16 sm:%s7850_s21]  }
 0x143   :  { %830 = vst.msk [vmem:[#allocation0 + $0xd0] sm:$0xf] %vm379_vm4, %v6829_v57   ;;  %832 = vst.msk [vmem:[#allocation0 + $0xd4] sm:$0xf0] %vm379_vm4, %v6829_v57   ;;  %v2891_v57 = vsel %vm370_vm1, %v5386_v42, %v2886_v45  ;;  %v5381_v58 = vld [vmem:[%s9464_s0 + $0x203] ss:$16 sm:%s2858_s3]  }
 0x144   :  { %1429 = vst.msk [vmem:[#allocation0 + $0xd0] sm:$0xf] %vm978_vm6, %v7516_v51   ;;  %1431 = vst.msk [vmem:[#allocation0 + $0xd4] sm:$0xf0] %vm978_vm6, %v7516_v51   ;;  %v2896_v51 = vsel %vm375_vm2, %v5387_v62, %v2891_v57  ;;  %s7935_s25 = smov 192  ;;  %v2861_v0 = vsel %vm365_vm0, %v5381_v58, %v5380_v56  ;;  %s2918_s12 = smov 192  ;;  %v1950_v56 = vpop.permute.xlu1 %1949  }
 0x145   :  { %2897 = vrot.lane.b32.xlu1 %v2896_v51, %s5710_s16  ;;  %v5383_v3 = vld [vmem:[%s9464_s0 + $0x1cb] ss:$16 sm:%s2868_s8]   ;;  %v4971_v4 = vld [vmem:[%s9464_s0 + $0x4c0] ss:$8 sm:$0xf0]   ;;  %v2866_v44 = vsel %vm370_vm1, %v5382_v59, %v2861_v0  ;;  %s2908_s8 = smov 12 }
 0x146   :  { %1728 = vst.msk [vmem:[#allocation0 + $0xc0] sm:$0xf] %vm1577_vm7, %v1725_v63   ;;  %1730 = vst.msk [vmem:[#allocation0 + $0xc4] sm:$0xf0] %vm1577_vm7, %v1725_v63   ;;  %v289_v16 = vsel %vm4_vm3, %v4971_v4, %v4970_v60  ;;  %v2871_v1 = vsel %vm375_vm2, %v5383_v3, %v2866_v44  ;;  %v5392_v8 = vld [vmem:[%s9464_s0 + $0x383] ss:$16 sm:%s2930_s17]  }
 0x147   :  { %v4966_v35 = vld [vmem:[%s9464_s0 + $0x440] ss:$8 sm:$0xf]   ;;  %292 = vst.msk [vmem:[#allocation0 + $0x130] ss:$8 sm:$0x3] %vm6_vm5, %v289_v16   ;;  %2872 = vrot.lane.b32.xlu0 %v2871_v1, %s5710_s16 }
 0x148   :  { %v4967_v24 = vld [vmem:[%s9464_s0 + $0x440] ss:$8 sm:$0xf0]   ;;  %294 = vst.msk [vmem:[#allocation0 + $0x121] ss:$8 sm:$0xc] %vm6_vm5, %v289_v16  }
 0x149   :  { %296 = vst.msk [vmem:[#allocation0 + $0x112] ss:$8 sm:$0x30] %vm6_vm5, %v289_v16   ;;  %298 = vst.msk [vmem:[#allocation0 + $0x103] ss:$8 sm:$0xc0] %vm6_vm5, %v289_v16   ;;  %v259_v7 = vsel %vm4_vm3, %v4967_v24, %v4966_v35  ;;  %v1925_v35 = vpop.permute.xlu0 %1924  }
 0x14a   :  { %v5393_v9 = vld [vmem:[%s9464_s0 + $0x383] ss:$16 sm:%s2933_s18]   ;;  %1803 = vst.msk [vmem:[#allocation0 + $0x120] sm:$0xf] %vm1577_vm7, %v1800_v5   ;;  %1805 = vst.msk [vmem:[#allocation0 + $0x124] sm:$0xf0] %vm1577_vm7, %v1800_v5  }
 0x14b   :  { %905 = vst.msk [vmem:[#allocation0 + $0x130] sm:$0xf] %vm379_vm4, %v6848_v2   ;;  %907 = vst.msk [vmem:[#allocation0 + $0x134] sm:$0xf0] %vm379_vm4, %v6848_v2   ;;  %v2936_v2 = vsel %vm365_vm0, %v5393_v9, %v5392_v8  ;;  %v5394_v10 = vld [vmem:[%s9464_s0 + $0x34b] ss:$16 sm:%s7933_s24]   ;;  %v2000_v9 = vpop.permute.xlu1 %1999  }
 0x14c   :  { %262 = vst.msk [vmem:[#allocation0 + $0x110] ss:$8 sm:$0x3] %vm6_vm5, %v259_v7   ;;  %264 = vst.msk [vmem:[#allocation0 + $0x101] ss:$8 sm:$0xc] %vm6_vm5, %v259_v7  }
 0x14d   :  { %266 = vst.msk [vmem:[#allocation0 + $0xf2] ss:$8 sm:$0x30] %vm6_vm5, %v259_v7   ;;  %268 = vst.msk [vmem:[#allocation0 + $0xe3] ss:$8 sm:$0xc0] %vm6_vm5, %v259_v7  }
 0x14e   :  { %v4978_v13 = vld [vmem:[%s9464_s0 + $0x5c0] ss:$8 sm:$0xf]   ;;  %1504 = vst.msk [vmem:[#allocation0 + $0x130] sm:$0xf] %vm978_vm6, %v7541_v28   ;;  %s8005_s22 = smov 3 }
 0x14f   :  { %1506 = vst.msk [vmem:[#allocation0 + $0x134] sm:$0xf0] %vm978_vm6, %v7541_v28   ;;  %v5395_v28 = vld [vmem:[%s9464_s0 + $0x34b] ss:$16 sm:%s7935_s25]   ;;  %v5388_v15 = vld [vmem:[%s9464_s0 + $0x303] ss:$16 sm:%s7945_s29]  }
 0x150   :  { %880 = vst.msk [vmem:[#allocation0 + $0x110] sm:$0xf] %vm379_vm4, %v6880_v19   ;;  %882 = vst.msk [vmem:[#allocation0 + $0x114] sm:$0xf0] %vm379_vm4, %v6880_v19   ;;  %v2941_v19 = vsel %vm370_vm1, %v5394_v10, %v2936_v2  ;;  %v5389_v6 = vld [vmem:[%s9464_s0 + $0x303] ss:$16 sm:%s2908_s8]  }
 0x151   :  { %1479 = vst.msk [vmem:[#allocation0 + $0x110] sm:$0xf] %vm978_vm6, %v7574_v11   ;;  %1481 = vst.msk [vmem:[#allocation0 + $0x114] sm:$0xf0] %vm978_vm6, %v7574_v11   ;;  %v2946_v11 = vsel %vm375_vm2, %v5395_v28, %v2941_v19  ;;  %v5390_v17 = vld [vmem:[%s9464_s0 + $0x2cb] ss:$16 sm:%s2913_s11]   ;;  %v2911_v18 = vsel %vm365_vm0, %v5389_v6, %v5388_v15 }
 0x152   :  { %s8020_s28 = smov 48  ;;  %s8022_s13 = smov 192  ;;  %1778 = vst.msk [vmem:[#allocation0 + $0x100] sm:$0xf] %vm1577_vm7, %v1775_v49   ;;  %1780 = vst.msk [vmem:[#allocation0 + $0x104] sm:$0xf0] %vm1577_vm7, %v1775_v49   ;;  %2947 = vrot.lane.b32.xlu1 %v2946_v11, %s5710_s16  ;;  %v2916_v27 = vsel %vm370_vm1, %v5390_v17, %v2911_v18  ;;  %v1975_v17 = vpop.permute.xlu0 %1974  }
 0x153   :  { %v5391_v20 = vld [vmem:[%s9464_s0 + $0x2cb] ss:$16 sm:%s2918_s12]   ;;  %v4979_v38 = vld [vmem:[%s9464_s0 + $0x5c0] ss:$8 sm:$0xf0]   ;;  %s8034_s2 = smov 3 }
 0x154   :  { %v349_v23 = vsel %vm4_vm3, %v4979_v38, %v4978_v13  ;;  %v4974_v30 = vld [vmem:[%s9464_s0 + $0x540] ss:$8 sm:$0xf]   ;;  %1853 = vst.msk [vmem:[#allocation0 + $0x160] sm:$0xf] %vm1577_vm7, %v1850_v25   ;;  %v2921_v54 = vsel %vm375_vm2, %v5391_v20, %v2916_v27  ;;  %s2958_s12 = smov 12 }
 0x155   :  { %v4975_v31 = vld [vmem:[%s9464_s0 + $0x540] ss:$8 sm:$0xf0]   ;;  %1855 = vst.msk [vmem:[#allocation0 + $0x164] sm:$0xf0] %vm1577_vm7, %v1850_v25   ;;  %s2963_s14 = smov 48  ;;  %2922 = vrot.lane.b32.xlu0 %v2921_v54, %s5710_s16 }
 0x156   :  { %352 = vst.msk [vmem:[#allocation0 + $0x170] ss:$8 sm:$0x3] %vm6_vm5, %v349_v23   ;;  %354 = vst.msk [vmem:[#allocation0 + $0x161] ss:$8 sm:$0xc] %vm6_vm5, %v349_v23   ;;  %v319_v36 = vsel %vm4_vm3, %v4975_v31, %v4974_v30 }
 0x157   :  { %356 = vst.msk [vmem:[#allocation0 + $0x152] ss:$8 sm:$0x30] %vm6_vm5, %v349_v23   ;;  %358 = vst.msk [vmem:[#allocation0 + $0x143] ss:$8 sm:$0xc0] %vm6_vm5, %v349_v23   ;;  %v2050_v23 = vpop.permute.xlu1 %2049  }
 0x158   :  { %v5400_v52 = vld [vmem:[%s9464_s0 + $0x483] ss:$16 sm:%s8005_s22]   ;;  %955 = vst.msk [vmem:[#allocation0 + $0x170] sm:$0xf] %vm379_vm4, %v6908_v29   ;;  %957 = vst.msk [vmem:[#allocation0 + $0x174] sm:$0xf0] %vm379_vm4, %v6908_v29  }
 0x159   :  { %v5401_v32 = vld [vmem:[%s9464_s0 + $0x483] ss:$16 sm:%s8007_s23]   ;;  %322 = vst.msk [vmem:[#allocation0 + $0x150] ss:$8 sm:$0x3] %vm6_vm5, %v319_v36   ;;  %s2968_s18 = smov 192 }
 0x15a   :  { %324 = vst.msk [vmem:[#allocation0 + $0x141] ss:$8 sm:$0xc] %vm6_vm5, %v319_v36   ;;  %326 = vst.msk [vmem:[#allocation0 + $0x132] ss:$8 sm:$0x30] %vm6_vm5, %v319_v36   ;;  %v2986_v29 = vsel %vm365_vm0, %v5401_v32, %v5400_v52 }
 0x15b   :  { %328 = vst.msk [vmem:[#allocation0 + $0x123] ss:$8 sm:$0xc0] %vm6_vm5, %v319_v36   ;;  %v5402_v26 = vld [vmem:[%s9464_s0 + $0x44b] ss:$16 sm:%s8020_s28]   ;;  %s3030_s24 = smov 3 }
 0x15c   :  { %1554 = vst.msk [vmem:[#allocation0 + $0x170] sm:$0xf] %vm978_vm6, %v7599_v21   ;;  %1556 = vst.msk [vmem:[#allocation0 + $0x174] sm:$0xf0] %vm978_vm6, %v7599_v21   ;;  %v5403_v21 = vld [vmem:[%s9464_s0 + $0x44b] ss:$16 sm:%s8022_s13]  }
 0x15d   :  { %930 = vst.msk [vmem:[#allocation0 + $0x150] sm:$0xf] %vm379_vm4, %v6937_v47   ;;  %932 = vst.msk [vmem:[#allocation0 + $0x154] sm:$0xf0] %vm379_vm4, %v6937_v47   ;;  %v2991_v47 = vsel %vm370_vm1, %v5402_v26, %v2986_v29  ;;  %v5396_v34 = vld [vmem:[%s9464_s0 + $0x403] ss:$16 sm:%s8034_s2]  }
 0x15e   :  { %s3033_s25 = smov 12  ;;  %1828 = vst.msk [vmem:[#allocation0 + $0x140] sm:$0xf] %vm1577_vm7, %v1825_v33   ;;  %1830 = vst.msk [vmem:[#allocation0 + $0x144] sm:$0xf0] %vm1577_vm7, %v1825_v33   ;;  %s3038_s29 = smov 48 }
 0x15f   :  { %1529 = vst.msk [vmem:[#allocation0 + $0x150] sm:$0xf] %vm978_vm6, %v7632_v39   ;;  %1531 = vst.msk [vmem:[#allocation0 + $0x154] sm:$0xf0] %vm978_vm6, %v7632_v39   ;;  %v2996_v39 = vsel %vm375_vm2, %v5403_v21, %v2991_v47  ;;  %v5397_v37 = vld [vmem:[%s9464_s0 + $0x403] ss:$16 sm:%s2958_s12]   ;;  %v2025_v47 = vpop.permute.xlu0 %2024  }
 0x160   :  { %v5398_v61 = vld [vmem:[%s9464_s0 + $0x3cb] ss:$16 sm:%s2963_s14]   ;;  %s3043_s6 = smov 192  ;;  %2997 = vrot.lane.b32.xlu1 %v2996_v39, %s5710_s16  ;;  %v2961_v41 = vsel %vm365_vm0, %v5397_v37, %v5396_v34  ;;  %s3005_s2 = smov 3  ;;  %1903 = vst.msk [vmem:[#allocation0 + $0x30] sm:$0xf] %vm1577_vm7, %v1900_v14  }
 0x161   :  { %v5399_v40 = vld [vmem:[%s9464_s0 + $0x3cb] ss:$16 sm:%s2968_s18]   ;;  %1905 = vst.msk [vmem:[#allocation0 + $0x34] sm:$0xf0] %vm1577_vm7, %v1900_v14   ;;  %v2966_v12 = vsel %vm370_vm1, %v5398_v61, %v2961_v41  ;;  %v5408_v43 = vld [vmem:[%s9464_s0 + $0x583] ss:$16 sm:%s3030_s24]   ;;  %v2100_v14 = vpop.permute.xlu1 %2099  }
 0x162   :  { %v5409_v46 = vld [vmem:[%s9464_s0 + $0x583] ss:$16 sm:%s3033_s25]   ;;  %s3008_s8 = smov 12  ;;  %s3013_s11 = smov 48  ;;  %v2971_v48 = vsel %vm375_vm2, %v5399_v40, %v2966_v12  ;;  %v5410_v22 = vld [vmem:[%s9464_s0 + $0x54b] ss:$16 sm:%s3038_s29]  }
 0x163   :  { %v3036_v50 = vsel %vm365_vm0, %v5409_v46, %v5408_v43  ;;  %v5411_v53 = vld [vmem:[%s9464_s0 + $0x54b] ss:$16 sm:%s3043_s6]   ;;  %s3018_s15 = smov 192  ;;  %2972 = vrot.lane.b32.xlu0 %v2971_v48, %s5710_s16  ;;  %s3080_s20 = smov 3  ;;  %1878 = vst.msk [vmem:[#allocation0 + $0x10] sm:$0xf] %vm1577_vm7, %v1875_v55  }
 0x164   :  { %v3041_v45 = vsel %vm370_vm1, %v5410_v22, %v3036_v50  ;;  %v5404_v42 = vld [vmem:[%s9464_s0 + $0x503] ss:$16 sm:%s3005_s2]   ;;  %s3083_s21 = smov 12  ;;  %1880 = vst.msk [vmem:[#allocation0 + $0x14] sm:$0xf0] %vm1577_vm7, %v1875_v55   ;;  %s3088_s26 = smov 48  ;;  %v2075_v55 = vpop.permute.xlu0 %2074  }
 0x165   :  { %v3046_v60 = vsel %vm375_vm2, %v5411_v53, %v3041_v45  ;;  %v5405_v57 = vld [vmem:[%s9464_s0 + $0x503] ss:$16 sm:%s3008_s8]   ;;  %v5406_v62 = vld [vmem:[%s9464_s0 + $0x4cb] ss:$16 sm:%s3013_s11]   ;;  %s3093_s27 = smov 192  ;;  %s3055_s29 = smov 3 }
 0x166   :  { %3047 = vrot.lane.b32.xlu1 %v3046_v60, %s5710_s16  ;;  %v3011_v51 = vsel %vm365_vm0, %v5405_v57, %v5404_v42  ;;  %v5407_v58 = vld [vmem:[%s9464_s0 + $0x4cb] ss:$16 sm:%s3018_s15]   ;;  %1953 = vst.msk [vmem:[#allocation0 + $0x70] sm:$0xf] %vm1577_vm7, %v1950_v56   ;;  %1955 = vst.msk [vmem:[#allocation0 + $0x74] sm:$0xf0] %vm1577_vm7, %v1950_v56   ;;  %v2150_v56 = vpop.permute.xlu1 %2149  }
 0x167   :  { %v3016_v59 = vsel %vm370_vm1, %v5406_v62, %v3011_v51  ;;  %v5416_v63 = vld [vmem:[%s9464_s0 + $0xc3] ss:$16 sm:%s3080_s20]   ;;  %s3058_s3 = smov 12  ;;  %s3063_s4 = smov 48  ;;  %v5418_v44 = vld [vmem:[%s9464_s0 + $0x8b] ss:$16 sm:%s3088_s26]  }
 0x168   :  { %v5417_v0 = vld [vmem:[%s9464_s0 + $0xc3] ss:$16 sm:%s3083_s21]   ;;  %v3021_v3 = vsel %vm375_vm2, %v5407_v58, %v3016_v59  ;;  %v5419_v16 = vld [vmem:[%s9464_s0 + $0x8b] ss:$16 sm:%s3093_s27]   ;;  %s3068_s9 = smov 192  ;;  %s3130_s14 = smov 3 }
 0x169   :  { %v3086_v4 = vsel %vm365_vm0, %v5417_v0, %v5416_v63  ;;  %3022 = vrot.lane.b32.xlu0 %v3021_v3, %s5710_s16  ;;  %v5412_v5 = vld [vmem:[%s9464_s0 + $0x43] ss:$16 sm:%s3055_s29]   ;;  %s3133_s15 = smov 12  ;;  %1928 = vst.msk [vmem:[#allocation0 + $0x50] sm:$0xf] %vm1577_vm7, %v1925_v35   ;;  %s3138_s22 = smov 48 }
 0x16a   :  { %v3091_v24 = vsel %vm370_vm1, %v5418_v44, %v3086_v4  ;;  %1930 = vst.msk [vmem:[#allocation0 + $0x54] sm:$0xf0] %vm1577_vm7, %v1925_v35   ;;  %v5413_v7 = vld [vmem:[%s9464_s0 + $0x43] ss:$16 sm:%s3058_s3]   ;;  %v5414_v8 = vld [vmem:[%s9464_s0 + $0xb] ss:$16 sm:%s3063_s4]   ;;  %v2125_v35 = vpop.permute.xlu0 %2124  }
 0x16b   :  { %v3096_v1 = vsel %vm375_vm2, %v5419_v16, %v3091_v24  ;;  %s3143_s23 = smov 192  ;;  %v3061_v2 = vsel %vm365_vm0, %v5413_v7, %v5412_v5  ;;  %v5415_v10 = vld [vmem:[%s9464_s0 + $0xb] ss:$16 sm:%s3068_s9]   ;;  %s3105_s26 = smov 3  ;;  %2003 = vst.msk [vmem:[#allocation0 + $0xb0] sm:$0xf] %vm1577_vm7, %v2000_v9  }
 0x16c   :  { %3097 = vrot.lane.b32.xlu1 %v3096_v1, %s5710_s16  ;;  %2005 = vst.msk [vmem:[#allocation0 + $0xb4] sm:$0xf0] %vm1577_vm7, %v2000_v9   ;;  %v3066_v13 = vsel %vm370_vm1, %v5414_v8, %v3061_v2  ;;  %v5424_v19 = vld [vmem:[%s9464_s0 + $0x1c3] ss:$16 sm:%s3130_s14]   ;;  %s3108_s6 = smov 12  ;;  %s3113_s30 = smov 48  ;;  %v2199_v9 = vpop.permute.xlu1 %2198  }
 0x16d   :  { %v5425_v28 = vld [vmem:[%s9464_s0 + $0x1c3] ss:$16 sm:%s3133_s15]   ;;  %v3071_v15 = vsel %vm375_vm2, %v5415_v10, %v3066_v13  ;;  %v5426_v11 = vld [vmem:[%s9464_s0 + $0x18b] ss:$16 sm:%s3138_s22]   ;;  %s3118_s5 = smov 192  ;;  %s3180_s11 = smov 3 }
 0x16e   :  { %v3136_v49 = vsel %vm365_vm0, %v5425_v28, %v5424_v19  ;;  %v5427_v6 = vld [vmem:[%s9464_s0 + $0x18b] ss:$16 sm:%s3143_s23]   ;;  %3072 = vrot.lane.b32.xlu0 %v3071_v15, %s5710_s16  ;;  %s3183_s9 = smov 12  ;;  %1978 = vst.msk [vmem:[#allocation0 + $0x90] sm:$0xf] %vm1577_vm7, %v1975_v17   ;;  %s3188_s17 = smov 48 }
 0x16f   :  { %v3141_v18 = vsel %vm370_vm1, %v5426_v11, %v3136_v49  ;;  %v5420_v20 = vld [vmem:[%s9464_s0 + $0x143] ss:$16 sm:%s3105_s26]   ;;  %1980 = vst.msk [vmem:[#allocation0 + $0x94] sm:$0xf0] %vm1577_vm7, %v1975_v17   ;;  %v5422_v27 = vld [vmem:[%s9464_s0 + $0x10b] ss:$16 sm:%s3113_s30]   ;;  %v2175_v17 = vpop.permute.xlu0 %2174  }
 0x170   :  { %v3146_v38 = vsel %vm375_vm2, %v5427_v6, %v3141_v18  ;;  %v5421_v25 = vld [vmem:[%s9464_s0 + $0x143] ss:$16 sm:%s3108_s6]   ;;  %s3193_s18 = smov 192  ;;  %v5423_v31 = vld [vmem:[%s9464_s0 + $0x10b] ss:$16 sm:%s3118_s5]   ;;  %s3155_s22 = smov 3 }
 0x171   :  { %3147 = vrot.lane.b32.xlu1 %v3146_v38, %s5710_s16  ;;  %v3111_v30 = vsel %vm365_vm0, %v5421_v25, %v5420_v20  ;;  %2053 = vst.msk [vmem:[#allocation0 + $0xf0] sm:$0xf] %vm1577_vm7, %v2050_v23   ;;  %2055 = vst.msk [vmem:[#allocation0 + $0xf4] sm:$0xf0] %vm1577_vm7, %v2050_v23   ;;  %v5432_v36 = vld [vmem:[%s9464_s0 + $0x2c3] ss:$16 sm:%s3180_s11]   ;;  %v2249_v23 = vpop.permute.xlu1 %2248  }
 0x172   :  { %v3116_v54 = vsel %vm370_vm1, %v5422_v27, %v3111_v30  ;;  %v5433_v52 = vld [vmem:[%s9464_s0 + $0x2c3] ss:$16 sm:%s3183_s9]   ;;  %s3158_s27 = smov 12  ;;  %s3163_s28 = smov 48  ;;  %v5434_v26 = vld [vmem:[%s9464_s0 + $0x28b] ss:$16 sm:%s3188_s17]  }
 0x173   :  { %v3121_v32 = vsel %vm375_vm2, %v5423_v31, %v3116_v54  ;;  %v3186_v29 = vsel %vm365_vm0, %v5433_v52, %v5432_v36  ;;  %v5435_v33 = vld [vmem:[%s9464_s0 + $0x28b] ss:$16 sm:%s3193_s18]   ;;  %s3168_s19 = smov 192  ;;  %v5428_v34 = vld [vmem:[%s9464_s0 + $0x243] ss:$16 sm:%s3155_s22]   ;;  %s3230_s4 = smov 3 }
 0x174   :  { %3122 = vrot.lane.b32.xlu0 %v3121_v32, %s5710_s16  ;;  %v3191_v21 = vsel %vm370_vm1, %v5434_v26, %v3186_v29  ;;  %s3233_s5 = smov 12  ;;  %2028 = vst.msk [vmem:[#allocation0 + $0xd0] sm:$0xf] %vm1577_vm7, %v2025_v47   ;;  %2030 = vst.msk [vmem:[#allocation0 + $0xd4] sm:$0xf0] %vm1577_vm7, %v2025_v47   ;;  %s3238_s10 = smov 48  ;;  %v2224_v47 = vpop.permute.xlu0 %2223  }
 0x175   :  { %v3196_v39 = vsel %vm375_vm2, %v5435_v33, %v3191_v21  ;;  %v5429_v37 = vld [vmem:[%s9464_s0 + $0x243] ss:$16 sm:%s3158_s27]   ;;  %v5430_v61 = vld [vmem:[%s9464_s0 + $0x20b] ss:$16 sm:%s3163_s28]   ;;  %s3243_s12 = smov 192  ;;  %s3205_s17 = smov 3 }
 0x176   :  { %3197 = vrot.lane.b32.xlu1 %v3196_v39, %s5710_s16  ;;  %v3161_v41 = vsel %vm365_vm0, %v5429_v37, %v5428_v34  ;;  %v5431_v40 = vld [vmem:[%s9464_s0 + $0x20b] ss:$16 sm:%s3168_s19]   ;;  %2103 = vst.msk [vmem:[#allocation0 + $0x130] sm:$0xf] %vm1577_vm7, %v2100_v14   ;;  %2105 = vst.msk [vmem:[#allocation0 + $0x134] sm:$0xf0] %vm1577_vm7, %v2100_v14   ;;  %v2299_v14 = vpop.permute.xlu1 %2298  }
 0x177   :  { %v3166_v12 = vsel %vm370_vm1, %v5430_v61, %v3161_v41  ;;  %v5440_v43 = vld [vmem:[%s9464_s0 + $0x3c3] ss:$16 sm:%s3230_s4]   ;;  %s3208_s23 = smov 12  ;;  %s3213_s24 = smov 48  ;;  %v5442_v22 = vld [vmem:[%s9464_s0 + $0x38b] ss:$16 sm:%s3238_s10]  }
 0x178   :  { %v5441_v46 = vld [vmem:[%s9464_s0 + $0x3c3] ss:$16 sm:%s3233_s5]   ;;  %v3171_v48 = vsel %vm375_vm2, %v5431_v40, %v3166_v12  ;;  %v5443_v53 = vld [vmem:[%s9464_s0 + $0x38b] ss:$16 sm:%s3243_s12]   ;;  %s3218_s13 = smov 192  ;;  %s3280_s30 = smov 3 }
 0x179   :  { %v3236_v50 = vsel %vm365_vm0, %v5441_v46, %v5440_v43  ;;  %3172 = vrot.lane.b32.xlu0 %v3171_v48, %s5710_s16  ;;  %v5436_v42 = vld [vmem:[%s9464_s0 + $0x343] ss:$16 sm:%s3205_s17]   ;;  %s3283_s19 = smov 12  ;;  %2078 = vst.msk [vmem:[#allocation0 + $0x110] sm:$0xf] %vm1577_vm7, %v2075_v55   ;;  %s3288_s7 = smov 48 }
 0x17a   :  { %v3241_v45 = vsel %vm370_vm1, %v5442_v22, %v3236_v50  ;;  %2080 = vst.msk [vmem:[#allocation0 + $0x114] sm:$0xf0] %vm1577_vm7, %v2075_v55   ;;  %v5437_v57 = vld [vmem:[%s9464_s0 + $0x343] ss:$16 sm:%s3208_s23]   ;;  %v5438_v62 = vld [vmem:[%s9464_s0 + $0x30b] ss:$16 sm:%s3213_s24]   ;;  %v2274_v55 = vpop.permute.xlu0 %2273  }
 0x17b   :  { %v3246_v60 = vsel %vm375_vm2, %v5443_v53, %v3241_v45  ;;  %s3293_s8 = smov 192  ;;  %v3211_v51 = vsel %vm365_vm0, %v5437_v57, %v5436_v42  ;;  %v5439_v58 = vld [vmem:[%s9464_s0 + $0x30b] ss:$16 sm:%s3218_s13]   ;;  %s3255_s10 = smov 3  ;;  %2153 = vst.msk [vmem:[#allocation0 + $0x170] sm:$0xf] %vm1577_vm7, %v2150_v56  }
 0x17c   :  { %3247 = vrot.lane.b32.xlu1 %v3246_v60, %s5710_s16  ;;  %2155 = vst.msk [vmem:[#allocation0 + $0x174] sm:$0xf0] %vm1577_vm7, %v2150_v56   ;;  %v3216_v59 = vsel %vm370_vm1, %v5438_v62, %v3211_v51  ;;  %v5448_v63 = vld [vmem:[%s9464_s0 + $0x4c3] ss:$16 sm:%s3280_s30]   ;;  %s3258_s18 = smov 12  ;;  %s3263_s20 = smov 48  ;;  %v2349_v56 = vpop.permute.xlu1 %2348  }
 0x17d   :  { %v5449_v0 = vld [vmem:[%s9464_s0 + $0x4c3] ss:$16 sm:%s3283_s19]   ;;  %v3221_v3 = vsel %vm375_vm2, %v5439_v58, %v3216_v59  ;;  %v5450_v44 = vld [vmem:[%s9464_s0 + $0x48b] ss:$16 sm:%s3288_s7]   ;;  %s3268_s25 = smov 192  ;;  %s3330_s28 = smov 3 }
 0x17e   :  { %v3286_v4 = vsel %vm365_vm0, %v5449_v0, %v5448_v63  ;;  %v5451_v16 = vld [vmem:[%s9464_s0 + $0x48b] ss:$16 sm:%s3293_s8]   ;;  %3222 = vrot.lane.b32.xlu0 %v3221_v3, %s5710_s16  ;;  %s3333_s13 = smov 12  ;;  %2128 = vst.msk [vmem:[#allocation0 + $0x150] sm:$0xf] %vm1577_vm7, %v2125_v35   ;;  %s3338_s2 = smov 48 }
 0x17f   :  { %v3291_v24 = vsel %vm370_vm1, %v5450_v44, %v3286_v4  ;;  %v5444_v5 = vld [vmem:[%s9464_s0 + $0x443] ss:$16 sm:%s3255_s10]   ;;  %2130 = vst.msk [vmem:[#allocation0 + $0x154] sm:$0xf0] %vm1577_vm7, %v2125_v35   ;;  %v5446_v8 = vld [vmem:[%s9464_s0 + $0x40b] ss:$16 sm:%s3263_s20]   ;;  %v2324_v35 = vpop.permute.xlu0 %2323  }
 0x180   :  { %v3296_v1 = vsel %vm375_vm2, %v5451_v16, %v3291_v24  ;;  %v5445_v7 = vld [vmem:[%s9464_s0 + $0x443] ss:$16 sm:%s3258_s18]   ;;  %s3343_s3 = smov 192  ;;  %v5447_v10 = vld [vmem:[%s9464_s0 + $0x40b] ss:$16 sm:%s3268_s25]   ;;  %s3305_s7 = smov 3 }
 0x181   :  { %3297 = vrot.lane.b32.xlu1 %v3296_v1, %s5710_s16  ;;  %v3261_v2 = vsel %vm365_vm0, %v5445_v7, %v5444_v5  ;;  %2202 = vst.msk [vmem:[#allocation0 + $0x20] sm:$0xf] %vm2176_vm8, %v2199_v9   ;;  %2204 = vst.msk [vmem:[#allocation0 + $0x24] sm:$0xf0] %vm2176_vm8, %v2199_v9   ;;  %v5456_v19 = vld [vmem:[%s9464_s0 + $0x5c3] ss:$16 sm:%s3330_s28]   ;;  %v2399_v9 = vpop.permute.xlu1 %2398  }
 0x182   :  { %v3266_v13 = vsel %vm370_vm1, %v5446_v8, %v3261_v2  ;;  %v5457_v28 = vld [vmem:[%s9464_s0 + $0x5c3] ss:$16 sm:%s3333_s13]   ;;  %s3308_s12 = smov 12  ;;  %s3313_s14 = smov 48  ;;  %v5458_v11 = vld [vmem:[%s9464_s0 + $0x58b] ss:$16 sm:%s3338_s2]  }
 0x183   :  { %v3271_v15 = vsel %vm375_vm2, %v5447_v10, %v3266_v13  ;;  %v3336_v49 = vsel %vm365_vm0, %v5457_v28, %v5456_v19  ;;  %v5459_v6 = vld [vmem:[%s9464_s0 + $0x58b] ss:$16 sm:%s3343_s3]   ;;  %s3318_s21 = smov 192  ;;  %v5452_v20 = vld [vmem:[%s9464_s0 + $0x543] ss:$16 sm:%s3305_s7]   ;;  %s3379_s24 = smov 3 }
 0x184   :  { %3272 = vrot.lane.b32.xlu0 %v3271_v15, %s5710_s16  ;;  %v3341_v18 = vsel %vm370_vm1, %v5458_v11, %v3336_v49  ;;  %s3382_s25 = smov 12  ;;  %2177 = vst.msk [vmem:[#allocation0] sm:$0xf] %vm2176_vm8, %v2175_v17   ;;  %2179 = vst.msk [vmem:[#allocation0 + $0x4] sm:$0xf0] %vm2176_vm8, %v2175_v17   ;;  %s3387_s29 = smov 48  ;;  %v2374_v17 = vpop.permute.xlu0 %2373  }
 0x185   :  { %v3346_v38 = vsel %vm375_vm2, %v5459_v6, %v3341_v18  ;;  %v5453_v25 = vld [vmem:[%s9464_s0 + $0x543] ss:$16 sm:%s3308_s12]   ;;  %v5454_v27 = vld [vmem:[%s9464_s0 + $0x50b] ss:$16 sm:%s3313_s14]   ;;  %s3392_s6 = smov 192  ;;  %s3355_s2 = smov 3 }
 0x186   :  { %3347 = vrot.lane.b32.xlu1 %v3346_v38, %s5710_s16  ;;  %v3311_v30 = vsel %vm365_vm0, %v5453_v25, %v5452_v20  ;;  %v5455_v31 = vld [vmem:[%s9464_s0 + $0x50b] ss:$16 sm:%s3318_s21]   ;;  %2252 = vst.msk [vmem:[#allocation0 + $0x60] sm:$0xf] %vm2176_vm8, %v2249_v23   ;;  %2254 = vst.msk [vmem:[#allocation0 + $0x64] sm:$0xf0] %vm2176_vm8, %v2249_v23   ;;  %v2449_v23 = vpop.permute.xlu1 %2448  }
 0x187   :  { %v3316_v54 = vsel %vm370_vm1, %v5454_v27, %v3311_v30  ;;  %v5464_v36 = vld [vmem:[%s9464_s0 + $0x82] ss:$16 sm:%s3379_s24]   ;;  %s3358_s8 = smov 12  ;;  %s3363_s11 = smov 48  ;;  %v5466_v26 = vld [vmem:[%s9464_s0 + $0x4a] ss:$16 sm:%s3387_s29]  }
 0x188   :  { %v5465_v52 = vld [vmem:[%s9464_s0 + $0x82] ss:$16 sm:%s3382_s25]   ;;  %v3321_v32 = vsel %vm375_vm2, %v5455_v31, %v3316_v54  ;;  %v5467_v33 = vld [vmem:[%s9464_s0 + $0x4a] ss:$16 sm:%s3392_s6]   ;;  %s3368_s15 = smov 192  ;;  %s3429_s18 = smov 3 }
 0x189   :  { %v3385_v29 = vsel %vm365_vm0, %v5465_v52, %v5464_v36  ;;  %3322 = vrot.lane.b32.xlu0 %v3321_v32, %s5710_s16  ;;  %v5460_v34 = vld [vmem:[%s9464_s0 + $0x2] ss:$16 sm:%s3355_s2]   ;;  %s3432_s20 = smov 12  ;;  %2227 = vst.msk [vmem:[#allocation0 + $0x40] sm:$0xf] %vm2176_vm8, %v2224_v47   ;;  %s3437_s25 = smov 48 }
 0x18a   :  { %v3390_v21 = vsel %vm370_vm1, %v5466_v26, %v3385_v29  ;;  %2229 = vst.msk [vmem:[#allocation0 + $0x44] sm:$0xf0] %vm2176_vm8, %v2224_v47   ;;  %v5461_v37 = vld [vmem:[%s9464_s0 + $0x2] ss:$16 sm:%s3358_s8]   ;;  %v5462_v61 = vld [vmem:[%s9464_s0 - $0x36] ss:$16 sm:%s3363_s11]   ;;  %v2424_v47 = vpop.permute.xlu0 %2423  }
 0x18b   :  { %v3395_v39 = vsel %vm375_vm2, %v5467_v33, %v3390_v21  ;;  %s3442_s26 = smov 192  ;;  %s5711_s27 = smov 32   ;;  %v3361_v41 = vsel %vm365_vm0, %v5461_v37, %v5460_v34  ;;  %v5463_v40 = vld [vmem:[%s9464_s0 - $0x36] ss:$16 sm:%s3368_s15]   ;;  %2302 = vst.msk [vmem:[#allocation0 + $0xa0] sm:$0xf] %vm2176_vm8, %v2299_v14  }
 0x18c   :  { %3396 = vrot.lane.b32.xlu1 %v3395_v39, %s5711_s27  ;;  %s3404_s29 = smov 3  ;;  %2304 = vst.msk [vmem:[#allocation0 + $0xa4] sm:$0xf0] %vm2176_vm8, %v2299_v14   ;;  %v3366_v12 = vsel %vm370_vm1, %v5462_v61, %v3361_v41  ;;  %v5472_v43 = vld [vmem:[%s9464_s0 + $0x182] ss:$16 sm:%s3429_s18]   ;;  %s3407_s3 = smov 12  ;;  %v2499_v14 = vpop.permute.xlu1 %2498  }
 0x18d   :  { %v5473_v46 = vld [vmem:[%s9464_s0 + $0x182] ss:$16 sm:%s3432_s20]   ;;  %s3412_s4 = smov 48  ;;  %v3371_v48 = vsel %vm375_vm2, %v5463_v40, %v3366_v12  ;;  %v5474_v22 = vld [vmem:[%s9464_s0 + $0x14a] ss:$16 sm:%s3437_s25]   ;;  %s3417_s9 = smov 192 }
 0x18e   :  { %v3435_v50 = vsel %vm365_vm0, %v5473_v46, %v5472_v43  ;;  %v5475_v53 = vld [vmem:[%s9464_s0 + $0x14a] ss:$16 sm:%s3442_s26]   ;;  %3372 = vrot.lane.b32.xlu0 %v3371_v48, %s5711_s27  ;;  %s3479_s14 = smov 3  ;;  %s3482_s15 = smov 12  ;;  %2277 = vst.msk [vmem:[#allocation0 + $0x80] sm:$0xf] %vm2176_vm8, %v2274_v55  }
 0x18f   :  { %v3440_v45 = vsel %vm370_vm1, %v5474_v22, %v3435_v50  ;;  %v5468_v42 = vld [vmem:[%s9464_s0 + $0x102] ss:$16 sm:%s3404_s29]   ;;  %2279 = vst.msk [vmem:[#allocation0 + $0x84] sm:$0xf0] %vm2176_vm8, %v2274_v55   ;;  %v5470_v62 = vld [vmem:[%s9464_s0 + $0xca] ss:$16 sm:%s3412_s4]   ;;  %v2474_v55 = vpop.permute.xlu0 %2473  }
 0x190   :  { %v3445_v60 = vsel %vm375_vm2, %v5475_v53, %v3440_v45  ;;  %v5469_v57 = vld [vmem:[%s9464_s0 + $0x102] ss:$16 sm:%s3407_s3]   ;;  %s3487_s21 = smov 48  ;;  %s3492_s22 = smov 192  ;;  %v5471_v58 = vld [vmem:[%s9464_s0 + $0xca] ss:$16 sm:%s3417_s9]  }
 0x191   :  { %3446 = vrot.lane.b32.xlu1 %v3445_v60, %s5711_s27  ;;  %v3410_v51 = vsel %vm365_vm0, %v5469_v57, %v5468_v42  ;;  %s3454_s25 = smov 3  ;;  %2352 = vst.msk [vmem:[#allocation0 + $0xe0] sm:$0xf] %vm2176_vm8, %v2349_v56   ;;  %2354 = vst.msk [vmem:[#allocation0 + $0xe4] sm:$0xf0] %vm2176_vm8, %v2349_v56   ;;  %s3457_s6 = smov 12  ;;  %v2549_v56 = vpop.permute.xlu1 %2548  }
 0x192   :  { %v3415_v59 = vsel %vm370_vm1, %v5470_v62, %v3410_v51  ;;  %v5480_v63 = vld [vmem:[%s9464_s0 + $0x282] ss:$16 sm:%s3479_s14]   ;;  %s3462_s30 = smov 48  ;;  %v5482_v44 = vld [vmem:[%s9464_s0 + $0x24a] ss:$16 sm:%s3487_s21]   ;;  %s3467_s5 = smov 192 }
 0x193   :  { %v5481_v0 = vld [vmem:[%s9464_s0 + $0x282] ss:$16 sm:%s3482_s15]   ;;  %v3420_v3 = vsel %vm375_vm2, %v5471_v58, %v3415_v59  ;;  %v5483_v16 = vld [vmem:[%s9464_s0 + $0x24a] ss:$16 sm:%s3492_s22]   ;;  %s3529_s11 = smov 3  ;;  %s3532_s9 = smov 12 }
 0x194   :  { %v3485_v4 = vsel %vm365_vm0, %v5481_v0, %v5480_v63  ;;  %3421 = vrot.lane.b32.xlu0 %v3420_v3, %s5711_s27  ;;  %v5476_v5 = vld [vmem:[%s9464_s0 + $0x202] ss:$16 sm:%s3454_s25]   ;;  %2327 = vst.msk [vmem:[#allocation0 + $0xc0] sm:$0xf] %vm2176_vm8, %v2324_v35   ;;  %2329 = vst.msk [vmem:[#allocation0 + $0xc4] sm:$0xf0] %vm2176_vm8, %v2324_v35   ;;  %v2524_v35 = vpop.permute.xlu0 %2523  }
 0x195   :  { %v3490_v24 = vsel %vm370_vm1, %v5482_v44, %v3485_v4  ;;  %v5477_v7 = vld [vmem:[%s9464_s0 + $0x202] ss:$16 sm:%s3457_s6]   ;;  %v5478_v8 = vld [vmem:[%s9464_s0 + $0x1ca] ss:$16 sm:%s3462_s30]   ;;  %s3537_s16 = smov 48  ;;  %s3542_s17 = smov 192 }
 0x196   :  { %v3495_v1 = vsel %vm375_vm2, %v5483_v16, %v3490_v24  ;;  %v3460_v2 = vsel %vm365_vm0, %v5477_v7, %v5476_v5  ;;  %v5479_v10 = vld [vmem:[%s9464_s0 + $0x1ca] ss:$16 sm:%s3467_s5]   ;;  %s3504_s21 = smov 3  ;;  %2402 = vst.msk [vmem:[#allocation0 + $0x120] sm:$0xf] %vm2176_vm8, %v2399_v9   ;;  %s3507_s26 = smov 12 }
 0x197   :  { %3496 = vrot.lane.b32.xlu1 %v3495_v1, %s5711_s27  ;;  %2404 = vst.msk [vmem:[#allocation0 + $0x124] sm:$0xf0] %vm2176_vm8, %v2399_v9   ;;  %v3465_v13 = vsel %vm370_vm1, %v5478_v8, %v3460_v2  ;;  %v5488_v19 = vld [vmem:[%s9464_s0 + $0x382] ss:$16 sm:%s3529_s11]   ;;  %s3512_s28 = smov 48  ;;  %s3517_s19 = smov 192  ;;  %v2599_v9 = vpop.permute.xlu1 %2598  }
 0x198   :  { %v5489_v28 = vld [vmem:[%s9464_s0 + $0x382] ss:$16 sm:%s3532_s9]   ;;  %v3470_v15 = vsel %vm375_vm2, %v5479_v10, %v3465_v13  ;;  %v5490_v11 = vld [vmem:[%s9464_s0 + $0x34a] ss:$16 sm:%s3537_s16]   ;;  %s3579_s4 = smov 3  ;;  %s3582_s5 = smov 12 }
 0x199   :  { %v3535_v49 = vsel %vm365_vm0, %v5489_v28, %v5488_v19  ;;  %v5491_v6 = vld [vmem:[%s9464_s0 + $0x34a] ss:$16 sm:%s3542_s17]   ;;  %3471 = vrot.lane.b32.xlu0 %v3470_v15, %s5711_s27  ;;  %2377 = vst.msk [vmem:[#allocation0 + $0x100] sm:$0xf] %vm2176_vm8, %v2374_v17   ;;  %2379 = vst.msk [vmem:[#allocation0 + $0x104] sm:$0xf0] %vm2176_vm8, %v2374_v17   ;;  %v2574_v17 = vpop.permute.xlu0 %2573  }
 0x19a   :  { %v3540_v18 = vsel %vm370_vm1, %v5490_v11, %v3535_v49  ;;  %v5484_v20 = vld [vmem:[%s9464_s0 + $0x302] ss:$16 sm:%s3504_s21]   ;;  %v5486_v27 = vld [vmem:[%s9464_s0 + $0x2ca] ss:$16 sm:%s3512_s28]   ;;  %s3587_s10 = smov 48  ;;  %s3592_s12 = smov 192 }
 0x19b   :  { %v3545_v38 = vsel %vm375_vm2, %v5491_v6, %v3540_v18  ;;  %v5485_v25 = vld [vmem:[%s9464_s0 + $0x302] ss:$16 sm:%s3507_s26]   ;;  %v5487_v31 = vld [vmem:[%s9464_s0 + $0x2ca] ss:$16 sm:%s3517_s19]   ;;  %s3554_s16 = smov 3  ;;  %s3557_s22 = smov 12 }
 0x19c   :  { %3546 = vrot.lane.b32.xlu1 %v3545_v38, %s5711_s27  ;;  %v3510_v30 = vsel %vm365_vm0, %v5485_v25, %v5484_v20  ;;  %2452 = vst.msk [vmem:[#allocation0 + $0x160] sm:$0xf] %vm2176_vm8, %v2449_v23   ;;  %2454 = vst.msk [vmem:[#allocation0 + $0x164] sm:$0xf0] %vm2176_vm8, %v2449_v23   ;;  %v5496_v36 = vld [vmem:[%s9464_s0 + $0x482] ss:$16 sm:%s3579_s4]   ;;  %v2649_v23 = vpop.permute.xlu1 %2648  }
 0x19d   :  { %v3515_v54 = vsel %vm370_vm1, %v5486_v27, %v3510_v30  ;;  %v5497_v52 = vld [vmem:[%s9464_s0 + $0x482] ss:$16 sm:%s3582_s5]   ;;  %s3562_s23 = smov 48  ;;  %v5498_v26 = vld [vmem:[%s9464_s0 + $0x44a] ss:$16 sm:%s3587_s10]   ;;  %s3567_s13 = smov 192 }
 0x19e   :  { %v3520_v32 = vsel %vm375_vm2, %v5487_v31, %v3515_v54  ;;  %v3585_v29 = vsel %vm365_vm0, %v5497_v52, %v5496_v36  ;;  %v5499_v33 = vld [vmem:[%s9464_s0 + $0x44a] ss:$16 sm:%s3592_s12]   ;;  %v5492_v34 = vld [vmem:[%s9464_s0 + $0x402] ss:$16 sm:%s3554_s16]   ;;  %s3629_s30 = smov 3  ;;  %s3632_s19 = smov 12 }
 0x19f   :  { %3521 = vrot.lane.b32.xlu0 %v3520_v32, %s5711_s27  ;;  %v3590_v21 = vsel %vm370_vm1, %v5498_v26, %v3585_v29  ;;  %2427 = vst.msk [vmem:[#allocation0 + $0x140] sm:$0xf] %vm2176_vm8, %v2424_v47   ;;  %2429 = vst.msk [vmem:[#allocation0 + $0x144] sm:$0xf0] %vm2176_vm8, %v2424_v47   ;;  %v5493_v37 = vld [vmem:[%s9464_s0 + $0x402] ss:$16 sm:%s3557_s22]   ;;  %v2624_v47 = vpop.permute.xlu0 %2623  }
 0x1a0   :  { %v3595_v39 = vsel %vm375_vm2, %v5499_v33, %v3590_v21  ;;  %v5494_v61 = vld [vmem:[%s9464_s0 + $0x3ca] ss:$16 sm:%s3562_s23]   ;;  %s3637_s7 = smov 48  ;;  %s3642_s8 = smov 192  ;;  %v3560_v41 = vsel %vm365_vm0, %v5493_v37, %v5492_v34  ;;  %2502 = vst.msk [vmem:[#allocation0 + $0x30] sm:$0xf] %vm2176_vm8, %v2499_v14  }
 0x1a1   :  { %3596 = vrot.lane.b32.xlu1 %v3595_v39, %s5711_s27  ;;  %v5495_v40 = vld [vmem:[%s9464_s0 + $0x3ca] ss:$16 sm:%s3567_s13]   ;;  %s3604_s10 = smov 3  ;;  %2504 = vst.msk [vmem:[#allocation0 + $0x34] sm:$0xf0] %vm2176_vm8, %v2499_v14   ;;  %v3565_v12 = vsel %vm370_vm1, %v5494_v61, %v3560_v41  ;;  %s3607_s17 = smov 12  ;;  %v2699_v14 = vpop.permute.xlu1 %2698  }
 0x1a2   :  { %v5504_v43 = vld [vmem:[%s9464_s0 + $0x582] ss:$16 sm:%s3629_s30]   ;;  %s3612_s18 = smov 48  ;;  %v3570_v48 = vsel %vm375_vm2, %v5495_v40, %v3565_v12  ;;  %v5506_v22 = vld [vmem:[%s9464_s0 + $0x54a] ss:$16 sm:%s3637_s7]   ;;  %s3617_s24 = smov 192 }
 0x1a3   :  { %v5505_v46 = vld [vmem:[%s9464_s0 + $0x582] ss:$16 sm:%s3632_s19]   ;;  %v5507_v53 = vld [vmem:[%s9464_s0 + $0x54a] ss:$16 sm:%s3642_s8]   ;;  %s3679_s28 = smov 3  ;;  %s3682_s13 = smov 12 }
 0x1a4   :  { %v3635_v50 = vsel %vm365_vm0, %v5505_v46, %v5504_v43  ;;  %3571 = vrot.lane.b32.xlu0 %v3570_v48, %s5711_s27  ;;  %v5500_v42 = vld [vmem:[%s9464_s0 + $0x502] ss:$16 sm:%s3604_s10]   ;;  %2477 = vst.msk [vmem:[#allocation0 + $0x10] sm:$0xf] %vm2176_vm8, %v2474_v55   ;;  %2479 = vst.msk [vmem:[#allocation0 + $0x14] sm:$0xf0] %vm2176_vm8, %v2474_v55   ;;  %v2674_v55 = vpop.permute.xlu0 %2673  }
 0x1a5   :  { %v3640_v45 = vsel %vm370_vm1, %v5506_v22, %v3635_v50  ;;  %v5501_v57 = vld [vmem:[%s9464_s0 + $0x502] ss:$16 sm:%s3607_s17]   ;;  %v5502_v62 = vld [vmem:[%s9464_s0 + $0x4ca] ss:$16 sm:%s3612_s18]   ;;  %s3687_s2 = smov 48  ;;  %s3692_s3 = smov 192 }
 0x1a6   :  { %v3645_v60 = vsel %vm375_vm2, %v5507_v53, %v3640_v45  ;;  %v3610_v51 = vsel %vm365_vm0, %v5501_v57, %v5500_v42  ;;  %v5503_v58 = vld [vmem:[%s9464_s0 + $0x4ca] ss:$16 sm:%s3617_s24]   ;;  %s3654_s7 = smov 3  ;;  %2552 = vst.msk [vmem:[#allocation0 + $0x70] sm:$0xf] %vm2176_vm8, %v2549_v56   ;;  %s3657_s12 = smov 12 }
 0x1a7   :  { %3646 = vrot.lane.b32.xlu1 %v3645_v60, %s5711_s27  ;;  %2554 = vst.msk [vmem:[#allocation0 + $0x74] sm:$0xf0] %vm2176_vm8, %v2549_v56   ;;  %v3615_v59 = vsel %vm370_vm1, %v5502_v62, %v3610_v51  ;;  %v5512_v63 = vld [vmem:[%s9464_s0 + $0xc2] ss:$16 sm:%s3679_s28]   ;;  %s3662_s14 = smov 48  ;;  %s3667_s20 = smov 192  ;;  %v2749_v56 = vpop.permute.xlu1 %2748  }
 0x1a8   :  { %v5513_v0 = vld [vmem:[%s9464_s0 + $0xc2] ss:$16 sm:%s3682_s13]   ;;  %v3620_v3 = vsel %vm375_vm2, %v5503_v58, %v3615_v59  ;;  %v5514_v44 = vld [vmem:[%s9464_s0 + $0x8a] ss:$16 sm:%s3687_s2]   ;;  %s3729_s23 = smov 3  ;;  %s3732_s24 = smov 12 }
 0x1a9   :  { %v3685_v4 = vsel %vm365_vm0, %v5513_v0, %v5512_v63  ;;  %v5515_v16 = vld [vmem:[%s9464_s0 + $0x8a] ss:$16 sm:%s3692_s3]   ;;  %3621 = vrot.lane.b32.xlu0 %v3620_v3, %s5711_s27  ;;  %2527 = vst.msk [vmem:[#allocation0 + $0x50] sm:$0xf] %vm2176_vm8, %v2524_v35   ;;  %2529 = vst.msk [vmem:[#allocation0 + $0x54] sm:$0xf0] %vm2176_vm8, %v2524_v35   ;;  %v2724_v35 = vpop.permute.xlu0 %2723  }
 0x1aa   :  { %v3690_v24 = vsel %vm370_vm1, %v5514_v44, %v3685_v4  ;;  %v5508_v5 = vld [vmem:[%s9464_s0 + $0x42] ss:$16 sm:%s3654_s7]   ;;  %v5510_v8 = vld [vmem:[%s9464_s0 + $0xa] ss:$16 sm:%s3662_s14]   ;;  %s3737_s29 = smov 48  ;;  %s3742_s6 = smov 192 }
 0x1ab   :  { %v3695_v1 = vsel %vm375_vm2, %v5515_v16, %v3690_v24  ;;  %v5509_v7 = vld [vmem:[%s9464_s0 + $0x42] ss:$16 sm:%s3657_s12]   ;;  %v5511_v10 = vld [vmem:[%s9464_s0 + $0xa] ss:$16 sm:%s3667_s20]   ;;  %s3704_s2 = smov 3  ;;  %s3707_s8 = smov 12 }
 0x1ac   :  { %3696 = vrot.lane.b32.xlu1 %v3695_v1, %s5711_s27  ;;  %v3660_v2 = vsel %vm365_vm0, %v5509_v7, %v5508_v5  ;;  %2602 = vst.msk [vmem:[#allocation0 + $0xb0] sm:$0xf] %vm2176_vm8, %v2599_v9   ;;  %2604 = vst.msk [vmem:[#allocation0 + $0xb4] sm:$0xf0] %vm2176_vm8, %v2599_v9   ;;  %v5520_v19 = vld [vmem:[%s9464_s0 + $0x1c2] ss:$16 sm:%s3729_s23]  }
 0x1ad   :  { %v3665_v13 = vsel %vm370_vm1, %v5510_v8, %v3660_v2  ;;  %v5521_v28 = vld [vmem:[%s9464_s0 + $0x1c2] ss:$16 sm:%s3732_s24]   ;;  %s3712_s11 = smov 48  ;;  %v5522_v11 = vld [vmem:[%s9464_s0 + $0x18a] ss:$16 sm:%s3737_s29]   ;;  %s3717_s15 = smov 192 }
 0x1ae   :  { %v3670_v15 = vsel %vm375_vm2, %v5511_v10, %v3665_v13  ;;  %v3735_v49 = vsel %vm365_vm0, %v5521_v28, %v5520_v19  ;;  %v5523_v6 = vld [vmem:[%s9464_s0 + $0x18a] ss:$16 sm:%s3742_s6]   ;;  %v5516_v20 = vld [vmem:[%s9464_s0 + $0x142] ss:$16 sm:%s3704_s2]   ;;  %s3779_s18 = smov 3  ;;  %s3782_s20 = smov 12  ;;  %v2798_v10 = vpop.permute.xlu1 %2797  }
 0x1af   :  { %3671 = vrot.lane.b32.xlu0 %v3670_v15, %s5711_s27  ;;  %v3740_v18 = vsel %vm370_vm1, %v5522_v11, %v3735_v49  ;;  %2577 = vst.msk [vmem:[#allocation0 + $0x90] sm:$0xf] %vm2176_vm8, %v2574_v17   ;;  %2579 = vst.msk [vmem:[#allocation0 + $0x94] sm:$0xf0] %vm2176_vm8, %v2574_v17   ;;  %v5517_v25 = vld [vmem:[%s9464_s0 + $0x142] ss:$16 sm:%s3707_s8]  }
 0x1b0   :  { %v3745_v38 = vsel %vm375_vm2, %v5523_v6, %v3740_v18  ;;  %v5518_v27 = vld [vmem:[%s9464_s0 + $0x10a] ss:$16 sm:%s3712_s11]   ;;  %s3787_s25 = smov 48  ;;  %s3792_s26 = smov 192  ;;  %v3710_v30 = vsel %vm365_vm0, %v5517_v25, %v5516_v20  ;;  %2652 = vst.msk [vmem:[#allocation0 + $0xf0] sm:$0xf] %vm2176_vm8, %v2649_v23   ;;  %v2774_v20 = vpop.permute.xlu0 %2773  }
 0x1b1   :  { %3746 = vrot.lane.b32.xlu1 %v3745_v38, %s5711_s27  ;;  %v5519_v31 = vld [vmem:[%s9464_s0 + $0x10a] ss:$16 sm:%s3717_s15]   ;;  %s3754_s29 = smov 3  ;;  %2654 = vst.msk [vmem:[#allocation0 + $0xf4] sm:$0xf0] %vm2176_vm8, %v2649_v23   ;;  %v3715_v54 = vsel %vm370_vm1, %v5518_v27, %v3710_v30  ;;  %s3757_s3 = smov 12 }
 0x1b2   :  { %v5528_v36 = vld [vmem:[%s9464_s0 + $0x2c2] ss:$16 sm:%s3779_s18]   ;;  %s3762_s4 = smov 48  ;;  %v3720_v32 = vsel %vm375_vm2, %v5519_v31, %v3715_v54  ;;  %v5530_v26 = vld [vmem:[%s9464_s0 + $0x28a] ss:$16 sm:%s3787_s25]   ;;  %s3767_s9 = smov 192 }
 0x1b3   :  { %v5529_v52 = vld [vmem:[%s9464_s0 + $0x2c2] ss:$16 sm:%s3782_s20]   ;;  %v5531_v33 = vld [vmem:[%s9464_s0 + $0x28a] ss:$16 sm:%s3792_s26]   ;;  %s3829_s14 = smov 3  ;;  %s3832_s15 = smov 12 }
 0x1b4   :  { %v3785_v29 = vsel %vm365_vm0, %v5529_v52, %v5528_v36  ;;  %3721 = vrot.lane.b32.xlu0 %v3720_v32, %s5711_s27  ;;  %v5524_v34 = vld [vmem:[%s9464_s0 + $0x242] ss:$16 sm:%s3754_s29]   ;;  %2627 = vst.msk [vmem:[#allocation0 + $0xd0] sm:$0xf] %vm2176_vm8, %v2624_v47   ;;  %2629 = vst.msk [vmem:[#allocation0 + $0xd4] sm:$0xf0] %vm2176_vm8, %v2624_v47   ;;  %v2848_v52 = vpop.permute.xlu1 %2847  }
 0x1b5   :  { %v3790_v21 = vsel %vm370_vm1, %v5530_v26, %v3785_v29  ;;  %v5525_v37 = vld [vmem:[%s9464_s0 + $0x242] ss:$16 sm:%s3757_s3]   ;;  %v5526_v61 = vld [vmem:[%s9464_s0 + $0x20a] ss:$16 sm:%s3762_s4]   ;;  %s3837_s21 = smov 48  ;;  %s3842_s22 = smov 192 }
 0x1b6   :  { %v3795_v39 = vsel %vm375_vm2, %v5531_v33, %v3790_v21  ;;  %v3760_v41 = vsel %vm365_vm0, %v5525_v37, %v5524_v34  ;;  %v5527_v40 = vld [vmem:[%s9464_s0 + $0x20a] ss:$16 sm:%s3767_s9]   ;;  %s3804_s25 = smov 3  ;;  %2702 = vst.msk [vmem:[#allocation0 + $0x130] sm:$0xf] %vm2176_vm8, %v2699_v14   ;;  %s3807_s6 = smov 12 }
 0x1b7   :  { %3796 = vrot.lane.b32.xlu1 %v3795_v39, %s5711_s27  ;;  %2704 = vst.msk [vmem:[#allocation0 + $0x134] sm:$0xf0] %vm2176_vm8, %v2699_v14   ;;  %v3765_v12 = vsel %vm370_vm1, %v5526_v61, %v3760_v41  ;;  %v5536_v43 = vld [vmem:[%s9464_s0 + $0x3c2] ss:$16 sm:%s3829_s14]   ;;  %s3812_s30 = smov 48  ;;  %s3817_s5 = smov 192  ;;  %v2823_v61 = vpop.permute.xlu0 %2822  }
 0x1b8   :  { %v5537_v46 = vld [vmem:[%s9464_s0 + $0x3c2] ss:$16 sm:%s3832_s15]   ;;  %v3770_v48 = vsel %vm375_vm2, %v5527_v40, %v3765_v12  ;;  %v5538_v22 = vld [vmem:[%s9464_s0 + $0x38a] ss:$16 sm:%s3837_s21]   ;;  %s3879_s11 = smov 3  ;;  %s3882_s9 = smov 12 }
 0x1b9   :  { %v3835_v50 = vsel %vm365_vm0, %v5537_v46, %v5536_v43  ;;  %v5539_v53 = vld [vmem:[%s9464_s0 + $0x38a] ss:$16 sm:%s3842_s22]   ;;  %3771 = vrot.lane.b32.xlu0 %v3770_v48, %s5711_s27  ;;  %2677 = vst.msk [vmem:[#allocation0 + $0x110] sm:$0xf] %vm2176_vm8, %v2674_v55   ;;  %2679 = vst.msk [vmem:[#allocation0 + $0x114] sm:$0xf0] %vm2176_vm8, %v2674_v55  }
 0x1ba   :  { %v3840_v45 = vsel %vm370_vm1, %v5538_v22, %v3835_v50  ;;  %v5532_v42 = vld [vmem:[%s9464_s0 + $0x342] ss:$16 sm:%s3804_s25]   ;;  %v5534_v62 = vld [vmem:[%s9464_s0 + $0x30a] ss:$16 sm:%s3812_s30]   ;;  %s3887_s16 = smov 48  ;;  %s3892_s17 = smov 192 }
 0x1bb   :  { %v3845_v60 = vsel %vm375_vm2, %v5539_v53, %v3840_v45  ;;  %v5533_v57 = vld [vmem:[%s9464_s0 + $0x342] ss:$16 sm:%s3807_s6]   ;;  %v5535_v58 = vld [vmem:[%s9464_s0 + $0x30a] ss:$16 sm:%s3817_s5]   ;;  %s3854_s21 = smov 3  ;;  %s3857_s26 = smov 12  ;;  %v2898_v53 = vpop.permute.xlu1 %2897  }
 0x1bc   :  { %3846 = vrot.lane.b32.xlu1 %v3845_v60, %s5711_s27  ;;  %v3810_v51 = vsel %vm365_vm0, %v5533_v57, %v5532_v42  ;;  %2752 = vst.msk [vmem:[#allocation0 + $0x170] sm:$0xf] %vm2176_vm8, %v2749_v56   ;;  %2754 = vst.msk [vmem:[#allocation0 + $0x174] sm:$0xf0] %vm2176_vm8, %v2749_v56   ;;  %v5544_v63 = vld [vmem:[%s9464_s0 + $0x4c2] ss:$16 sm:%s3879_s11]  }
 0x1bd   :  { %v3815_v59 = vsel %vm370_vm1, %v5534_v62, %v3810_v51  ;;  %v5545_v0 = vld [vmem:[%s9464_s0 + $0x4c2] ss:$16 sm:%s3882_s9]   ;;  %s3862_s28 = smov 48  ;;  %v5546_v44 = vld [vmem:[%s9464_s0 + $0x48a] ss:$16 sm:%s3887_s16]   ;;  %s3867_s19 = smov 192  ;;  %v2873_v51 = vpop.permute.xlu0 %2872  }
 0x1be   :  { %v3820_v3 = vsel %vm375_vm2, %v5535_v58, %v3815_v59  ;;  %v3885_v4 = vsel %vm365_vm0, %v5545_v0, %v5544_v63  ;;  %v5547_v16 = vld [vmem:[%s9464_s0 + $0x48a] ss:$16 sm:%s3892_s17]   ;;  %v5540_v5 = vld [vmem:[%s9464_s0 + $0x442] ss:$16 sm:%s3854_s21]   ;;  %s3929_s4 = smov 3  ;;  %s3932_s5 = smov 12 }
 0x1bf   :  { %3821 = vrot.lane.b32.xlu0 %v3820_v3, %s5711_s27  ;;  %v3890_v24 = vsel %vm370_vm1, %v5546_v44, %v3885_v4  ;;  %2727 = vst.msk [vmem:[#allocation0 + $0x150] sm:$0xf] %vm2176_vm8, %v2724_v35   ;;  %2729 = vst.msk [vmem:[#allocation0 + $0x154] sm:$0xf0] %vm2176_vm8, %v2724_v35   ;;  %v5541_v7 = vld [vmem:[%s9464_s0 + $0x442] ss:$16 sm:%s3857_s26]  }
 0x1c0   :  { %v3895_v1 = vsel %vm375_vm2, %v5547_v16, %v3890_v24  ;;  %v5542_v8 = vld [vmem:[%s9464_s0 + $0x40a] ss:$16 sm:%s3862_s28]   ;;  %s3937_s10 = smov 48  ;;  %s3942_s12 = smov 192  ;;  %v3860_v9 = vsel %vm365_vm0, %v5541_v7, %v5540_v5  ;;  %v5552_v19 = vld [vmem:[%s9464_s0 + $0x5c2] ss:$16 sm:%s3929_s4]  }
 0x1c1   :  { %3896 = vrot.lane.b32.xlu1 %v3895_v1, %s5711_s27  ;;  %v5543_v2 = vld [vmem:[%s9464_s0 + $0x40a] ss:$16 sm:%s3867_s19]   ;;  %s3904_s16 = smov 3  ;;  %v3865_v13 = vsel %vm370_vm1, %v5542_v8, %v3860_v9  ;;  %s3907_s22 = smov 12  ;;  %2801 = vst.msk [vmem:[#allocation0 + $0x20] sm:$0xf] %vm2775_vm9, %v2798_v10  }
 0x1c2   :  { %v5553_v28 = vld [vmem:[%s9464_s0 + $0x5c2] ss:$16 sm:%s3932_s5]   ;;  %s3912_s23 = smov 48  ;;  %2803 = vst.msk [vmem:[#allocation0 + $0x24] sm:$0xf0] %vm2775_vm9, %v2798_v10   ;;  %v3870_v15 = vsel %vm375_vm2, %v5543_v2, %v3865_v13  ;;  %s3917_s13 = smov 192 }
 0x1c3   :  { %v3935_v49 = vsel %vm365_vm0, %v5553_v28, %v5552_v19  ;;  %v5554_v11 = vld [vmem:[%s9464_s0 + $0x58a] ss:$16 sm:%s3937_s10]   ;;  %3871 = vrot.lane.b32.xlu0 %v3870_v15, %s5711_s27  ;;  %s3978_s30 = smov 3  ;;  %s3981_s19 = smov 12  ;;  %2776 = vst.msk [vmem:[#allocation0] sm:$0xf] %vm2775_vm9, %v2774_v20  }
 0x1c4   :  { %v5555_v6 = vld [vmem:[%s9464_s0 + $0x58a] ss:$16 sm:%s3942_s12]   ;;  %v3940_v17 = vsel %vm370_vm1, %v5554_v11, %v3935_v49  ;;  %v5548_v18 = vld [vmem:[%s9464_s0 + $0x542] ss:$16 sm:%s3904_s16]   ;;  %s3986_s7 = smov 48  ;;  %s3991_s8 = smov 192  ;;  %v2948_v24 = vpop.permute.xlu1 %2947  }
 0x1c5   :  { %v3945_v38 = vsel %vm375_vm2, %v5555_v6, %v3940_v17  ;;  %v5549_v25 = vld [vmem:[%s9464_s0 + $0x542] ss:$16 sm:%s3907_s22]   ;;  %v5550_v27 = vld [vmem:[%s9464_s0 + $0x50a] ss:$16 sm:%s3912_s23]   ;;  %2778 = vst.msk [vmem:[#allocation0 + $0x4] sm:$0xf0] %vm2775_vm9, %v2774_v20  }
 0x1c6   :  { %3946 = vrot.lane.b32.xlu1 %v3945_v38, %s5711_s27  ;;  %v3910_v23 = vsel %vm365_vm0, %v5549_v25, %v5548_v18  ;;  %v5551_v30 = vld [vmem:[%s9464_s0 + $0x50a] ss:$16 sm:%s3917_s13]   ;;  %s3954_s10 = smov 3  ;;  %s3957_s17 = smov 12  ;;  %2851 = vst.msk [vmem:[#allocation0 + $0x60] sm:$0xf] %vm2775_vm9, %v2848_v52  }
 0x1c7   :  { %v3915_v31 = vsel %vm370_vm1, %v5550_v27, %v3910_v23  ;;  %v5560_v54 = vld [vmem:[%s9464_s0 + $0x81] ss:$16 sm:%s3978_s30]   ;;  %s3962_s18 = smov 48  ;;  %v5562_v26 = vld [vmem:[%s9464_s0 + $0x49] ss:$16 sm:%s3986_s7]   ;;  %s3967_s24 = smov 192  ;;  %v2923_v19 = vpop.permute.xlu0 %2922  }
 0x1c8   :  { %v5561_v36 = vld [vmem:[%s9464_s0 + $0x81] ss:$16 sm:%s3981_s19]   ;;  %v3920_v32 = vsel %vm375_vm2, %v5551_v30, %v3915_v31  ;;  %v5563_v33 = vld [vmem:[%s9464_s0 + $0x49] ss:$16 sm:%s3991_s8]   ;;  %2853 = vst.msk [vmem:[#allocation0 + $0x64] sm:$0xf0] %vm2775_vm9, %v2848_v52  }
 0x1c9   :  { %v3984_v29 = vsel %vm365_vm0, %v5561_v36, %v5560_v54  ;;  %3921 = vrot.lane.b32.xlu0 %v3920_v32, %s5711_s27  ;;  %v5556_v21 = vld [vmem:[%s9464_s0 + $0x1] ss:$16 sm:%s3954_s10]   ;;  %s4028_s26 = smov 3  ;;  %s4031_s28 = smov 12  ;;  %2826 = vst.msk [vmem:[#allocation0 + $0x40] sm:$0xf] %vm2775_vm9, %v2823_v61  }
 0x1ca   :  { %v3989_v47 = vsel %vm370_vm1, %v5562_v26, %v3984_v29  ;;  %v5557_v39 = vld [vmem:[%s9464_s0 + $0x1] ss:$16 sm:%s3957_s17]   ;;  %v5558_v37 = vld [vmem:[%s9464_s0 - $0x37] ss:$16 sm:%s3962_s18]   ;;  %s4036_s19 = smov 48  ;;  %s4041_s2 = smov 192 }
 0x1cb   :  { %v3994_v34 = vsel %vm375_vm2, %v5563_v33, %v3989_v47  ;;  %s5712_s3 = smov 16   ;;  %v3960_v14 = vsel %vm365_vm0, %v5557_v39, %v5556_v21  ;;  %v5559_v41 = vld [vmem:[%s9464_s0 - $0x37] ss:$16 sm:%s3967_s24]   ;;  %s4003_s7 = smov 3  ;;  %2828 = vst.msk [vmem:[#allocation0 + $0x44] sm:$0xf0] %vm2775_vm9, %v2823_v61  }
 0x1cc   :  { %3995 = vrot.lane.b32.xlu1 %v3994_v34, %s5712_s3  ;;  %v3965_v40 = vsel %vm370_vm1, %v5558_v37, %v3960_v14  ;;  %v5568_v12 = vld [vmem:[%s9464_s0 + $0x181] ss:$16 sm:%s4028_s26]   ;;  %s4006_s12 = smov 12  ;;  %s4011_s14 = smov 48  ;;  %2901 = vst.msk [vmem:[#allocation0 + $0xa0] sm:$0xf] %vm2775_vm9, %v2898_v53  }
 0x1cd   :  { %v5569_v43 = vld [vmem:[%s9464_s0 + $0x181] ss:$16 sm:%s4031_s28]   ;;  %v3970_v46 = vsel %vm375_vm2, %v5559_v41, %v3965_v40  ;;  %v5570_v50 = vld [vmem:[%s9464_s0 + $0x149] ss:$16 sm:%s4036_s19]   ;;  %s4016_s20 = smov 192  ;;  %s4078_s23 = smov 3 }
 0x1ce   :  { %v4034_v48 = vsel %vm365_vm0, %v5569_v43, %v5568_v12  ;;  %v5571_v22 = vld [vmem:[%s9464_s0 + $0x149] ss:$16 sm:%s4041_s2]   ;;  %3971 = vrot.lane.b32.xlu0 %v3970_v46, %s5712_s3  ;;  %s4081_s24 = smov 12  ;;  %2903 = vst.msk [vmem:[#allocation0 + $0xa4] sm:$0xf0] %vm2775_vm9, %v2898_v53   ;;  %s4086_s13 = smov 48 }
 0x1cf   :  { %v4039_v55 = vsel %vm370_vm1, %v5570_v50, %v4034_v48  ;;  %v5564_v45 = vld [vmem:[%s9464_s0 + $0x101] ss:$16 sm:%s4003_s7]   ;;  %v5566_v57 = vld [vmem:[%s9464_s0 + $0xc9] ss:$16 sm:%s4011_s14]   ;;  %s4091_s29 = smov 192  ;;  %s4053_s19 = smov 3 }
 0x1d0   :  { %v4044_v42 = vsel %vm375_vm2, %v5571_v22, %v4039_v55  ;;  %v5565_v60 = vld [vmem:[%s9464_s0 + $0x101] ss:$16 sm:%s4006_s12]   ;;  %v5567_v56 = vld [vmem:[%s9464_s0 + $0xc9] ss:$16 sm:%s4016_s20]   ;;  %s4056_s8 = smov 12  ;;  %s4061_s11 = smov 48 }
 0x1d1   :  { %4045 = vrot.lane.b32.xlu1 %v4044_v42, %s5712_s3  ;;  %v4009_v62 = vsel %vm365_vm0, %v5565_v60, %v5564_v45  ;;  %v5576_v59 = vld [vmem:[%s9464_s0 + $0x281] ss:$16 sm:%s4078_s23]   ;;  %2876 = vst.msk [vmem:[#allocation0 + $0x80] sm:$0xf] %vm2775_vm9, %v2873_v51   ;;  %2878 = vst.msk [vmem:[#allocation0 + $0x84] sm:$0xf0] %vm2775_vm9, %v2873_v51  }
 0x1d2   :  { %v4014_v58 = vsel %vm370_vm1, %v5566_v57, %v4009_v62  ;;  %v5577_v63 = vld [vmem:[%s9464_s0 + $0x281] ss:$16 sm:%s4081_s24]   ;;  %v5578_v4 = vld [vmem:[%s9464_s0 + $0x249] ss:$16 sm:%s4086_s13]   ;;  %s4066_s15 = smov 192  ;;  %s4128_s18 = smov 3  ;;  %v2998_v25 = vpop.permute.xlu1 %2997  }
 0x1d3   :  { %v4019_v0 = vsel %vm375_vm2, %v5567_v56, %v4014_v58  ;;  %v4084_v3 = vsel %vm365_vm0, %v5577_v63, %v5576_v59  ;;  %v5579_v44 = vld [vmem:[%s9464_s0 + $0x249] ss:$16 sm:%s4091_s29]   ;;  %v5572_v35 = vld [vmem:[%s9464_s0 + $0x201] ss:$16 sm:%s4053_s19]   ;;  %s4131_s20 = smov 12  ;;  %s4136_s27 = smov 48 }
 0x1d4   :  { %4020 = vrot.lane.b32.xlu0 %v4019_v0, %s5712_s3  ;;  %v4089_v16 = vsel %vm370_vm1, %v5578_v4, %v4084_v3  ;;  %v5573_v1 = vld [vmem:[%s9464_s0 + $0x201] ss:$16 sm:%s4056_s8]   ;;  %s4141_s25 = smov 192  ;;  %2951 = vst.msk [vmem:[#allocation0 + $0xe0] sm:$0xf] %vm2775_vm9, %v2948_v24   ;;  %s4103_s13 = smov 3 }
 0x1d5   :  { %v4094_v5 = vsel %vm375_vm2, %v5579_v44, %v4089_v16  ;;  %v5574_v7 = vld [vmem:[%s9464_s0 + $0x1c9] ss:$16 sm:%s4061_s11]   ;;  %2953 = vst.msk [vmem:[#allocation0 + $0xe4] sm:$0xf0] %vm2775_vm9, %v2948_v24   ;;  %v4059_v8 = vsel %vm365_vm0, %v5573_v1, %v5572_v35  ;;  %v5584_v10 = vld [vmem:[%s9464_s0 + $0x381] ss:$16 sm:%s4128_s18]   ;;  %v2973_v26 = vpop.permute.xlu0 %2972  }
 0x1d6   :  { %4095 = vrot.lane.b32.xlu1 %v4094_v5, %s5712_s3  ;;  %v5575_v9 = vld [vmem:[%s9464_s0 + $0x1c9] ss:$16 sm:%s4066_s15]   ;;  %v4064_v2 = vsel %vm370_vm1, %v5574_v7, %v4059_v8  ;;  %s4106_s2 = smov 12  ;;  %s4111_s4 = smov 48  ;;  %2926 = vst.msk [vmem:[#allocation0 + $0xc0] sm:$0xf] %vm2775_vm9, %v2923_v19  }
 0x1d7   :  { %v5585_v13 = vld [vmem:[%s9464_s0 + $0x381] ss:$16 sm:%s4131_s20]   ;;  %v4069_v28 = vsel %vm375_vm2, %v5575_v9, %v4064_v2  ;;  %v5586_v49 = vld [vmem:[%s9464_s0 + $0x349] ss:$16 sm:%s4136_s27]   ;;  %s4116_s9 = smov 192  ;;  %s4178_s14 = smov 3 }
 0x1d8   :  { %v4134_v15 = vsel %vm365_vm0, %v5585_v13, %v5584_v10  ;;  %v5587_v11 = vld [vmem:[%s9464_s0 + $0x349] ss:$16 sm:%s4141_s25]   ;;  %2928 = vst.msk [vmem:[#allocation0 + $0xc4] sm:$0xf0] %vm2775_vm9, %v2923_v19   ;;  %4070 = vrot.lane.b32.xlu0 %v4069_v28, %s5712_s3  ;;  %s4181_s15 = smov 12  ;;  %s4186_s21 = smov 48  ;;  %v3048_v37 = vpop.permute.xlu1 %3047  }
 0x1d9   :  { %v4139_v6 = vsel %vm370_vm1, %v5586_v49, %v4134_v15  ;;  %v5580_v17 = vld [vmem:[%s9464_s0 + $0x301] ss:$16 sm:%s4103_s13]   ;;  %v5582_v38 = vld [vmem:[%s9464_s0 + $0x2c9] ss:$16 sm:%s4111_s4]   ;;  %s4191_s22 = smov 192  ;;  %s4153_s27 = smov 3 }
 0x1da   :  { %v4144_v18 = vsel %vm375_vm2, %v5587_v11, %v4139_v6  ;;  %v5581_v20 = vld [vmem:[%s9464_s0 + $0x301] ss:$16 sm:%s4106_s2]   ;;  %v5583_v23 = vld [vmem:[%s9464_s0 + $0x2c9] ss:$16 sm:%s4116_s9]   ;;  %3001 = vst.msk [vmem:[#allocation0 + $0x120] sm:$0xf] %vm2775_vm9, %v2998_v25  }
 0x1db   :  { %4145 = vrot.lane.b32.xlu1 %v4144_v18, %s5712_s3  ;;  %v4109_v27 = vsel %vm365_vm0, %v5581_v20, %v5580_v17  ;;  %3003 = vst.msk [vmem:[#allocation0 + $0x124] sm:$0xf0] %vm2775_vm9, %v2998_v25   ;;  %v5592_v31 = vld [vmem:[%s9464_s0 + $0x481] ss:$16 sm:%s4178_s14]   ;;  %s4156_s29 = smov 12  ;;  %s4161_s6 = smov 48  ;;  %v3023_v22 = vpop.permute.xlu0 %3022  }
 0x1dc   :  { %v4114_v30 = vsel %vm370_vm1, %v5582_v38, %v4109_v27  ;;  %v5593_v54 = vld [vmem:[%s9464_s0 + $0x481] ss:$16 sm:%s4181_s15]   ;;  %v5594_v32 = vld [vmem:[%s9464_s0 + $0x449] ss:$16 sm:%s4186_s21]   ;;  %s4166_s5 = smov 192  ;;  %s4228_s11 = smov 3 }
 0x1dd   :  { %v4119_v36 = vsel %vm375_vm2, %v5583_v23, %v4114_v30  ;;  %v4184_v52 = vsel %vm365_vm0, %v5593_v54, %v5592_v31  ;;  %v5595_v29 = vld [vmem:[%s9464_s0 + $0x449] ss:$16 sm:%s4191_s22]   ;;  %v5588_v47 = vld [vmem:[%s9464_s0 + $0x401] ss:$16 sm:%s4153_s27]   ;;  %s4231_s9 = smov 12  ;;  %s4236_s16 = smov 48 }
 0x1de   :  { %4120 = vrot.lane.b32.xlu0 %v4119_v36, %s5712_s3  ;;  %v4189_v33 = vsel %vm370_vm1, %v5594_v32, %v4184_v52  ;;  %2976 = vst.msk [vmem:[#allocation0 + $0x100] sm:$0xf] %vm2775_vm9, %v2973_v26   ;;  %2978 = vst.msk [vmem:[#allocation0 + $0x104] sm:$0xf0] %vm2775_vm9, %v2973_v26   ;;  %v5589_v34 = vld [vmem:[%s9464_s0 + $0x401] ss:$16 sm:%s4156_s29]   ;;  %v3098_v57 = vpop.permute.xlu1 %3097  }
 0x1df   :  { %v4194_v21 = vsel %vm375_vm2, %v5595_v29, %v4189_v33  ;;  %v5590_v39 = vld [vmem:[%s9464_s0 + $0x3c9] ss:$16 sm:%s4161_s6]   ;;  %s4241_s17 = smov 192  ;;  %v4159_v61 = vsel %vm365_vm0, %v5589_v34, %v5588_v47  ;;  %s4203_s21 = smov 3  ;;  %3051 = vst.msk [vmem:[#allocation0 + $0x160] sm:$0xf] %vm2775_vm9, %v3048_v37  }
 0x1e0   :  { %4195 = vrot.lane.b32.xlu1 %v4194_v21, %s5712_s3  ;;  %v5591_v14 = vld [vmem:[%s9464_s0 + $0x3c9] ss:$16 sm:%s4166_s5]   ;;  %3053 = vst.msk [vmem:[#allocation0 + $0x164] sm:$0xf0] %vm2775_vm9, %v3048_v37   ;;  %v4164_v41 = vsel %vm370_vm1, %v5590_v39, %v4159_v61  ;;  %s4206_s25 = smov 12  ;;  %s4211_s26 = smov 48  ;;  %v3073_v44 = vpop.permute.xlu0 %3072  }
 0x1e1   :  { %v5600_v40 = vld [vmem:[%s9464_s0 + $0x581] ss:$16 sm:%s4228_s11]   ;;  %v4169_v43 = vsel %vm375_vm2, %v5591_v14, %v4164_v41  ;;  %v5602_v48 = vld [vmem:[%s9464_s0 + $0x549] ss:$16 sm:%s4236_s16]   ;;  %s4216_s30 = smov 192  ;;  %s4278_s4 = smov 3 }
 0x1e2   :  { %v5601_v12 = vld [vmem:[%s9464_s0 + $0x581] ss:$16 sm:%s4231_s9]   ;;  %v5603_v50 = vld [vmem:[%s9464_s0 + $0x549] ss:$16 sm:%s4241_s17]   ;;  %s4281_s5 = smov 12  ;;  %s4286_s10 = smov 48 }
 0x1e3   :  { %v4234_v46 = vsel %vm365_vm0, %v5601_v12, %v5600_v40  ;;  %4170 = vrot.lane.b32.xlu0 %v4169_v43, %s5712_s3  ;;  %v5596_v55 = vld [vmem:[%s9464_s0 + $0x501] ss:$16 sm:%s4203_s21]   ;;  %3026 = vst.msk [vmem:[#allocation0 + $0x140] sm:$0xf] %vm2775_vm9, %v3023_v22   ;;  %3028 = vst.msk [vmem:[#allocation0 + $0x144] sm:$0xf0] %vm2775_vm9, %v3023_v22   ;;  %v3148_v7 = vpop.permute.xlu1 %3147  }
 0x1e4   :  { %v4239_v53 = vsel %vm370_vm1, %v5602_v48, %v4234_v46  ;;  %v5597_v42 = vld [vmem:[%s9464_s0 + $0x501] ss:$16 sm:%s4206_s25]   ;;  %v5598_v60 = vld [vmem:[%s9464_s0 + $0x4c9] ss:$16 sm:%s4211_s26]   ;;  %s4291_s12 = smov 192  ;;  %s4253_s16 = smov 3 }
 0x1e5   :  { %v4244_v45 = vsel %vm375_vm2, %v5603_v50, %v4239_v53  ;;  %v4209_v62 = vsel %vm365_vm0, %v5597_v42, %v5596_v55  ;;  %v5599_v56 = vld [vmem:[%s9464_s0 + $0x4c9] ss:$16 sm:%s4216_s30]   ;;  %3101 = vst.msk [vmem:[#allocation0 + $0x30] sm:$0xf] %vm2775_vm9, %v3098_v57   ;;  %3103 = vst.msk [vmem:[#allocation0 + $0x34] sm:$0xf0] %vm2775_vm9, %v3098_v57  }
 0x1e6   :  { %4245 = vrot.lane.b32.xlu1 %v4244_v45, %s5712_s3  ;;  %v4214_v51 = vsel %vm370_vm1, %v5598_v60, %v4209_v62  ;;  %v5608_v58 = vld [vmem:[%s9464_s0 + $0xc1] ss:$16 sm:%s4278_s4]   ;;  %s4256_s22 = smov 12  ;;  %s4261_s23 = smov 48  ;;  %3076 = vst.msk [vmem:[#allocation0 + $0x10] sm:$0xf] %vm2775_vm9, %v3073_v44   ;;  %v3123_v11 = vpop.permute.xlu0 %3122  }
 0x1e7   :  { %v5609_v59 = vld [vmem:[%s9464_s0 + $0xc1] ss:$16 sm:%s4281_s5]   ;;  %v4219_v63 = vsel %vm375_vm2, %v5599_v56, %v4214_v51  ;;  %v5610_v3 = vld [vmem:[%s9464_s0 + $0x89] ss:$16 sm:%s4286_s10]   ;;  %s4266_s28 = smov 192  ;;  %s4328_s6 = smov 3 }
 0x1e8   :  { %v4284_v0 = vsel %vm365_vm0, %v5609_v59, %v5608_v58  ;;  %v5611_v4 = vld [vmem:[%s9464_s0 + $0x89] ss:$16 sm:%s4291_s12]   ;;  %4220 = vrot.lane.b32.xlu0 %v4219_v63, %s5712_s3  ;;  %s4331_s30 = smov 12  ;;  %3078 = vst.msk [vmem:[#allocation0 + $0x14] sm:$0xf0] %vm2775_vm9, %v3073_v44   ;;  %s4336_s7 = smov 48  ;;  %v3198_v25 = vpop.permute.xlu1 %3197  }
 0x1e9   :  { %v4289_v16 = vsel %vm370_vm1, %v5610_v3, %v4284_v0  ;;  %v5604_v35 = vld [vmem:[%s9464_s0 + $0x41] ss:$16 sm:%s4253_s16]   ;;  %v5606_v1 = vld [vmem:[%s9464_s0 + $0x9] ss:$16 sm:%s4261_s23]   ;;  %s4341_s8 = smov 192  ;;  %s4303_s10 = smov 3 }
 0x1ea   :  { %v4294_v24 = vsel %vm375_vm2, %v5611_v4, %v4289_v16  ;;  %v5605_v5 = vld [vmem:[%s9464_s0 + $0x41] ss:$16 sm:%s4256_s22]   ;;  %v5607_v9 = vld [vmem:[%s9464_s0 + $0x9] ss:$16 sm:%s4266_s28]   ;;  %3151 = vst.msk [vmem:[#allocation0 + $0x70] sm:$0xf] %vm2775_vm9, %v3148_v7  }
 0x1eb   :  { %4295 = vrot.lane.b32.xlu1 %v4294_v24, %s5712_s3  ;;  %v4259_v8 = vsel %vm365_vm0, %v5605_v5, %v5604_v35  ;;  %3153 = vst.msk [vmem:[#allocation0 + $0x74] sm:$0xf0] %vm2775_vm9, %v3148_v7   ;;  %v5616_v10 = vld [vmem:[%s9464_s0 + $0x1c1] ss:$16 sm:%s4328_s6]   ;;  %s4306_s17 = smov 12  ;;  %s4311_s18 = smov 48  ;;  %v3173_v26 = vpop.permute.xlu0 %3172  }
 0x1ec   :  { %v4264_v2 = vsel %vm370_vm1, %v5606_v1, %v4259_v8  ;;  %v5617_v13 = vld [vmem:[%s9464_s0 + $0x1c1] ss:$16 sm:%s4331_s30]   ;;  %v5618_v15 = vld [vmem:[%s9464_s0 + $0x189] ss:$16 sm:%s4336_s7]   ;;  %s4316_s24 = smov 192  ;;  %s4378_s26 = smov 3 }
 0x1ed   :  { %v4269_v19 = vsel %vm375_vm2, %v5607_v9, %v4264_v2  ;;  %v4334_v28 = vsel %vm365_vm0, %v5617_v13, %v5616_v10  ;;  %v5619_v49 = vld [vmem:[%s9464_s0 + $0x189] ss:$16 sm:%s4341_s8]   ;;  %v5612_v17 = vld [vmem:[%s9464_s0 + $0x141] ss:$16 sm:%s4303_s10]   ;;  %s4381_s28 = smov 12  ;;  %s4386_s19 = smov 48 }
 0x1ee   :  { %4270 = vrot.lane.b32.xlu0 %v4269_v19, %s5712_s3  ;;  %v4339_v6 = vsel %vm370_vm1, %v5618_v15, %v4334_v28  ;;  %3126 = vst.msk [vmem:[#allocation0 + $0x50] sm:$0xf] %vm2775_vm9, %v3123_v11   ;;  %3128 = vst.msk [vmem:[#allocation0 + $0x54] sm:$0xf0] %vm2775_vm9, %v3123_v11   ;;  %v5613_v20 = vld [vmem:[%s9464_s0 + $0x141] ss:$16 sm:%s4306_s17]   ;;  %v3248_v37 = vpop.permute.xlu1 %3247  }
 0x1ef   :  { %v4344_v18 = vsel %vm375_vm2, %v5619_v49, %v4339_v6  ;;  %v5614_v38 = vld [vmem:[%s9464_s0 + $0x109] ss:$16 sm:%s4311_s18]   ;;  %s4391_s2 = smov 192  ;;  %v4309_v27 = vsel %vm365_vm0, %v5613_v20, %v5612_v17  ;;  %s4353_s7 = smov 3  ;;  %3201 = vst.msk [vmem:[#allocation0 + $0xb0] sm:$0xf] %vm2775_vm9, %v3198_v25  }
 0x1f0   :  { %4345 = vrot.lane.b32.xlu1 %v4344_v18, %s5712_s3  ;;  %v5615_v23 = vld [vmem:[%s9464_s0 + $0x109] ss:$16 sm:%s4316_s24]   ;;  %3203 = vst.msk [vmem:[#allocation0 + $0xb4] sm:$0xf0] %vm2775_vm9, %v3198_v25   ;;  %v4314_v30 = vsel %vm370_vm1, %v5614_v38, %v4309_v27  ;;  %s4356_s12 = smov 12  ;;  %s4361_s14 = smov 48  ;;  %v3223_v22 = vpop.permute.xlu0 %3222  }
 0x1f1   :  { %v5624_v31 = vld [vmem:[%s9464_s0 + $0x2c1] ss:$16 sm:%s4378_s26]   ;;  %v4319_v36 = vsel %vm375_vm2, %v5615_v23, %v4314_v30  ;;  %v5626_v32 = vld [vmem:[%s9464_s0 + $0x289] ss:$16 sm:%s4386_s19]   ;;  %s4366_s20 = smov 192  ;;  %s4428_s23 = smov 3 }
 0x1f2   :  { %v5625_v54 = vld [vmem:[%s9464_s0 + $0x2c1] ss:$16 sm:%s4381_s28]   ;;  %v5627_v29 = vld [vmem:[%s9464_s0 + $0x289] ss:$16 sm:%s4391_s2]   ;;  %s4431_s24 = smov 12  ;;  %s4436_s13 = smov 48 }
 0x1f3   :  { %v4384_v52 = vsel %vm365_vm0, %v5625_v54, %v5624_v31  ;;  %4320 = vrot.lane.b32.xlu0 %v4319_v36, %s5712_s3  ;;  %v5620_v47 = vld [vmem:[%s9464_s0 + $0x241] ss:$16 sm:%s4353_s7]   ;;  %3176 = vst.msk [vmem:[#allocation0 + $0x90] sm:$0xf] %vm2775_vm9, %v3173_v26   ;;  %3178 = vst.msk [vmem:[#allocation0 + $0x94] sm:$0xf0] %vm2775_vm9, %v3173_v26   ;;  %v3298_v57 = vpop.permute.xlu1 %3297  }
 0x1f4   :  { %v4389_v33 = vsel %vm370_vm1, %v5626_v32, %v4384_v52  ;;  %v5621_v34 = vld [vmem:[%s9464_s0 + $0x241] ss:$16 sm:%s4356_s12]   ;;  %v5622_v39 = vld [vmem:[%s9464_s0 + $0x209] ss:$16 sm:%s4361_s14]   ;;  %s4441_s29 = smov 192  ;;  %s4403_s19 = smov 3 }
 0x1f5   :  { %v4394_v21 = vsel %vm375_vm2, %v5627_v29, %v4389_v33  ;;  %v4359_v61 = vsel %vm365_vm0, %v5621_v34, %v5620_v47  ;;  %v5623_v14 = vld [vmem:[%s9464_s0 + $0x209] ss:$16 sm:%s4366_s20]   ;;  %3251 = vst.msk [vmem:[#allocation0 + $0xf0] sm:$0xf] %vm2775_vm9, %v3248_v37   ;;  %3253 = vst.msk [vmem:[#allocation0 + $0xf4] sm:$0xf0] %vm2775_vm9, %v3248_v37  }
 0x1f6   :  { %4395 = vrot.lane.b32.xlu1 %v4394_v21, %s5712_s3  ;;  %v4364_v41 = vsel %vm370_vm1, %v5622_v39, %v4359_v61  ;;  %v5632_v40 = vld [vmem:[%s9464_s0 + $0x3c1] ss:$16 sm:%s4428_s23]   ;;  %s4406_s8 = smov 12  ;;  %s4411_s11 = smov 48  ;;  %3226 = vst.msk [vmem:[#allocation0 + $0xd0] sm:$0xf] %vm2775_vm9, %v3223_v22   ;;  %v3273_v44 = vpop.permute.xlu0 %3272  }
 0x1f7   :  { %v5633_v12 = vld [vmem:[%s9464_s0 + $0x3c1] ss:$16 sm:%s4431_s24]   ;;  %v4369_v43 = vsel %vm375_vm2, %v5623_v14, %v4364_v41  ;;  %v5634_v48 = vld [vmem:[%s9464_s0 + $0x389] ss:$16 sm:%s4436_s13]   ;;  %s4416_s15 = smov 192  ;;  %s4478_s18 = smov 3 }
 0x1f8   :  { %v4434_v46 = vsel %vm365_vm0, %v5633_v12, %v5632_v40  ;;  %v5635_v50 = vld [vmem:[%s9464_s0 + $0x389] ss:$16 sm:%s4441_s29]   ;;  %4370 = vrot.lane.b32.xlu0 %v4369_v43, %s5712_s3  ;;  %s4481_s20 = smov 12  ;;  %3228 = vst.msk [vmem:[#allocation0 + $0xd4] sm:$0xf0] %vm2775_vm9, %v3223_v22   ;;  %s4486_s27 = smov 48  ;;  %v3348_v7 = vpop.permute.xlu1 %3347  }
 0x1f9   :  { %v4439_v53 = vsel %vm370_vm1, %v5634_v48, %v4434_v46  ;;  %v5628_v55 = vld [vmem:[%s9464_s0 + $0x341] ss:$16 sm:%s4403_s19]   ;;  %v5630_v60 = vld [vmem:[%s9464_s0 + $0x309] ss:$16 sm:%s4411_s11]   ;;  %s4491_s25 = smov 192  ;;  %s4453_s13 = smov 3 }
 0x1fa   :  { %v4444_v45 = vsel %vm375_vm2, %v5635_v50, %v4439_v53  ;;  %v5629_v42 = vld [vmem:[%s9464_s0 + $0x341] ss:$16 sm:%s4406_s8]   ;;  %v5631_v56 = vld [vmem:[%s9464_s0 + $0x309] ss:$16 sm:%s4416_s15]   ;;  %3301 = vst.msk [vmem:[#allocation0 + $0x130] sm:$0xf] %vm2775_vm9, %v3298_v57  }
 0x1fb   :  { %4445 = vrot.lane.b32.xlu1 %v4444_v45, %s5712_s3  ;;  %v4409_v62 = vsel %vm365_vm0, %v5629_v42, %v5628_v55  ;;  %3303 = vst.msk [vmem:[#allocation0 + $0x134] sm:$0xf0] %vm2775_vm9, %v3298_v57   ;;  %v5640_v58 = vld [vmem:[%s9464_s0 + $0x4c1] ss:$16 sm:%s4478_s18]   ;;  %s4456_s2 = smov 12  ;;  %s4461_s4 = smov 48  ;;  %v3323_v11 = vpop.permute.xlu0 %3322  }
 0x1fc   :  { %v4414_v51 = vsel %vm370_vm1, %v5630_v60, %v4409_v62  ;;  %v5641_v59 = vld [vmem:[%s9464_s0 + $0x4c1] ss:$16 sm:%s4481_s20]   ;;  %v5642_v3 = vld [vmem:[%s9464_s0 + $0x489] ss:$16 sm:%s4486_s27]   ;;  %s4466_s9 = smov 192  ;;  %s4528_s14 = smov 3 }
 0x1fd   :  { %v4419_v63 = vsel %vm375_vm2, %v5631_v56, %v4414_v51  ;;  %v4484_v0 = vsel %vm365_vm0, %v5641_v59, %v5640_v58  ;;  %v5643_v4 = vld [vmem:[%s9464_s0 + $0x489] ss:$16 sm:%s4491_s25]   ;;  %v5636_v35 = vld [vmem:[%s9464_s0 + $0x441] ss:$16 sm:%s4453_s13]   ;;  %s4531_s15 = smov 12  ;;  %s4536_s21 = smov 48 }
 0x1fe   :  { %4420 = vrot.lane.b32.xlu0 %v4419_v63, %s5712_s3  ;;  %v4489_v16 = vsel %vm370_vm1, %v5642_v3, %v4484_v0  ;;  %3276 = vst.msk [vmem:[#allocation0 + $0x110] sm:$0xf] %vm2775_vm9, %v3273_v44   ;;  %3278 = vst.msk [vmem:[#allocation0 + $0x114] sm:$0xf0] %vm2775_vm9, %v3273_v44   ;;  %v5637_v5 = vld [vmem:[%s9464_s0 + $0x441] ss:$16 sm:%s4456_s2]   ;;  %v3397_v25 = vpop.permute.xlu1 %3396  }
 0x1ff   :  { %v4494_v24 = vsel %vm375_vm2, %v5643_v4, %v4489_v16  ;;  %v5638_v1 = vld [vmem:[%s9464_s0 + $0x409] ss:$16 sm:%s4461_s4]   ;;  %s4541_s22 = smov 192  ;;  %v4459_v8 = vsel %vm365_vm0, %v5637_v5, %v5636_v35  ;;  %s4503_s27 = smov 3  ;;  %3351 = vst.msk [vmem:[#allocation0 + $0x170] sm:$0xf] %vm2775_vm9, %v3348_v7  }
 0x200   :  { %4495 = vrot.lane.b32.xlu1 %v4494_v24, %s5712_s3  ;;  %v5639_v9 = vld [vmem:[%s9464_s0 + $0x409] ss:$16 sm:%s4466_s9]   ;;  %3353 = vst.msk [vmem:[#allocation0 + $0x174] sm:$0xf0] %vm2775_vm9, %v3348_v7   ;;  %v4464_v2 = vsel %vm370_vm1, %v5638_v1, %v4459_v8  ;;  %s4506_s29 = smov 12  ;;  %s4511_s6 = smov 48  ;;  %v3373_v54 = vpop.permute.xlu0 %3372  }
 0x201   :  { %v5648_v10 = vld [vmem:[%s9464_s0 + $0x5c1] ss:$16 sm:%s4528_s14]   ;;  %v4469_v19 = vsel %vm375_vm2, %v5639_v9, %v4464_v2  ;;  %v5650_v15 = vld [vmem:[%s9464_s0 + $0x589] ss:$16 sm:%s4536_s21]   ;;  %s4516_s5 = smov 192 }
 0x202   :  { %v5649_v13 = vld [vmem:[%s9464_s0 + $0x5c1] ss:$16 sm:%s4531_s15]   ;;  %v5651_v49 = vld [vmem:[%s9464_s0 + $0x589] ss:$16 sm:%s4541_s22]   ;;  %3326 = vst.msk [vmem:[#allocation0 + $0x150] sm:$0xf] %vm2775_vm9, %v3323_v11  }
 0x203   :  { %v4534_v28 = vsel %vm365_vm0, %v5649_v13, %v5648_v10  ;;  %4470 = vrot.lane.b32.xlu0 %v4469_v19, %s5712_s3  ;;  %v5644_v17 = vld [vmem:[%s9464_s0 + $0x541] ss:$16 sm:%s4503_s27]   ;;  %3328 = vst.msk [vmem:[#allocation0 + $0x154] sm:$0xf0] %vm2775_vm9, %v3323_v11   ;;  %v3447_v36 = vpop.permute.xlu1 %3446  }
 0x204   :  { %v4539_v6 = vsel %vm370_vm1, %v5650_v15, %v4534_v28  ;;  %v5645_v20 = vld [vmem:[%s9464_s0 + $0x541] ss:$16 sm:%s4506_s29]   ;;  %v5646_v38 = vld [vmem:[%s9464_s0 + $0x509] ss:$16 sm:%s4511_s6]   ;;  %3400 = vst.msk [vmem:[#allocation0 + $0x20] sm:$0xf] %vm3374_vm10, %v3397_v25  }
 0x205   :  { %v4544_v18 = vsel %vm375_vm2, %v5651_v49, %v4539_v6  ;;  %v4509_v27 = vsel %vm365_vm0, %v5645_v20, %v5644_v17  ;;  %v5647_v23 = vld [vmem:[%s9464_s0 + $0x509] ss:$16 sm:%s4516_s5]   ;;  %3402 = vst.msk [vmem:[#allocation0 + $0x24] sm:$0xf0] %vm3374_vm10, %v3397_v25   ;;  %3375 = vst.msk [vmem:[#allocation0] sm:$0xf] %vm3374_vm10, %v3373_v54  }
 0x206   :  { %4545 = vrot.lane.b32.xlu1 %v4544_v18, %s5712_s3  ;;  %v4514_v30 = vsel %vm370_vm1, %v5646_v38, %v4509_v27  ;;  %3377 = vst.msk [vmem:[#allocation0 + $0x4] sm:$0xf0] %vm3374_vm10, %v3373_v54   ;;  %3450 = vst.msk [vmem:[#allocation0 + $0x60] sm:$0xf] %vm3374_vm10, %v3447_v36   ;;  %v3422_v52 = vpop.permute.xlu0 %3421  }
 0x207   :  { %v4519_v31 = vsel %vm375_vm2, %v5647_v23, %v4514_v30  ;;  %3452 = vst.msk [vmem:[#allocation0 + $0x64] sm:$0xf0] %vm3374_vm10, %v3447_v36   ;;  %3425 = vst.msk [vmem:[#allocation0 + $0x40] sm:$0xf] %vm3374_vm10, %v3422_v52  }
 0x208   :  { %4520 = vrot.lane.b32.xlu0 %v4519_v31, %s5712_s3  ;;  %3427 = vst.msk [vmem:[#allocation0 + $0x44] sm:$0xf0] %vm3374_vm10, %v3422_v52  }
 0x209   :  { %v3497_v32 = vpop.permute.xlu1 %3496  }
 0x20a   :  { %3500 = vst.msk [vmem:[#allocation0 + $0xa0] sm:$0xf] %vm3374_vm10, %v3497_v32   ;;  %3502 = vst.msk [vmem:[#allocation0 + $0xa4] sm:$0xf0] %vm3374_vm10, %v3497_v32  }
 0x20b   :  { %v3472_v29 = vpop.permute.xlu0 %3471  }
 0x20c   :  { %3475 = vst.msk [vmem:[#allocation0 + $0x80] sm:$0xf] %vm3374_vm10, %v3472_v29   ;;  %3477 = vst.msk [vmem:[#allocation0 + $0x84] sm:$0xf0] %vm3374_vm10, %v3472_v29  }
 0x20e   :  { %v3547_v26 = vpop.permute.xlu1 %3546  }
 0x20f   :  { %3550 = vst.msk [vmem:[#allocation0 + $0xe0] sm:$0xf] %vm3374_vm10, %v3547_v26   ;;  %3552 = vst.msk [vmem:[#allocation0 + $0xe4] sm:$0xf0] %vm3374_vm10, %v3547_v26  }
 0x211   :  { %v3522_v33 = vpop.permute.xlu0 %3521  }
 0x212   :  { %3525 = vst.msk [vmem:[#allocation0 + $0xc0] sm:$0xf] %vm3374_vm10, %v3522_v33   ;;  %3527 = vst.msk [vmem:[#allocation0 + $0xc4] sm:$0xf0] %vm3374_vm10, %v3522_v33  }
 0x213   :  { %v3597_v47 = vpop.permute.xlu1 %3596  }
 0x214   :  { %3600 = vst.msk [vmem:[#allocation0 + $0x120] sm:$0xf] %vm3374_vm10, %v3597_v47   ;;  %3602 = vst.msk [vmem:[#allocation0 + $0x124] sm:$0xf0] %vm3374_vm10, %v3597_v47  }
 0x216   :  { %v3572_v21 = vpop.permute.xlu0 %3571  }
 0x217   :  { %3575 = vst.msk [vmem:[#allocation0 + $0x100] sm:$0xf] %vm3374_vm10, %v3572_v21   ;;  %3577 = vst.msk [vmem:[#allocation0 + $0x104] sm:$0xf0] %vm3374_vm10, %v3572_v21  }
 0x219   :  { %v3647_v34 = vpop.permute.xlu1 %3646  }
 0x21a   :  { %3650 = vst.msk [vmem:[#allocation0 + $0x160] sm:$0xf] %vm3374_vm10, %v3647_v34   ;;  %3652 = vst.msk [vmem:[#allocation0 + $0x164] sm:$0xf0] %vm3374_vm10, %v3647_v34  }
 0x21b   :  { %v3622_v39 = vpop.permute.xlu0 %3621  }
 0x21c   :  { %3625 = vst.msk [vmem:[#allocation0 + $0x140] sm:$0xf] %vm3374_vm10, %v3622_v39   ;;  %3627 = vst.msk [vmem:[#allocation0 + $0x144] sm:$0xf0] %vm3374_vm10, %v3622_v39  }
 0x21e   :  { %v3697_v37 = vpop.permute.xlu1 %3696  }
 0x21f   :  { %3700 = vst.msk [vmem:[#allocation0 + $0x30] sm:$0xf] %vm3374_vm10, %v3697_v37   ;;  %3702 = vst.msk [vmem:[#allocation0 + $0x34] sm:$0xf0] %vm3374_vm10, %v3697_v37  }
 0x221   :  { %v3672_v61 = vpop.permute.xlu0 %3671  }
 0x222   :  { %3675 = vst.msk [vmem:[#allocation0 + $0x10] sm:$0xf] %vm3374_vm10, %v3672_v61   ;;  %3677 = vst.msk [vmem:[#allocation0 + $0x14] sm:$0xf0] %vm3374_vm10, %v3672_v61  }
 0x223   :  { %v3747_v14 = vpop.permute.xlu1 %3746  }
 0x224   :  { %3750 = vst.msk [vmem:[#allocation0 + $0x70] sm:$0xf] %vm3374_vm10, %v3747_v14   ;;  %3752 = vst.msk [vmem:[#allocation0 + $0x74] sm:$0xf0] %vm3374_vm10, %v3747_v14  }
 0x226   :  { %v3722_v41 = vpop.permute.xlu0 %3721  }
 0x227   :  { %3725 = vst.msk [vmem:[#allocation0 + $0x50] sm:$0xf] %vm3374_vm10, %v3722_v41   ;;  %3727 = vst.msk [vmem:[#allocation0 + $0x54] sm:$0xf0] %vm3374_vm10, %v3722_v41  }
 0x229   :  { %v3797_v40 = vpop.permute.xlu1 %3796  }
 0x22a   :  { %3800 = vst.msk [vmem:[#allocation0 + $0xb0] sm:$0xf] %vm3374_vm10, %v3797_v40   ;;  %3802 = vst.msk [vmem:[#allocation0 + $0xb4] sm:$0xf0] %vm3374_vm10, %v3797_v40  }
 0x22b   :  { %v3772_v12 = vpop.permute.xlu0 %3771  }
 0x22c   :  { %3775 = vst.msk [vmem:[#allocation0 + $0x90] sm:$0xf] %vm3374_vm10, %v3772_v12   ;;  %3777 = vst.msk [vmem:[#allocation0 + $0x94] sm:$0xf0] %vm3374_vm10, %v3772_v12  }
 0x22e   :  { %v3847_v43 = vpop.permute.xlu1 %3846  }
 0x22f   :  { %3850 = vst.msk [vmem:[#allocation0 + $0xf0] sm:$0xf] %vm3374_vm10, %v3847_v43   ;;  %3852 = vst.msk [vmem:[#allocation0 + $0xf4] sm:$0xf0] %vm3374_vm10, %v3847_v43  }
 0x231   :  { %v3822_v46 = vpop.permute.xlu0 %3821  }
 0x232   :  { %3825 = vst.msk [vmem:[#allocation0 + $0xd0] sm:$0xf] %vm3374_vm10, %v3822_v46   ;;  %3827 = vst.msk [vmem:[#allocation0 + $0xd4] sm:$0xf0] %vm3374_vm10, %v3822_v46  }
 0x233   :  { %v3897_v48 = vpop.permute.xlu1 %3896  }
 0x234   :  { %3900 = vst.msk [vmem:[#allocation0 + $0x130] sm:$0xf] %vm3374_vm10, %v3897_v48   ;;  %3902 = vst.msk [vmem:[#allocation0 + $0x134] sm:$0xf0] %vm3374_vm10, %v3897_v48  }
 0x235   :  { %v3872_v50 = vpop.permute.xlu0 %3871  }
 0x236   :  { %3875 = vst.msk [vmem:[#allocation0 + $0x110] sm:$0xf] %vm3374_vm10, %v3872_v50   ;;  %3877 = vst.msk [vmem:[#allocation0 + $0x114] sm:$0xf0] %vm3374_vm10, %v3872_v50  }
 0x238   :  { %v3947_v22 = vpop.permute.xlu1 %3946  }
 0x239   :  { %3950 = vst.msk [vmem:[#allocation0 + $0x170] sm:$0xf] %vm3374_vm10, %v3947_v22   ;;  %3952 = vst.msk [vmem:[#allocation0 + $0x174] sm:$0xf0] %vm3374_vm10, %v3947_v22  }
 0x23b   :  { %v3922_v53 = vpop.permute.xlu0 %3921  }
 0x23c   :  { %3925 = vst.msk [vmem:[#allocation0 + $0x150] sm:$0xf] %vm3374_vm10, %v3922_v53   ;;  %3927 = vst.msk [vmem:[#allocation0 + $0x154] sm:$0xf0] %vm3374_vm10, %v3922_v53  }
 0x23e   :  { %v3996_v55 = vpop.permute.xlu1 %3995  }
 0x23f   :  { %3999 = vst.msk [vmem:[#allocation0 + $0x20] sm:$0xf] %vm3973_vm11, %v3996_v55   ;;  %4001 = vst.msk [vmem:[#allocation0 + $0x24] sm:$0xf0] %vm3973_vm11, %v3996_v55  }
 0x240   :  { %v3972_v45 = vpop.permute.xlu0 %3971  }
 0x241   :  { %3974 = vst.msk [vmem:[#allocation0] sm:$0xf] %vm3973_vm11, %v3972_v45   ;;  %3976 = vst.msk [vmem:[#allocation0 + $0x4] sm:$0xf0] %vm3973_vm11, %v3972_v45  }
 0x243   :  { %v4046_v42 = vpop.permute.xlu1 %4045  }
 0x244   :  { %4049 = vst.msk [vmem:[#allocation0 + $0x60] sm:$0xf] %vm3973_vm11, %v4046_v42   ;;  %4051 = vst.msk [vmem:[#allocation0 + $0x64] sm:$0xf0] %vm3973_vm11, %v4046_v42  }
 0x246   :  { %v4581_v60 = vld [vmem:[#allocation0 + $0x20] sm:$0xf]  ;;  %v4588_v57 = vld [vmem:[#allocation0 + $0x28] sm:$0xf]  ;;  %v4021_v62 = vpop.permute.xlu0 %4020  }
 0x247   :  { %5655 = vst [vmem:[%s9465_s1 + $0x10] sm:$0xf] %v4581_v60  ;;  %5656 = vst [vmem:[%s9465_s1 + $0x14] sm:$0xf] %v4588_v57 }
 0x248   :  { %4024 = vst.msk [vmem:[#allocation0 + $0x40] sm:$0xf] %vm3973_vm11, %v4021_v62   ;;  %4026 = vst.msk [vmem:[#allocation0 + $0x44] sm:$0xf0] %vm3973_vm11, %v4021_v62   ;;  %v4096_v56 = vpop.permute.xlu1 %4095   ;;  %v4556_v51 = vld [vmem:[#allocation0] sm:$0xf] }
 0x249   :  { %v4561_v58 = vld [vmem:[#allocation0 + $0x8] sm:$0xf]  ;;  %4099 = vst.msk [vmem:[#allocation0 + $0xa0] sm:$0xf] %vm3973_vm11, %v4096_v56   ;;  %4101 = vst.msk [vmem:[#allocation0 + $0xa4] sm:$0xf0] %vm3973_vm11, %v4096_v56  }
 0x24a   :  { %4559 = vst [vmem:[%s9465_s1] sm:$0xf] %v4556_v51  ;;  %5652 = vst [vmem:[%s9465_s1 + $0x4] sm:$0xf] %v4561_v58  ;;  %v4071_v0 = vpop.permute.xlu0 %4070  }
 0x24b   :  { %v4637_v59 = vld [vmem:[#allocation0 + $0x60] sm:$0xf]  ;;  %v4644_v63 = vld [vmem:[#allocation0 + $0x68] sm:$0xf]  ;;  %4074 = vst.msk [vmem:[#allocation0 + $0x80] sm:$0xf] %vm3973_vm11, %v4071_v0  }
 0x24c   :  { %5663 = vst [vmem:[%s9465_s1 + $0x30] sm:$0xf] %v4637_v59  ;;  %5664 = vst [vmem:[%s9465_s1 + $0x34] sm:$0xf] %v4644_v63 }
 0x24d   :  { %4076 = vst.msk [vmem:[#allocation0 + $0x84] sm:$0xf0] %vm3973_vm11, %v4071_v0   ;;  %v4146_v3 = vpop.permute.xlu1 %4145  }
 0x24e   :  { %4149 = vst.msk [vmem:[#allocation0 + $0xe0] sm:$0xf] %vm3973_vm11, %v4146_v3   ;;  %4151 = vst.msk [vmem:[#allocation0 + $0xe4] sm:$0xf0] %vm3973_vm11, %v4146_v3  }
 0x24f   :  { %v4609_v4 = vld [vmem:[#allocation0 + $0x40] sm:$0xf]  ;;  %v4616_v44 = vld [vmem:[#allocation0 + $0x48] sm:$0xf] }
 0x250   :  { %5659 = vst [vmem:[%s9465_s1 + $0x20] sm:$0xf] %v4609_v4  ;;  %5660 = vst [vmem:[%s9465_s1 + $0x24] sm:$0xf] %v4616_v44  ;;  %v4693_v16 = vld [vmem:[#allocation0 + $0xa0] sm:$0xf]  ;;  %v4121_v24 = vpop.permute.xlu0 %4120  }
 0x251   :  { %v4700_v35 = vld [vmem:[#allocation0 + $0xa8] sm:$0xf]  ;;  %5671 = vst [vmem:[%s9465_s1 + $0x50] sm:$0xf] %v4693_v16  ;;  %4124 = vst.msk [vmem:[#allocation0 + $0xc0] sm:$0xf] %vm3973_vm11, %v4121_v24  }
 0x252   :  { %5672 = vst [vmem:[%s9465_s1 + $0x54] sm:$0xf] %v4700_v35  ;;  %4126 = vst.msk [vmem:[#allocation0 + $0xc4] sm:$0xf0] %vm3973_vm11, %v4121_v24   ;;  %v4196_v5 = vpop.permute.xlu1 %4195   ;;  %v4665_v1 = vld [vmem:[#allocation0 + $0x80] sm:$0xf] }
 0x253   :  { %4199 = vst.msk [vmem:[#allocation0 + $0x120] sm:$0xf] %vm3973_vm11, %v4196_v5   ;;  %4201 = vst.msk [vmem:[#allocation0 + $0x124] sm:$0xf0] %vm3973_vm11, %v4196_v5  }
 0x254   :  { %v4672_v7 = vld [vmem:[#allocation0 + $0x88] sm:$0xf]  ;;  %5667 = vst [vmem:[%s9465_s1 + $0x40] sm:$0xf] %v4665_v1 }
 0x255   :  { %5668 = vst [vmem:[%s9465_s1 + $0x44] sm:$0xf] %v4672_v7  ;;  %v4749_v8 = vld [vmem:[#allocation0 + $0xe0] sm:$0xf]  ;;  %v4756_v9 = vld [vmem:[#allocation0 + $0xe8] sm:$0xf]  ;;  %v4171_v2 = vpop.permute.xlu0 %4170  }
 0x256   :  { %5679 = vst [vmem:[%s9465_s1 + $0x70] sm:$0xf] %v4749_v8  ;;  %5680 = vst [vmem:[%s9465_s1 + $0x74] sm:$0xf] %v4756_v9 }
 0x257   :  { %4174 = vst.msk [vmem:[#allocation0 + $0x100] sm:$0xf] %vm3973_vm11, %v4171_v2   ;;  %4176 = vst.msk [vmem:[#allocation0 + $0x104] sm:$0xf0] %vm3973_vm11, %v4171_v2  }
 0x258   :  { %v4246_v10 = vpop.permute.xlu1 %4245   ;;  %v4721_v13 = vld [vmem:[#allocation0 + $0xc0] sm:$0xf] }
 0x259   :  { %v4728_v19 = vld [vmem:[#allocation0 + $0xc8] sm:$0xf]  ;;  %4249 = vst.msk [vmem:[#allocation0 + $0x160] sm:$0xf] %vm3973_vm11, %v4246_v10   ;;  %4251 = vst.msk [vmem:[#allocation0 + $0x164] sm:$0xf0] %vm3973_vm11, %v4246_v10  }
 0x25a   :  { %5675 = vst [vmem:[%s9465_s1 + $0x60] sm:$0xf] %v4721_v13  ;;  %5676 = vst [vmem:[%s9465_s1 + $0x64] sm:$0xf] %v4728_v19  ;;  %v4805_v28 = vld [vmem:[#allocation0 + $0x120] sm:$0xf]  ;;  %v4221_v49 = vpop.permute.xlu0 %4220  }
 0x25b   :  { %v4812_v15 = vld [vmem:[#allocation0 + $0x128] sm:$0xf]  ;;  %5687 = vst [vmem:[%s9465_s1 + $0x90] sm:$0xf] %v4805_v28  ;;  %4224 = vst.msk [vmem:[#allocation0 + $0x140] sm:$0xf] %vm3973_vm11, %v4221_v49  }
 0x25c   :  { %5688 = vst [vmem:[%s9465_s1 + $0x94] sm:$0xf] %v4812_v15  ;;  %4226 = vst.msk [vmem:[#allocation0 + $0x144] sm:$0xf0] %vm3973_vm11, %v4221_v49  }
 0x25d   :  { %v4296_v11 = vpop.permute.xlu1 %4295  }
 0x25e   :  { %v4777_v6 = vld [vmem:[#allocation0 + $0x100] sm:$0xf]  ;;  %v4784_v17 = vld [vmem:[#allocation0 + $0x108] sm:$0xf]  ;;  %4299 = vst.msk [vmem:[#allocation0 + $0x30] sm:$0xf] %vm3973_vm11, %v4296_v11  }
 0x25f   :  { %4301 = vst.msk [vmem:[#allocation0 + $0x34] sm:$0xf0] %vm3973_vm11, %v4296_v11   ;;  %5683 = vst [vmem:[%s9465_s1 + $0x80] sm:$0xf] %v4777_v6 }
 0x260   :  { %5684 = vst [vmem:[%s9465_s1 + $0x84] sm:$0xf] %v4784_v17  ;;  %v4861_v18 = vld [vmem:[#allocation0 + $0x160] sm:$0xf]  ;;  %v4868_v20 = vld [vmem:[#allocation0 + $0x168] sm:$0xf]  ;;  %v4271_v38 = vpop.permute.xlu0 %4270  }
 0x261   :  { %5695 = vst [vmem:[%s9465_s1 + $0xb0] sm:$0xf] %v4861_v18  ;;  %5696 = vst [vmem:[%s9465_s1 + $0xb4] sm:$0xf] %v4868_v20 }
 0x262   :  { %4274 = vst.msk [vmem:[#allocation0 + $0x10] sm:$0xf] %vm3973_vm11, %v4271_v38   ;;  %4276 = vst.msk [vmem:[#allocation0 + $0x14] sm:$0xf0] %vm3973_vm11, %v4271_v38   ;;  %v4346_v25 = vpop.permute.xlu1 %4345   ;;  %v4833_v27 = vld [vmem:[#allocation0 + $0x140] sm:$0xf] }
 0x263   :  { %v4840_v23 = vld [vmem:[#allocation0 + $0x148] sm:$0xf]  ;;  %4349 = vst.msk [vmem:[#allocation0 + $0x70] sm:$0xf] %vm3973_vm11, %v4346_v25   ;;  %4351 = vst.msk [vmem:[#allocation0 + $0x74] sm:$0xf0] %vm3973_vm11, %v4346_v25  }
 0x264   :  { %5691 = vst [vmem:[%s9465_s1 + $0xa0] sm:$0xf] %v4833_v27  ;;  %5692 = vst [vmem:[%s9465_s1 + $0xa4] sm:$0xf] %v4840_v23 }
 0x265   :  { %v4595_v30 = vld [vmem:[#allocation0 + $0x30] sm:$0xf]  ;;  %v4321_v54 = vpop.permute.xlu0 %4320  }
 0x266   :  { %v4602_v31 = vld [vmem:[#allocation0 + $0x38] sm:$0xf]  ;;  %5657 = vst [vmem:[%s9465_s1 + $0x18] sm:$0xf] %v4595_v30  ;;  %4324 = vst.msk [vmem:[#allocation0 + $0x50] sm:$0xf] %vm3973_vm11, %v4321_v54  }
 0x267   :  { %5658 = vst [vmem:[%s9465_s1 + $0x1c] sm:$0xf] %v4602_v31  ;;  %4326 = vst.msk [vmem:[#allocation0 + $0x54] sm:$0xf0] %vm3973_vm11, %v4321_v54  }
 0x268   :  { %v4396_v36 = vpop.permute.xlu1 %4395  }
 0x269   :  { %v4567_v52 = vld [vmem:[#allocation0 + $0x10] sm:$0xf]  ;;  %v4574_v32 = vld [vmem:[#allocation0 + $0x18] sm:$0xf]  ;;  %4399 = vst.msk [vmem:[#allocation0 + $0xb0] sm:$0xf] %vm3973_vm11, %v4396_v36  }
 0x26a   :  { %4401 = vst.msk [vmem:[#allocation0 + $0xb4] sm:$0xf0] %vm3973_vm11, %v4396_v36   ;;  %5653 = vst [vmem:[%s9465_s1 + $0x8] sm:$0xf] %v4567_v52  ;;  %v4651_v29 = vld [vmem:[#allocation0 + $0x70] sm:$0xf]  ;;  %v4371_v33 = vpop.permute.xlu0 %4370  }
 0x26b   :  { %5654 = vst [vmem:[%s9465_s1 + $0xc] sm:$0xf] %v4574_v32  ;;  %v4658_v26 = vld [vmem:[#allocation0 + $0x78] sm:$0xf]  ;;  %5665 = vst [vmem:[%s9465_s1 + $0x38] sm:$0xf] %v4651_v29 }
 0x26c   :  { %5666 = vst [vmem:[%s9465_s1 + $0x3c] sm:$0xf] %v4658_v26  ;;  %4374 = vst.msk [vmem:[#allocation0 + $0x90] sm:$0xf] %vm3973_vm11, %v4371_v33  }
 0x26d   :  { %4376 = vst.msk [vmem:[#allocation0 + $0x94] sm:$0xf0] %vm3973_vm11, %v4371_v33   ;;  %v4446_v47 = vpop.permute.xlu1 %4445   ;;  %v4623_v21 = vld [vmem:[#allocation0 + $0x50] sm:$0xf] }
 0x26e   :  { %v4630_v34 = vld [vmem:[#allocation0 + $0x58] sm:$0xf]  ;;  %4449 = vst.msk [vmem:[#allocation0 + $0xf0] sm:$0xf] %vm3973_vm11, %v4446_v47   ;;  %4451 = vst.msk [vmem:[#allocation0 + $0xf4] sm:$0xf0] %vm3973_vm11, %v4446_v47  }
 0x26f   :  { %5661 = vst [vmem:[%s9465_s1 + $0x28] sm:$0xf] %v4623_v21  ;;  %5662 = vst [vmem:[%s9465_s1 + $0x2c] sm:$0xf] %v4630_v34 }
 0x270   :  { %v4707_v39 = vld [vmem:[#allocation0 + $0xb0] sm:$0xf]  ;;  %v4421_v61 = vpop.permute.xlu0 %4420  }
 0x271   :  { %v4714_v37 = vld [vmem:[#allocation0 + $0xb8] sm:$0xf]  ;;  %5673 = vst [vmem:[%s9465_s1 + $0x58] sm:$0xf] %v4707_v39  ;;  %4424 = vst.msk [vmem:[#allocation0 + $0xd0] sm:$0xf] %vm3973_vm11, %v4421_v61  }
 0x272   :  { %5674 = vst [vmem:[%s9465_s1 + $0x5c] sm:$0xf] %v4714_v37  ;;  %4426 = vst.msk [vmem:[#allocation0 + $0xd4] sm:$0xf0] %vm3973_vm11, %v4421_v61   ;;  %v4496_v14 = vpop.permute.xlu1 %4495  }
 0x273   :  { %v4679_v41 = vld [vmem:[#allocation0 + $0x90] sm:$0xf]  ;;  %4499 = vst.msk [vmem:[#allocation0 + $0x130] sm:$0xf] %vm3973_vm11, %v4496_v14   ;;  %4501 = vst.msk [vmem:[#allocation0 + $0x134] sm:$0xf0] %vm3973_vm11, %v4496_v14  }
 0x274   :  { %v4686_v40 = vld [vmem:[#allocation0 + $0x98] sm:$0xf]  ;;  %5669 = vst [vmem:[%s9465_s1 + $0x48] sm:$0xf] %v4679_v41 }
 0x275   :  { %5670 = vst [vmem:[%s9465_s1 + $0x4c] sm:$0xf] %v4686_v40  ;;  %v4763_v12 = vld [vmem:[#allocation0 + $0xf0] sm:$0xf]  ;;  %v4770_v43 = vld [vmem:[#allocation0 + $0xf8] sm:$0xf]  ;;  %v4471_v46 = vpop.permute.xlu0 %4470  }
 0x276   :  { %5681 = vst [vmem:[%s9465_s1 + $0x78] sm:$0xf] %v4763_v12  ;;  %5682 = vst [vmem:[%s9465_s1 + $0x7c] sm:$0xf] %v4770_v43 }
 0x277   :  { %4474 = vst.msk [vmem:[#allocation0 + $0x110] sm:$0xf] %vm3973_vm11, %v4471_v46   ;;  %4476 = vst.msk [vmem:[#allocation0 + $0x114] sm:$0xf0] %vm3973_vm11, %v4471_v46  }
 0x278   :  { %v4546_v48 = vpop.permute.xlu1 %4545   ;;  %v4735_v50 = vld [vmem:[#allocation0 + $0xd0] sm:$0xf] }
 0x279   :  { %v4742_v22 = vld [vmem:[#allocation0 + $0xd8] sm:$0xf]  ;;  %4549 = vst.msk [vmem:[#allocation0 + $0x170] sm:$0xf] %vm3973_vm11, %v4546_v48   ;;  %4551 = vst.msk [vmem:[#allocation0 + $0x174] sm:$0xf0] %vm3973_vm11, %v4546_v48  }
 0x27a   :  { %5677 = vst [vmem:[%s9465_s1 + $0x68] sm:$0xf] %v4735_v50  ;;  %5678 = vst [vmem:[%s9465_s1 + $0x6c] sm:$0xf] %v4742_v22  ;;  %v4819_v53 = vld [vmem:[#allocation0 + $0x130] sm:$0xf]  ;;  %v4521_v45 = vpop.permute.xlu0 %4520  }
 0x27b   :  { %v4826_v55 = vld [vmem:[#allocation0 + $0x138] sm:$0xf]  ;;  %5689 = vst [vmem:[%s9465_s1 + $0x98] sm:$0xf] %v4819_v53  ;;  %4524 = vst.msk [vmem:[#allocation0 + $0x150] sm:$0xf] %vm3973_vm11, %v4521_v45  }
 0x27c   :  { %5690 = vst [vmem:[%s9465_s1 + $0x9c] sm:$0xf] %v4826_v55  ;;  %4526 = vst.msk [vmem:[#allocation0 + $0x154] sm:$0xf0] %vm3973_vm11, %v4521_v45  }
 0x27e   :  { %v4791_v42 = vld [vmem:[#allocation0 + $0x110] sm:$0xf]  ;;  %v4798_v60 = vld [vmem:[#allocation0 + $0x118] sm:$0xf] }
 0x27f   :  { %5685 = vst [vmem:[%s9465_s1 + $0x88] sm:$0xf] %v4791_v42  ;;  %5686 = vst [vmem:[%s9465_s1 + $0x8c] sm:$0xf] %v4798_v60 }
 0x280   :  { %v4875_v57 = vld [vmem:[#allocation0 + $0x170] sm:$0xf]  ;;  %v4882_v62 = vld [vmem:[#allocation0 + $0x178] sm:$0xf] }
 0x281   :  { %5697 = vst [vmem:[%s9465_s1 + $0xb8] sm:$0xf] %v4875_v57  ;;  %5698 = vst [vmem:[%s9465_s1 + $0xbc] sm:$0xf] %v4882_v62 }
 0x282   :  { %v4847_v56 = vld [vmem:[#allocation0 + $0x150] sm:$0xf] }
 0x283   :  { %v4854_v51 = vld [vmem:[#allocation0 + $0x158] sm:$0xf]  ;;  %5693 = vst [vmem:[%s9465_s1 + $0xa8] sm:$0xf] %v4847_v56 }
 0x284   :  { %5694 = vst [vmem:[%s9465_s1 + $0xac] sm:$0xf] %v4854_v51 }

// kernel: _lambda_.1
= control target key start
LH: loop header
LB: loop body
LE: loop exit
PB: predicated region body
PF: predicated region fallthrough
CT: control target
= control target key end

     0   :  { %s1611_s27 = smov 0   ;;  %s1613_s28 = smov 0   ;;  %s2008_s0 = inlined_call_operand.vmem [shape: f32[2,4,256], index: 0, kind: input, shape index: {}]   ;;  %s2009_s1 = inlined_call_operand.vmem [shape: f32[12,256], index: 1, kind: input, shape index: {}]   ;;  %s2010_s2 = inlined_call_operand.vmem [shape: f32[2,12,4,256], index: 2, kind: input, shape index: {}]   ;;  %s2011_s3 = inlined_call_operand.vmem [shape: f32[4,4], index: 3, kind: input, shape index: {}]   ;;  %s2012_s4 = inlined_call_operand.vmem [shape: f32[4,1], index: 4, kind: input, shape index: {}]   ;;  %s2013_s5 = inlined_call_operand.vmem [shape: f32[4,4], index: 5, kind: input, shape index: {}]   ;;  %s2014_s6 = inlined_call_operand.vmem [shape: f32[4,4], index: 6, kind: input, shape index: {}]   ;;  %s2015_s7 = inlined_call_operand.vmem [shape: f32[4,1], index: 7, kind: input, shape index: {}]   ;;  %s2016_s8 = inlined_call_operand.vmem [shape: f32[2,4,256], index: 8, kind: output, shape index: {}]  }
   0x1   :  { %s1615_s29 = smov 0  }
   0x2 LB: > { %s30_s30 = sadd.s32 1, %s1556_s28  ;;  %p1415_p0 = scmp.ge.s32.totalorder %s1560_s29, 1  ;;  %s1560_s29 = sphi %s1615_s29, %s18_s29   ;;  %s1556_s28 = sphi %s1613_s28, %s2043_s28   ;;  %s1552_s27 = sphi %s1611_s27, %s2042_s27  }
   0x3   : > { %p32_p1 = scmp.ge.s32.totalorder %s30_s30, 2  ;;  %p304_p2 = scmp.lt.s32.totalorder %s1560_s29, 3 }
   0x5   : > { %s2045_s30 = smov (%p32_p1, %s30_s30), 0  ;;  %p305_p3 = pnand %p1415_p0, %p304_p2 }
   0x7   : > { %308 = sbr.rel (%p305_p3) target bundleno = 233 (0xe9), region = 52 }
   0xc   : > { %v388_v0 = vld [vmem:[%s2011_s3] sm:$0xf]  ;;  %v1562_v1 = vmov 0   ;;  %v1563_v2 = vmov 2   ;;  %v1564_v3 = vmov 1   ;;  %v1565_v4 = vmov 3  }
   0xd   : > { %1476 = vset.pattern.permute.xlu0 %v1562_v1  ;;  %1478 = vset.pattern.permute.xlu1 %v1563_v2  ;;  %v389_v5 = vld [vmem:[%s2012_s4] sm:$0xf]  ;;  %p357_p4 = scmp.lt.s32.totalorder %s1552_s27, 1  ;;  %v396_v9 = vlaneseq  ;;  %v1431_v25 = vld [vmem:[%s2009_s1 + $0x6] ss:$8 sm:$0x3] }
   0xe   : > { %418 = vperm.xlu0 %1476, %v388_v0   ;;  %469 = vperm.xlu1 %1478, %v388_v0   ;;  %v390_v6 = vld [vmem:[%s2013_s5] sm:$0xf]  ;;  %v1433_v26 = vld [vmem:[%s2009_s1 + $0x7] ss:$8 sm:$0x3] }
   0xf   : > { %v391_v7 = vld [vmem:[%s2014_s6] sm:$0xf]  ;;  %s2047_s27 = smov (!%p357_p4, %s1552_s27), 1  ;;  %v1651_v10 = vshrl.u32 %v396_v9, 7 }
  0x10   : > { %v392_v8 = vld [vmem:[%s2015_s7] sm:$0xf]  ;;  %s1445_s19 = sshll.u32 %s2047_s27, 3  ;;  %s1447_s23 = smul.u32 96, %s2047_s27 }
  0x11   : > { %s364_s22 = scalar_lea.vmem %s2008_s0, %s1445_s19  ;;  %v1659_v11 = vsub.s32 4, %v1651_v10  ;;  %v1662_v12 = vsub.s32 5, %v1651_v10  ;;  %v1667_v14 = vsub.s32 6, %v1651_v10  ;;  %v1674_v17 = vsub.s32 7, %v1651_v10  ;;  %s385_s18 = scalar_lea.vmem %s2016_s8, %s1445_s19 }
  0x12   : > { %1477 = vset.pattern.permute.xlu0 %v1564_v3  ;;  %1479 = vset.pattern.permute.xlu1 %v1565_v4  ;;  %v1664_v13 = vld [vmem:[%s364_s22] sm:$0xff]  ;;  %s1689_s10 = scalar_lea.vmem %s2010_s2, %s1447_s23  ;;  %v1692_v21 = vsub.s32 0, %v1651_v10  ;;  %v1695_v22 = vsub.s32 1, %v1651_v10  ;;  %v1435_v42 = vld [vmem:[%s2009_s1 + $0x10] ss:$8 sm:$0x3] }
  0x13   : > { %443 = vperm.xlu0 %1477, %v388_v0   ;;  %495 = vperm.xlu1 %1479, %v388_v0   ;;  %v1684_v20 = vld [vmem:[%s2009_s1] ss:$8 sm:$0x3]  ;;  %v1700_v23 = vld [vmem:[%s2009_s1 + $0x1] ss:$8 sm:$0x3] }
  0x14   : > { %v1705_v24 = vld [vmem:[%s2009_s1 + $0x2] ss:$8 sm:$0x3]  ;;  %v1432_v27 = vld [vmem:[%s1689_s10 + $0x30] sm:$0xff]  ;;  %v1434_v28 = vld [vmem:[%s1689_s10 + $0x38] sm:$0xff]  ;;  %v399_v29 = vrot.slane %v1684_v20, %v1692_v21  ;;  %v403_v30 = vrot.slane %v1684_v20, %v1695_v22  ;;  %v551_v31 = vrot.slane %v1700_v23, %v1692_v21  ;;  %v555_v34 = vrot.slane %v1700_v23, %v1695_v22 }
  0x15   : > { %v1425_v32 = vld [vmem:[%s2009_s1 + $0x3] ss:$8 sm:$0x3]  ;;  %v1427_v33 = vld [vmem:[%s2009_s1 + $0x4] ss:$8 sm:$0x3]  ;;  %v571_v35 = vrot.slane %v1705_v24, %v1692_v21  ;;  %v877_v37 = vrot.slane %v1431_v25, %v1692_v21  ;;  %v881_v38 = vrot.slane %v1431_v25, %v1695_v22  ;;  %v897_v40 = vrot.slane %v1433_v26, %v1692_v21 }
  0x16   : > { %v1734_v36 = vld [vmem:[%s2009_s1 + $0x5] ss:$8 sm:$0x3]  ;;  %v1426_v39 = vld [vmem:[%s1689_s10 + $0x18] sm:$0xff]  ;;  %v901_v41 = vrot.slane %v1433_v26, %v1695_v22  ;;  %v885_v44 = vcombine.high %v1432_v27, %v1432_v27  ;;  %v905_v45 = vcombine.high %v1434_v28, %v1434_v28  ;;  %v575_v46 = vrot.slane %v1705_v24, %v1695_v22  ;;  %v1424_v61 = vld [vmem:[%s1689_s10 + $0x10] sm:$0xff] }
  0x17   : > { %1480 = vset.pattern.permute.xlu1 %v1562_v1  ;;  %1481 = vset.pattern.permute.xlu0 %v1562_v1  ;;  %v1428_v43 = vld [vmem:[%s1689_s10 + $0x20] sm:$0xff]  ;;  %v703_v47 = vrot.slane %v1425_v32, %v1692_v21  ;;  %v707_v48 = vrot.slane %v1425_v32, %v1695_v22  ;;  %v723_v49 = vrot.slane %v1427_v33, %v1692_v21  ;;  %v1437_v50 = vld [vmem:[%s2009_s1 + $0x11] ss:$8 sm:$0x3]  ;;  %v1422_v60 = vld [vmem:[%s1689_s10 + $0x8] sm:$0xff] }
  0x18   : > { %522 = vperm.xlu1 %1480, %v389_v5   ;;  %1115 = vperm.xlu0 %1481, %v390_v6   ;;  %v1436_v51 = vld [vmem:[%s1689_s10 + $0x40] sm:$0xff]  ;;  %v727_v52 = vrot.slane %v1427_v33, %v1695_v22  ;;  %v745_v53 = vrot.slane %v1734_v36, %v1692_v21  ;;  %v749_v54 = vrot.slane %v1734_v36, %v1695_v22  ;;  %v1439_v55 = vld [vmem:[%s2009_s1 + $0x12] ss:$8 sm:$0x3]  ;;  %v1430_v0 = vld [vmem:[%s1689_s10 + $0x28] sm:$0xff] }
  0x19   : > { %v394_v56 = vld [vmem:[%s1689_s10] sm:$0xff]  ;;  %v711_v57 = vcombine.high %v1426_v39, %v1426_v39  ;;  %v919_v58 = vrot.slane %v1435_v42, %v1692_v21  ;;  %v923_v59 = vrot.slane %v1435_v42, %v1695_v22  ;;  %v731_v62 = vcombine.high %v1428_v43, %v1428_v43  ;;  %v1438_v9 = vld [vmem:[%s1689_s10 + $0x48] sm:$0xff] }
  0x1a   : > { %v887_v63 = vmul.f32 %v1432_v27, %v877_v37  ;;  %v941_v5 = vrot.slane %v1437_v50, %v1692_v21  ;;  %v559_v20 = vcombine.high %v1422_v60, %v1422_v60  ;;  %v579_v23 = vcombine.high %v1424_v61, %v1424_v61 }
  0x1b   : > { %v713_v24 = vmul.f32 %v1426_v39, %v703_v47  ;;  %v714_v25 = vmul.f32 %v711_v57, %v707_v48  ;;  %v733_v26 = vmul.f32 %v1428_v43, %v723_v49  ;;  %v734_v27 = vmul.f32 %v731_v62, %v727_v52  ;;  %v1441_v48 = vld [vmem:[%s2009_s1 + $0x13] ss:$8 sm:$0x3] }
  0x1c   : > { %1482 = vset.pattern.permute.xlu1 %v1564_v3  ;;  %1185 = vperm.xlu0 %1481, %v391_v7   ;;  %v753_v32 = vcombine.high %v1430_v0, %v1430_v0  ;;  %v929_v33 = vmul.f32 %v1436_v51, %v919_v58  ;;  %v581_v39 = vmul.f32 %v1424_v61, %v571_v35  ;;  %v1442_v58 = vld [vmem:[%s1689_s10 + $0x58] sm:$0xff] }
  0x1d   : > { %1129 = vperm.xlu1 %1482, %v390_v6   ;;  %v582_v47 = vmul.f32 %v579_v23, %v575_v46  ;;  %v755_v43 = vmul.f32 %v1430_v0, %v745_v53  ;;  %v735_v49 = vadd.f32 %v733_v26, %v713_v24  ;;  %v951_v57 = vmul.f32 %v1438_v9, %v941_v5 }
  0x1e   : > { %v756_v52 = vmul.f32 %v753_v32, %v749_v54  ;;  %v993_v0 = vcombine.high %v1442_v58, %v1442_v58  ;;  %v1814_v26 = vsub.s32 3, %v1651_v10 }
  0x20   : > { %1485 = vset.pattern.permute.xlu0 %v1565_v4 }
  0x21   : > { %1483 = vset.pattern.permute.xlu1 %v1563_v2  ;;  %1161 = vperm.xlu0 %1485, %v390_v6  }
  0x22   : > { %1145 = vperm.xlu1 %1483, %v390_v6   ;;  %v945_v6 = vrot.slane %v1437_v50, %v1695_v22  ;;  %v562_v50 = vmul.f32 %v559_v20, %v555_v34  ;;  %v989_v34 = vrot.slane %v1441_v48, %v1695_v22 }
  0x24   : > { %v1788_v53 = vadd.f32 %v582_v47, %v562_v50 }
  0x25   : > { %1488 = vset.pattern.permute.xlu0 %v1562_v1  ;;  %v888_v1 = vmul.f32 %v885_v44, %v881_v38  ;;  %v949_v38 = vcombine.high %v1438_v9, %v1438_v9  ;;  %v561_v44 = vmul.f32 %v1422_v60, %v551_v31  ;;  %v985_v31 = vrot.slane %v1441_v48, %v1692_v21 }
  0x26   : > { %1484 = vset.pattern.permute.xlu1 %v1564_v3  ;;  %1178 = vperm.xlu0 %1488, %v392_v8   ;;  %v908_v3 = vmul.f32 %v905_v45, %v901_v41  ;;  %v407_v8 = vcombine.high %v394_v56, %v394_v56  ;;  %v1773_v41 = vmul.f32 %v399_v29, %v394_v56  ;;  %v1440_v45 = vld [vmem:[%s1689_s10 + $0x50] sm:$0xff] }
  0x27   : > { %1210 = vperm.xlu1 %1484, %v391_v7   ;;  %v952_v56 = vmul.f32 %v949_v38, %v945_v6  ;;  %v1786_v46 = vadd.f32 %v581_v39, %v561_v44  ;;  %2026 = vst [vmem:[#allocation4_spill] sm:$0xff] %v1788_v53  ;;  %v995_v6 = vmul.f32 %v1442_v58, %v985_v31 }
  0x28   : > { %v910_v36 = vadd.f32 %v908_v3, %v888_v1  ;;  %v1775_v42 = vmul.f32 %v407_v8, %v403_v30  ;;  %v971_v30 = vcombine.high %v1440_v45, %v1440_v45  ;;  %v996_v8 = vmul.f32 %v993_v0, %v989_v34 }
  0x29   : > { %2025 = vst [vmem:[#allocation3_spill] sm:$0xff] %v1786_v46 }
  0x2a   : > { %1489 = vset.pattern.permute.xlu0 %v1565_v4  ;;  %2024 = vst [vmem:[#allocation2_spill] sm:$0xff] %v1775_v42  ;;  %v413_v35 = vcombine.low %v1773_v41, %v1775_v42 }
  0x2b   : > { %1486 = vset.pattern.permute.xlu1 %v1563_v2  ;;  %v907_v2 = vmul.f32 %v1434_v28, %v897_v40  ;;  %v967_v40 = vrot.slane %v1439_v55, %v1695_v22 }
  0x2c   : > { %1236 = vperm.xlu1 %1486, %v391_v7   ;;  %v415_v1 = vsub.f32 %v1664_v13, %v413_v35 }
  0x2d   : > { %v909_v28 = vadd.f32 %v907_v2, %v887_v63  ;;  %v974_v63 = vmul.f32 %v971_v30, %v967_v40  ;;  %v587_v2 = vcombine.low %v1786_v46, %v1788_v53 }
  0x2e   : > { %v425_v20 = vrot.slane %v415_v1, %v1692_v21  ;;  %v449_v38 = vrot.slane %v415_v1, %v1695_v22  ;;  %v429_v48 = vrot.slane %v415_v1, %v1659_v11 }
  0x2f   : > { %v1800_v9 = vsub.f32 %v1664_v13, %v587_v2 }
  0x30   : > { %1487 = vset.pattern.permute.xlu1 %v1565_v4  ;;  %v927_v4 = vcombine.high %v1436_v51, %v1436_v51  ;;  %v736_v51 = vadd.f32 %v734_v27, %v714_v25  ;;  %v1811_v25 = vsub.s32 2, %v1651_v10  ;;  %v459_v30 = vrot.slane %v449_v38, %v1695_v22 }
  0x31   : > { %1262 = vperm.xlu1 %1487, %v391_v7   ;;  %v963_v7 = vrot.slane %v1439_v55, %v1692_v21  ;;  %v931_v55 = vadd.f32 %v929_v33, %v909_v28  ;;  %v594_v27 = vrot.slane %v1800_v9, %v1692_v21  ;;  %v1821_v33 = vrot.slane %v425_v20, %v1692_v21 }
  0x32   : > { %v930_v37 = vmul.f32 %v927_v4, %v923_v59  ;;  %v1790_v59 = vadd.f32 %v755_v43, %v735_v49  ;;  %v1792_v54 = vadd.f32 %v756_v52, %v736_v51  ;;  %v614_v40 = vrot.slane %v1800_v9, %v1695_v22 }
  0x33   : > { %v973_v60 = vmul.f32 %v1440_v45, %v963_v7  ;;  %v953_v61 = vadd.f32 %v951_v57, %v931_v55  ;;  %v501_v45 = vrot.slane %v415_v1, %v1814_v26  ;;  %v658_v50 = vrot.slane %v1800_v9, %v1814_v26 }
  0x34   : > { %v932_v29 = vadd.f32 %v930_v37, %v910_v36  ;;  %2027 = vst [vmem:[#allocation5_spill] sm:$0xff] %v1790_v59  ;;  %2028 = vst [vmem:[#allocation6_spill] sm:$0xff] %v1792_v54  ;;  %v761_v3 = vcombine.low %v1790_v59, %v1792_v54  ;;  %v475_v36 = vrot.slane %v415_v1, %v1811_v25 }
  0x35   : > { %v975_v4 = vadd.f32 %v973_v60, %v953_v61  ;;  %v636_v37 = vrot.slane %v1800_v9, %v1811_v25  ;;  %v604_v47 = vrot.slane %v594_v27, %v1692_v21  ;;  %v453_v49 = vrot.slane %v415_v1, %v1662_v12 }
  0x36   : > { %v954_v62 = vadd.f32 %v952_v56, %v932_v29  ;;  %v1803_v7 = vsub.f32 %v1664_v13, %v761_v3  ;;  %v485_v52 = vrot.slane %v475_v36, %v1811_v25  ;;  %v479_v57 = vrot.slane %v415_v1, %v1667_v14 }
  0x37   : > { %v1806_v23 = vadd.f32 %v995_v6, %v975_v4  ;;  %v505_v55 = vrot.slane %v415_v1, %v1674_v17  ;;  %v646_v29 = vrot.slane %v636_v37, %v1811_v25  ;;  %v624_v58 = vrot.slane %v614_v40, %v1695_v22 }
  0x38   : > { %v976_v5 = vadd.f32 %v974_v63, %v954_v62  ;;  %v768_v32 = vrot.slane %v1803_v7, %v1692_v21  ;;  %v810_v10 = vrot.slane %v1803_v7, %v1811_v25  ;;  %v788_v44 = vrot.slane %v1803_v7, %v1695_v22 }
  0x39   : > { %2029 = vst [vmem:[#allocation7_spill] sm:$0xff] %v1806_v23  ;;  %v832_v39 = vrot.slane %v1803_v7, %v1814_v26  ;;  %v1854_v34 = vrot.slane %v501_v45, %v1814_v26  ;;  %v1857_v35 = vrot.slane %v658_v50, %v1814_v26  ;;  %v439_v61 = vrot.slane %v429_v48, %v1692_v21 }
  0x3a   : > { %v1808_v24 = vadd.f32 %v996_v8, %v976_v5  ;;  %v778_v43 = vrot.slane %v768_v32, %v1692_v21  ;;  %v820_v56 = vrot.slane %v810_v10, %v1811_v25  ;;  %v798_v31 = vrot.slane %v788_v44, %v1695_v22 }
  0x3b   : > { %v1860_v60 = vrot.slane %v832_v39, %v1814_v26  ;;  %v1864_v62 = vrot.slane %v453_v49, %v1695_v22  ;;  %v598_v63 = vrot.slane %v1800_v9, %v1659_v11  ;;  %v618_v0 = vrot.slane %v1800_v9, %v1662_v12 }
  0x3c   : > { %2030 = vst [vmem:[#allocation8_spill] sm:$0xff] %v1808_v24  ;;  %v1001_v28 = vcombine.low %v1806_v23, %v1808_v24  ;;  %v489_v2 = vrot.slane %v479_v57, %v1811_v25  ;;  %v1873_v3 = vrot.slane %v505_v55, %v1814_v26  ;;  %v640_v4 = vrot.slane %v1800_v9, %v1667_v14 }
  0x3d   : > { %v662_v20 = vrot.slane %v1800_v9, %v1674_v17  ;;  %v772_v27 = vrot.slane %v1803_v7, %v1659_v11  ;;  %v792_v32 = vrot.slane %v1803_v7, %v1662_v12  ;;  %v836_v36 = vrot.slane %v1803_v7, %v1674_v17 }
  0x3e   : > { %v1003_v51 = vsub.f32 %v1664_v13, %v1001_v28  ;;  %v814_v28 = vrot.slane %v1803_v7, %v1667_v14  ;;  %v608_v44 = vrot.slane %v598_v63, %v1692_v21  ;;  %v628_v45 = vrot.slane %v618_v0, %v1695_v22 }
  0x3f   : > { %v650_v50 = vrot.slane %v640_v4, %v1811_v25  ;;  %v672_v49 = vrot.slane %v662_v20, %v1814_v26  ;;  %v846_v0 = vrot.slane %v836_v36, %v1814_v26 }
  0x40   : > { %v1008_v1 = vrot.slane %v1003_v51, %v1692_v21  ;;  %v1050_v5 = vrot.slane %v1003_v51, %v1811_v25  ;;  %v1028_v6 = vrot.slane %v1003_v51, %v1695_v22  ;;  %v1072_v8 = vrot.slane %v1003_v51, %v1814_v26 }
  0x41   : > { %v1012_v37 = vrot.slane %v1003_v51, %v1659_v11  ;;  %v1032_v10 = vrot.slane %v1003_v51, %v1662_v12  ;;  %v1054_v38 = vrot.slane %v1003_v51, %v1667_v14  ;;  %v1076_v9 = vrot.slane %v1003_v51, %v1674_v17 }
  0x42   : > { %v1018_v40 = vrot.slane %v1008_v1, %v1692_v21  ;;  %v1060_v39 = vrot.slane %v1050_v5, %v1811_v25  ;;  %v1038_v7 = vrot.slane %v1028_v6, %v1695_v22  ;;  %v1082_v48 = vrot.slane %v1072_v8, %v1814_v26 }
  0x43   : > { %v782_v51 = vrot.slane %v772_v27, %v1692_v21  ;;  %v802_v1 = vrot.slane %v792_v32, %v1695_v22  ;;  %v824_v63 = vrot.slane %v814_v28, %v1811_v25  ;;  %v1022_v4 = vrot.slane %v1012_v37, %v1692_v21 }
  0x44   : > { %v1042_v5 = vrot.slane %v1032_v10, %v1695_v22  ;;  %v1064_v6 = vrot.slane %v1054_v38, %v1811_v25  ;;  %v1910_v8 = vrot.slane %v1076_v9, %v1814_v26 }
  0x89   : > { %v419_v57 = vpop.permute.xlu0 %418  ;;  %v470_v55 = vpop.permute.xlu1 %469 }
  0x8a   : > { %v440_v20 = vmul.f32 %v1821_v33, %v419_v57  ;;  %v609_v19 = vmul.f32 %v604_v47, %v419_v57  ;;  %v783_v18 = vmul.f32 %v778_v43, %v419_v57  ;;  %v1023_v27 = vmul.f32 %v1018_v40, %v419_v57 }
  0x8b   : > { %v490_v15 = vmul.f32 %v485_v52, %v470_v55  ;;  %v651_v32 = vmul.f32 %v646_v29, %v470_v55  ;;  %v825_v16 = vmul.f32 %v820_v56, %v470_v55  ;;  %v1065_v28 = vmul.f32 %v1060_v39, %v470_v55 }
  0x8c   : > { %v441_v24 = vmul.f32 %v439_v61, %v419_v57  ;;  %v491_v36 = vmul.f32 %v489_v2, %v470_v55  ;;  %v610_v54 = vmul.f32 %v608_v44, %v419_v57  ;;  %v652_v37 = vmul.f32 %v650_v50, %v470_v55 }
  0x8d   : > { %v784_v23 = vmul.f32 %v782_v51, %v419_v57  ;;  %v826_v38 = vmul.f32 %v824_v63, %v470_v55  ;;  %v1024_v42 = vmul.f32 %v1022_v4, %v419_v57  ;;  %v1066_v9 = vmul.f32 %v1064_v6, %v470_v55 }
  0x8e   : > { %v444_v53 = vpop.permute.xlu0 %443  ;;  %v496_v10 = vpop.permute.xlu1 %495 }
  0x8f   : > { %v464_v59 = vmul.f32 %v459_v30, %v444_v53  ;;  %v629_v46 = vmul.f32 %v624_v58, %v444_v53  ;;  %v803_v33 = vmul.f32 %v798_v31, %v444_v53  ;;  %v1043_v47 = vmul.f32 %v1038_v7, %v444_v53 }
  0x90   : > { %v516_v43 = vmul.f32 %v1854_v34, %v496_v10  ;;  %v673_v52 = vmul.f32 %v1857_v35, %v496_v10  ;;  %v847_v29 = vmul.f32 %v1860_v60, %v496_v10  ;;  %v1087_v56 = vmul.f32 %v1082_v48, %v496_v10 }
  0x91   : > { %v466_v61 = vadd.f32 %v464_v59, %v440_v20  ;;  %v631_v2 = vadd.f32 %v629_v46, %v609_v19  ;;  %v805_v40 = vadd.f32 %v803_v33, %v783_v18  ;;  %v1045_v44 = vadd.f32 %v1043_v47, %v1023_v27 }
  0x92   : > { %v465_v50 = vmul.f32 %v1864_v62, %v444_v53  ;;  %v517_v39 = vmul.f32 %v1873_v3, %v496_v10  ;;  %v630_v57 = vmul.f32 %v628_v45, %v444_v53  ;;  %v674_v30 = vmul.f32 %v672_v49, %v496_v10 }
  0x93   : > { %v492_v58 = vadd.f32 %v490_v15, %v466_v61  ;;  %v653_v31 = vadd.f32 %v651_v32, %v631_v2  ;;  %v827_v7 = vadd.f32 %v825_v16, %v805_v40  ;;  %v1067_v55 = vadd.f32 %v1065_v28, %v1045_v44  ;;  %v523_v34 = vpop.permute.xlu1 %522 }
  0x94   : > { %v467_v51 = vadd.f32 %v465_v50, %v441_v24  ;;  %v632_v35 = vadd.f32 %v630_v57, %v610_v54  ;;  %v804_v63 = vmul.f32 %v802_v1, %v444_v53  ;;  %v848_v60 = vmul.f32 %v846_v0, %v496_v10  ;;  %v1920_v1 = vpop.permute.xlu0 %1115 }
  0x95   : > { %v518_v48 = vadd.f32 %v516_v43, %v492_v58  ;;  %v675_v59 = vadd.f32 %v673_v52, %v653_v31  ;;  %v849_v19 = vadd.f32 %v847_v29, %v827_v7  ;;  %v1089_v18 = vadd.f32 %v1087_v56, %v1067_v55 }
  0x96   : > { %v493_v46 = vadd.f32 %v491_v36, %v467_v51  ;;  %v654_v4 = vadd.f32 %v652_v37, %v632_v35  ;;  %v806_v62 = vadd.f32 %v804_v63, %v784_v23  ;;  %v1044_v6 = vmul.f32 %v1042_v5, %v444_v53 }
  0x97   : > { %v525_v3 = vadd.f32 %v523_v34, %v518_v48  ;;  %v677_v45 = vadd.f32 %v675_v59, %v523_v34  ;;  %v851_v49 = vadd.f32 %v849_v19, %v523_v34  ;;  %v1091_v15 = vadd.f32 %v1089_v18, %v523_v34 }
  0x98   : > { %v1918_v20 = vpop.permute.xlu1 %1129  ;;  %v519_v16 = vadd.f32 %v517_v39, %v493_v46  ;;  %v676_v27 = vadd.f32 %v674_v30, %v654_v4  ;;  %v828_v24 = vadd.f32 %v826_v38, %v806_v62  ;;  %v1046_v54 = vadd.f32 %v1044_v6, %v1024_v42  ;;  %v1929_v57 = vpop.permute.xlu0 %1185 }
  0x99   : > { %v527_v0 = vsub.f32 0.0, %v525_v3  ;;  %v679_v32 = vsub.f32 0.0, %v677_v45  ;;  %v853_v28 = vsub.f32 0.0, %v851_v49  ;;  %v1093_v33 = vsub.f32 0.0, %v1091_v15 }
  0x9a   : > { %v526_v36 = vadd.f32 %v523_v34, %v519_v16  ;;  %v678_v37 = vadd.f32 %v676_v27, %v523_v34  ;;  %v850_v23 = vadd.f32 %v848_v60, %v828_v24  ;;  %v1068_v53 = vadd.f32 %v1066_v9, %v1046_v54 }
  0x9b   : > { %v529_v5 = vmul.f32 1.442695, %v527_v0  ;;  %v681_v47 = vmul.f32 1.442695, %v679_v32  ;;  %v855_v43 = vmul.f32 1.442695, %v853_v28  ;;  %v1088_v52 = vmul.f32 %v1910_v8, %v496_v10 }
  0x9c   : > { %v1095_v29 = vmul.f32 1.442695, %v1093_v33  ;;  %v528_v56 = vsub.f32 0.0, %v526_v36  ;;  %v680_v61 = vsub.f32 0.0, %v678_v37  ;;  %v852_v38 = vadd.f32 %v850_v23, %v523_v34 }
  0x9d   : > { %1502 = vpow2.f32 %v529_v5  ;;  %v1090_v42 = vadd.f32 %v1088_v52, %v1068_v53  ;;  %v1923_v2 = vpop.permute.xlu1 %1145  ;;  %v2031_v40 = vrot.slane %v1664_v13, %v1659_v11  ;;  %v2032_v10 = vrot.slane %v1664_v13, %v1662_v12  ;;  %v2035_v5 = vld [vmem:[#allocation3_spill] sm:$0xff] }
  0x9e   : > { %1504 = vpow2.f32 %v681_v47  ;;  %v531_v9 = vmul.f32 1.442695, %v528_v56  ;;  %v683_v50 = vmul.f32 1.442695, %v680_v61  ;;  %v854_v39 = vsub.f32 0.0, %v852_v38  ;;  %v2036_v61 = vld [vmem:[#allocation5_spill] sm:$0xff] }
  0x9f   : > { %v1206_v44 = vrot.slane %v2031_v40, %v1692_v21  ;;  %1506 = vpow2.f32 %v855_v43  ;;  %v1092_v8 = vadd.f32 %v1090_v42, %v523_v34  ;;  %v1230_v30 = vrot.slane %v2032_v10, %v1695_v22  ;;  %v2039_v10 = vld [vmem:[#allocation4_spill] sm:$0xff] }
  0xa0   : > { %1508 = vpow2.f32 %v1095_v29  ;;  %v857_v58 = vmul.f32 1.442695, %v854_v39  ;;  %v2033_v34 = vrot.slane %v1664_v13, %v1667_v14  ;;  %v2034_v48 = vrot.slane %v1664_v13, %v1674_v17 }
  0xa1   : > { %1510 = vpow2.f32 %v531_v9  ;;  %v1094_v31 = vsub.f32 0.0, %v1092_v8  ;;  %v1208_v11 = vmul.f32 %v1206_v44, %v1929_v57  ;;  %v2037_v44 = vld [vmem:[#allocation2_spill] sm:$0xff] }
  0xa2   : > { %1512 = vpow2.f32 %v683_v50  ;;  %v1936_v7 = vpop.permute.xlu1 %1210  ;;  %v1256_v35 = vrot.slane %v2033_v34, %v1811_v25  ;;  %v1282_v59 = vrot.slane %v2034_v48, %v1814_v26  ;;  %v2038_v50 = vld [vmem:[#allocation7_spill] sm:$0xff]  ;;  %v2041_v48 = vld [vmem:[#allocation8_spill] sm:$0xff] }
  0xa3   : > { %1514 = vpow2.f32 %v857_v58  ;;  %v1097_v55 = vmul.f32 1.442695, %v1094_v31  ;;  %v1232_v51 = vmul.f32 %v1230_v30, %v1936_v7 }
  0xa5   : > { %1516 = vpow2.f32 %v1097_v55  ;;  %v1234_v12 = vadd.f32 %v1232_v51, %v1208_v11  ;;  %v2040_v11 = vld [vmem:[#allocation6_spill] sm:$0xff] }
  0xa7   : > { %v1943_v63 = vpop.permute.xlu1 %1236 }
  0xa8   : > { %v1258_v60 = vmul.f32 %v1256_v35, %v1943_v63 }
  0xaa   : > { %v1503_v19 = vpop.eup %1502  ;;  %v1260_v18 = vadd.f32 %v1258_v60, %v1234_v12 }
  0xab   : > { %v1505_v46 = vpop.eup %1504  ;;  %v533_v4 = vadd.f32 1.0, %v1503_v19 }
  0xac   : > { %v1507_v62 = vpop.eup %1506  ;;  %v685_v6 = vadd.f32 1.0, %v1505_v46  ;;  %v1950_v3 = vpop.permute.xlu1 %1262  ;;  %v1216_v46 = vrot.slane %v1664_v13, %v1695_v22 }
  0xad   : > { %v1509_v14 = vpop.eup %1508  ;;  %1518 = vrcp.f32 %v533_v4  ;;  %v859_v45 = vadd.f32 1.0, %v1507_v62  ;;  %v1284_v49 = vmul.f32 %v1282_v59, %v1950_v3  ;;  %v1192_v4 = vrot.slane %v1664_v13, %v1692_v21 }
  0xae   : > { %v1511_v15 = vpop.eup %1510  ;;  %1520 = vrcp.f32 %v685_v6  ;;  %v1099_v16 = vadd.f32 1.0, %v1509_v14  ;;  %v1226_v62 = vrot.slane %v1216_v46, %v1695_v22  ;;  %v1242_v6 = vrot.slane %v1664_v13, %v1811_v25 }
  0xaf   : > { %v1513_v27 = vpop.eup %1512  ;;  %1522 = vrcp.f32 %v859_v45  ;;  %v534_v17 = vadd.f32 1.0, %v1511_v15  ;;  %v1953_v24 = vadd.f32 %v1284_v49, %v1260_v18  ;;  %v1202_v14 = vrot.slane %v1192_v4, %v1692_v21 }
  0xb0   : > { %v1515_v54 = vpop.eup %1514  ;;  %1524 = vrcp.f32 %v1099_v16  ;;  %v686_v0 = vadd.f32 1.0, %v1513_v27  ;;  %v1231_v49 = vmul.f32 %v1226_v62, %v1936_v7  ;;  %v1252_v15 = vrot.slane %v1242_v6, %v1811_v25 }
  0xb1   : > { %1526 = vrcp.f32 %v534_v17  ;;  %v860_v32 = vadd.f32 1.0, %v1515_v54  ;;  %v1207_v16 = vmul.f32 %v1202_v14, %v1929_v57  ;;  %v1268_v27 = vrot.slane %v1664_v13, %v1814_v26 }
  0xb2   : > { %v1517_v28 = vpop.eup %1516  ;;  %1528 = vrcp.f32 %v686_v0 }
  0xb3   : > { %1530 = vrcp.f32 %v860_v32  ;;  %v1100_v33 = vadd.f32 1.0, %v1517_v28  ;;  %v1278_v7 = vrot.slane %v1268_v27, %v1814_v26 }
  0xb5   : > { %1532 = vrcp.f32 %v1100_v33  ;;  %v1257_v33 = vmul.f32 %v1252_v15, %v1943_v63 }
  0xba   : > { %v1519_v36 = vpop.eup %1518 }
  0xbb   : > { %v1521_v37 = vpop.eup %1520  ;;  %v537_v23 = vmul.f32 %v1519_v36, %v1773_v41 }
  0xbc   : > { %v1523_v53 = vpop.eup %1522  ;;  %v689_v47 = vmul.f32 %v1521_v37, %v2035_v5  ;;  %v693_v43 = vadd.f32 %v1521_v37, %v1519_v36  ;;  %v1233_v36 = vadd.f32 %v1231_v49, %v1207_v16 }
  0xbd   : > { %v1525_v52 = vpop.eup %1524  ;;  %v863_v38 = vmul.f32 %v1523_v53, %v2036_v61 }
  0xbe   : > { %v1527_v29 = vpop.eup %1526  ;;  %v691_v56 = vadd.f32 %v689_v47, %v537_v23  ;;  %v867_v42 = vadd.f32 %v1523_v53, %v693_v43  ;;  %v1103_v39 = vmul.f32 %v1525_v52, %v2038_v50  ;;  %v1162_v53 = vpop.permute.xlu0 %1161 }
  0xbf   : > { %v1529_v40 = vpop.eup %1528  ;;  %v538_v9 = vmul.f32 %v1527_v29, %v2037_v44 }
  0xc0   : > { %v1531_v8 = vpop.eup %1530  ;;  %v690_v30 = vmul.f32 %v1529_v40, %v2039_v10  ;;  %v694_v58 = vadd.f32 %v1529_v40, %v1527_v29  ;;  %v865_v41 = vadd.f32 %v863_v38, %v691_v56  ;;  %v1107_v31 = vadd.f32 %v1525_v52, %v867_v42 }
  0xc1   : > { %v864_v55 = vmul.f32 %v1531_v8, %v2040_v11  ;;  %v1259_v29 = vadd.f32 %v1257_v33, %v1233_v36  ;;  %v1283_v56 = vmul.f32 %v1278_v7, %v1950_v3 }
  0xc2   : > { %v1533_v51 = vpop.eup %1532  ;;  %v692_v34 = vadd.f32 %v690_v30, %v538_v9  ;;  %v868_v35 = vadd.f32 %v1531_v8, %v694_v58  ;;  %v1105_v12 = vadd.f32 %v1103_v39, %v865_v41  ;;  %1534 = vrcp.f32 %v1107_v31  ;;  %v1179_v9 = vpop.permute.xlu0 %1178 }
  0xc3   : > { %v1104_v59 = vmul.f32 %v1533_v51, %v2041_v48  ;;  %v1285_v39 = vadd.f32 %v1283_v56, %v1259_v29 }
  0xc4   : > { %v866_v60 = vadd.f32 %v864_v55, %v692_v34  ;;  %v1108_v19 = vadd.f32 %v1533_v51, %v868_v35 }
  0xc6   : > { %v1106_v18 = vadd.f32 %v1104_v59, %v866_v60  ;;  %1536 = vrcp.f32 %v1108_v19 }
  0xcf   : > { %v1535_v45 = vpop.eup %1534 }
  0xd0   : > { %v1111_v17 = vmul.f32 %v1535_v45, %v1105_v12 }
  0xd2   : > { %v1135_v54 = vrot.slane %v1111_v17, %v1695_v22  ;;  %v1151_v0 = vrot.slane %v1111_v17, %v1811_v25  ;;  %v1121_v32 = vrot.slane %v1111_v17, %v1692_v21  ;;  %v1167_v37 = vrot.slane %v1111_v17, %v1814_v26 }
  0xd3   : > { %v1537_v28 = vpop.eup %1536 }
  0xd4   : > { %v1112_v23 = vmul.f32 %v1537_v28, %v1106_v18  ;;  %v1140_v57 = vmul.f32 %v1135_v54, %v1918_v20  ;;  %v1126_v13 = vmul.f32 %v1121_v32, %v1920_v1  ;;  %v1156_v5 = vmul.f32 %v1151_v0, %v1923_v2 }
  0xd5   : > { %v1172_v61 = vmul.f32 %v1167_v37, %v1162_v53 }
  0xd6   : > { %v1139_v47 = vrot.slane %v1112_v23, %v1695_v22  ;;  %v1155_v43 = vrot.slane %v1112_v23, %v1811_v25  ;;  %v1125_v52 = vrot.slane %v1112_v23, %v1692_v21  ;;  %v1142_v63 = vadd.f32 %v1140_v57, %v1126_v13 }
  0xd7   : > { %v1171_v40 = vrot.slane %v1112_v23, %v1814_v26 }
  0xd8   : > { %v1141_v38 = vmul.f32 %v1139_v47, %v1918_v20  ;;  %v1127_v42 = vmul.f32 %v1125_v52, %v1920_v1  ;;  %v1158_v44 = vadd.f32 %v1156_v5, %v1142_v63  ;;  %v1157_v22 = vmul.f32 %v1155_v43, %v1923_v2 }
  0xd9   : > { %v1173_v21 = vmul.f32 %v1171_v40, %v1162_v53 }
  0xda   : > { %v1143_v50 = vadd.f32 %v1141_v38, %v1127_v42  ;;  %v1174_v25 = vadd.f32 %v1172_v61, %v1158_v44 }
  0xdc   : > { %v1159_v8 = vadd.f32 %v1157_v22, %v1143_v50  ;;  %v1181_v10 = vadd.f32 %v1179_v9, %v1174_v25 }
  0xde   : > { %v1175_v30 = vadd.f32 %v1173_v21, %v1159_v8  ;;  %v1287_v3 = vadd.f32 %v1285_v39, %v1181_v10 }
  0xe0   : > { %v1182_v58 = vadd.f32 %v1179_v9, %v1175_v30  ;;  %v1289_v41 = vmax.f32 %v1287_v3, 0.0 }
  0xe2   : > { %v1288_v20 = vadd.f32 %v1953_v24, %v1182_v58 }
  0xe4   : > { %v1290_v1 = vmax.f32 %v1288_v20, 0.0 }
  0xe6   : > { %v1293_v26 = vcombine.low %v1289_v41, %v1290_v1 }
  0xe8   : > { %1295 = vst [vmem:[%s385_s18] sm:$0xff] %v1293_v26 }
  0xe9 PF: > { %s18_s29 = sadd.s32 1, %s1560_s29   ;;  %s2042_s27 = smov %s1556_s28 }
  0xea   : > { %p15_p5 = scmp.ge.s32.totalorder %s18_s29, 4   ;;  %s2043_s28 = smov %s2045_s30 }
  0xec   :  { %17 = sbr.rel (!%p15_p5) target bundleno = 2 (0x2), region = 110 }

</bundles_post_ra>
